<compile_context>
chip_gen: v5e
topology: v5e:2x2
jax: 0.10.0
libtpu: 0.0.40
codegen_flags: <defaults>
</compile_context>

<pallas_src>
import math

import jax
import jax.numpy as jnp
from jax.experimental import pallas as pl
from jax.experimental.pallas import tpu as pltpu


# ----------------------------- model config ---------------------------------
VOCAB = 256
N_EMBD = 128
N_HEAD = 4
HEAD_DIM = N_EMBD // N_HEAD
N_LAYER = 2
MAX_POS = 32
SEQ = 8
LN_EPS = 1e-5

_VMEM = pl.BlockSpec(memory_space=pltpu.MemorySpace.VMEM)
_SMEM = pl.BlockSpec(memory_space=pltpu.MemorySpace.SMEM)


# ------------------------------ kernel ---------------------------------------
def _gelu_new(x):
    # GPT-2 "gelu_new" (tanh approximation) — tanh runs on the EUP slot.
    c = math.sqrt(2.0 / math.pi)
    return 0.5 * x * (1.0 + jnp.tanh(c * (x + 0.044715 * x * x * x)))


def _gpt2_fused_kernel(ids_ref, wpe_ref, wte_ref,
                       ln1_g_ref, ln1_b_ref, attn_w_ref, attn_b_ref,
                       proj_w_ref, proj_b_ref, ln2_g_ref, ln2_b_ref,
                       fc_w_ref, fc_b_ref, mlp_w_ref, mlp_b_ref,
                       lnf_g_ref, lnf_b_ref, wte_t_ref,
                       o_ref, emb_ref):
    S = ids_ref.shape[0]
    D = N_EMBD
    Dh = HEAD_DIM
    bf16 = jnp.bfloat16

    def ln(x, g, b):
        # LayerNorm, statistics in f32; g/b are pre-shaped (1, D).
        mu = jnp.mean(x, axis=-1, keepdims=True)
        xc = x - mu
        var = jnp.mean(xc * xc, axis=-1, keepdims=True)
        return xc * jax.lax.rsqrt(var + LN_EPS) * g + b

    # ---- fused token + position embedding gather (ids are SMEM scalars) ----
    for i in range(S):                       # static unroll, S = 8
        tok = ids_ref[i]
        emb_ref[pl.ds(i, 1), :] = wte_ref[pl.ds(tok, 1), :]
    x = emb_ref[...] + wpe_ref[0:S, :]                          # (S, D) f32

    # ---- additive causal mask, stacked over heads: (N_HEAD*S, S) -----------
    qi = jax.lax.broadcasted_iota(jnp.int32, (N_HEAD * S, S), 0)
    ki = jax.lax.broadcasted_iota(jnp.int32, (N_HEAD * S, S), 1)
    mask_add = jnp.where(ki <= (qi % S), 0.0, -1e30).astype(jnp.float32)

    scale = 1.0 / math.sqrt(Dh)

    for l in range(N_LAYER):        # static unroll; all layer weights in VMEM
        # ---------------- attention sub-block ----------------
        h = ln(x, ln1_g_ref[l], ln1_b_ref[l])
        qkv = jnp.dot(h.astype(bf16), attn_w_ref[l],
                      preferred_element_type=jnp.float32) + attn_b_ref[l]
        q_bf = (qkv[:, 0:D] * scale).astype(bf16)               # (S, D)
        kT_bf = qkv[:, D:2 * D].T.astype(bf16)                  # (D, S)
        v_bf = qkv[:, 2 * D:3 * D].astype(bf16)                 # (S, D)

        # Per-head (S, S) scores stacked along sublanes -> ONE masked softmax.
        s_all = jnp.concatenate(
            [jnp.dot(q_bf[:, hd * Dh:(hd + 1) * Dh],
                     kT_bf[hd * Dh:(hd + 1) * Dh, :],
                     preferred_element_type=jnp.float32)
             for hd in range(N_HEAD)], axis=0)                  # (4S, S) f32
        s_all = s_all + mask_add
        s_all = s_all - jnp.max(s_all, axis=-1, keepdims=True)
        p_all = jnp.exp(s_all)
        p_all = p_all * pl.reciprocal(
            jnp.sum(p_all, axis=-1, keepdims=True), approx=True)

        # Head outputs lane-concatenated -> single K=128 out-projection matmul.
        attn_out = jnp.concatenate(
            [jnp.dot(p_all[hd * S:(hd + 1) * S, :].astype(bf16),
                     v_bf[:, hd * Dh:(hd + 1) * Dh],
                     preferred_element_type=jnp.float32)
             for hd in range(N_HEAD)], axis=1)                  # (S, D) f32

        x = x + proj_b_ref[l] + jnp.dot(attn_out.astype(bf16), proj_w_ref[l],
                                        preferred_element_type=jnp.float32)

        # ---------------- MLP sub-block ----------------
        h = ln(x, ln2_g_ref[l], ln2_b_ref[l])
        m = _gelu_new(jnp.dot(h.astype(bf16), fc_w_ref[l],
                              preferred_element_type=jnp.float32)
                      + fc_b_ref[l])
        x = x + mlp_b_ref[l] + jnp.dot(m.astype(bf16), mlp_w_ref[l],
                                       preferred_element_type=jnp.float32)

    # ------- final LN + tied LM head (pre-transposed (D, V) bf16 weight) ----
    x = ln(x, lnf_g_ref[...], lnf_b_ref[...])
    o_ref[...] = jnp.dot(x.astype(bf16), wte_t_ref[...],
                         preferred_element_type=jnp.float32)    # (S, V)


# ------------------------------ GPT-2 forward ---------------------------------
def gpt2_forward(params, input_ids):
    S = input_ids.shape[0]
    return pl.pallas_call(
        _gpt2_fused_kernel,
        out_shape=jax.ShapeDtypeStruct((S, VOCAB), jnp.float32),
        in_specs=[_SMEM] + [_VMEM] * 17,
        out_specs=_VMEM,
        scratch_shapes=[pltpu.VMEM((S, N_EMBD), jnp.float32)],
    )(input_ids,
      params["wpe"], params["wte"],
      params["ln1_g"], params["ln1_b"], params["attn_w"], params["attn_b"],
      params["proj_w"], params["proj_b"], params["ln2_g"], params["ln2_b"],
      params["fc_w"], params["fc_b"], params["mlp_w"], params["mlp_b"],
      params["lnf_g"], params["lnf_b"], params["wte_t"])


# ------------------------------ parameter init --------------------------------
def init_params(key):
    # Matmul weights stored in bf16 (MXU operands); LN params, biases and the
    # embedding gather table stay f32.  Weights stacked over layers and biases
    # pre-shaped (L, 1, F) so the fused kernel indexes them with static slices.
    std = 0.02
    L, D = N_LAYER, N_EMBD
    bf16 = jnp.bfloat16
    keys = jax.random.split(key, 6)

    def nrm(k, shape):
        return (std * jax.random.normal(k, shape)).astype(jnp.float32)

    wte = nrm(keys[0], (VOCAB, D))
    return {
        "wte": wte,                              # f32 gather table (dyn. rows)
        "wte_t": wte.T.astype(bf16),             # tied LM head, pre-transposed
        "wpe": nrm(keys[1], (MAX_POS, D)),
        "lnf_g": jnp.ones((1, D), jnp.float32),
        "lnf_b": jnp.zeros((1, D), jnp.float32),
        "ln1_g": jnp.ones((L, 1, D), jnp.float32),
        "ln1_b": jnp.zeros((L, 1, D), jnp.float32),
        "attn_w": nrm(keys[2], (L, D, 3 * D)).astype(bf16),
        "attn_b": jnp.zeros((L, 1, 3 * D), jnp.float32),
        "proj_w": nrm(keys[3], (L, D, D)).astype(bf16),
        "proj_b": jnp.zeros((L, 1, D), jnp.float32),
        "ln2_g": jnp.ones((L, 1, D), jnp.float32),
        "ln2_b": jnp.zeros((L, 1, D), jnp.float32),
        "fc_w": nrm(keys[4], (L, D, 4 * D)).astype(bf16),
        "fc_b": jnp.zeros((L, 1, 4 * D), jnp.float32),
        "mlp_w": nrm(keys[5], (L, 4 * D, D)).astype(bf16),
        "mlp_b": jnp.zeros((L, 1, D), jnp.float32),
    }


# TODO(synk): Simulator.sample()/get_p() are host-side autoregressive decoding
# loops over a tokenizer (strings, multinomial sampling, file I/O) — no tensor
# kernel equivalent; only the forward() hot path is implemented here.

if __name__ == "__main__":
    key = jax.random.PRNGKey(0)
    pkey, ikey = jax.random.split(key)
    params = init_params(pkey)
    input_ids = jax.random.randint(ikey, (SEQ,), 0, VOCAB, dtype=jnp.int32)

    logits = jax.jit(gpt2_forward)(params, input_ids)
    logits = jax.block_until_ready(logits)
    assert logits.shape == (SEQ, VOCAB) and logits.dtype == jnp.float32
    assert bool(jnp.all(jnp.isfinite(logits)))
    print("KERNEL_OK")
</pallas_src>

<mosaic_0001>
module attributes {stable_mosaic.version = 11 : i64} {
  func.func @_gpt2_fused_kernel(%arg0: memref<8xi32, #tpu.memory_space<smem>>, %arg1: memref<32x128xf32, #tpu.memory_space<vmem>>, %arg2: memref<256x128xf32, #tpu.memory_space<vmem>>, %arg3: memref<2x1x128xf32, #tpu.memory_space<vmem>>, %arg4: memref<2x1x128xf32, #tpu.memory_space<vmem>>, %arg5: memref<2x128x384xbf16, #tpu.memory_space<vmem>>, %arg6: memref<2x1x384xf32, #tpu.memory_space<vmem>>, %arg7: memref<2x128x128xbf16, #tpu.memory_space<vmem>>, %arg8: memref<2x1x128xf32, #tpu.memory_space<vmem>>, %arg9: memref<2x1x128xf32, #tpu.memory_space<vmem>>, %arg10: memref<2x1x128xf32, #tpu.memory_space<vmem>>, %arg11: memref<2x128x512xbf16, #tpu.memory_space<vmem>>, %arg12: memref<2x1x512xf32, #tpu.memory_space<vmem>>, %arg13: memref<2x512x128xbf16, #tpu.memory_space<vmem>>, %arg14: memref<2x1x128xf32, #tpu.memory_space<vmem>>, %arg15: memref<1x128xf32, #tpu.memory_space<vmem>>, %arg16: memref<1x128xf32, #tpu.memory_space<vmem>>, %arg17: memref<128x256xbf16, #tpu.memory_space<vmem>>, %arg18: memref<8x256xf32, #tpu.memory_space<vmem>>, %arg19: memref<8x128xf32, #tpu.memory_space<vmem>>) attributes {dimension_semantics = [], scalar_prefetch = 0 : i64, scratch_operands = 1 : i64, tpu.core_type = #tpu.core_type<tc>} {
    %c0 = arith.constant 0 : index
    %0 = memref.load %arg0[%c0] : memref<8xi32, #tpu.memory_space<smem>>
    %1 = arith.index_cast %0 : i32 to index
    %c0_0 = arith.constant 0 : index
    %2 = vector.load %arg2[%1, %c0_0] : memref<256x128xf32, #tpu.memory_space<vmem>>, vector<1x128xf32>
    %c0_1 = arith.constant 0 : index
    %c0_2 = arith.constant 0 : index
    %3 = vector.load %arg19[%c0_1, %c0_2] : memref<8x128xf32, #tpu.memory_space<vmem>>, vector<1x128xf32>
    tpu.vector_store %arg19[%c0_1, %c0_2], %2 {strides = array<i32>} : memref<8x128xf32, #tpu.memory_space<vmem>>, vector<1x128xf32>,
    %c1 = arith.constant 1 : index
    %4 = memref.load %arg0[%c1] : memref<8xi32, #tpu.memory_space<smem>>
    %5 = arith.index_cast %4 : i32 to index
    %c0_3 = arith.constant 0 : index
    %6 = vector.load %arg2[%5, %c0_3] : memref<256x128xf32, #tpu.memory_space<vmem>>, vector<1x128xf32>
    %c1_4 = arith.constant 1 : index
    %c0_5 = arith.constant 0 : index
    %7 = vector.load %arg19[%c1_4, %c0_5] : memref<8x128xf32, #tpu.memory_space<vmem>>, vector<1x128xf32>
    tpu.vector_store %arg19[%c1_4, %c0_5], %6 {strides = array<i32>} : memref<8x128xf32, #tpu.memory_space<vmem>>, vector<1x128xf32>,
    %c2 = arith.constant 2 : index
    %8 = memref.load %arg0[%c2] : memref<8xi32, #tpu.memory_space<smem>>
    %9 = arith.index_cast %8 : i32 to index
    %c0_6 = arith.constant 0 : index
    %10 = vector.load %arg2[%9, %c0_6] : memref<256x128xf32, #tpu.memory_space<vmem>>, vector<1x128xf32>
    %c2_7 = arith.constant 2 : index
    %c0_8 = arith.constant 0 : index
    %11 = vector.load %arg19[%c2_7, %c0_8] : memref<8x128xf32, #tpu.memory_space<vmem>>, vector<1x128xf32>
    tpu.vector_store %arg19[%c2_7, %c0_8], %10 {strides = array<i32>} : memref<8x128xf32, #tpu.memory_space<vmem>>, vector<1x128xf32>,
    %c3 = arith.constant 3 : index
    %12 = memref.load %arg0[%c3] : memref<8xi32, #tpu.memory_space<smem>>
    %13 = arith.index_cast %12 : i32 to index
    %c0_9 = arith.constant 0 : index
    %14 = vector.load %arg2[%13, %c0_9] : memref<256x128xf32, #tpu.memory_space<vmem>>, vector<1x128xf32>
    %c3_10 = arith.constant 3 : index
    %c0_11 = arith.constant 0 : index
    %15 = vector.load %arg19[%c3_10, %c0_11] : memref<8x128xf32, #tpu.memory_space<vmem>>, vector<1x128xf32>
    tpu.vector_store %arg19[%c3_10, %c0_11], %14 {strides = array<i32>} : memref<8x128xf32, #tpu.memory_space<vmem>>, vector<1x128xf32>,
    %c4 = arith.constant 4 : index
    %16 = memref.load %arg0[%c4] : memref<8xi32, #tpu.memory_space<smem>>
    %17 = arith.index_cast %16 : i32 to index
    %c0_12 = arith.constant 0 : index
    %18 = vector.load %arg2[%17, %c0_12] : memref<256x128xf32, #tpu.memory_space<vmem>>, vector<1x128xf32>
    %c4_13 = arith.constant 4 : index
    %c0_14 = arith.constant 0 : index
    %19 = vector.load %arg19[%c4_13, %c0_14] : memref<8x128xf32, #tpu.memory_space<vmem>>, vector<1x128xf32>
    tpu.vector_store %arg19[%c4_13, %c0_14], %18 {strides = array<i32>} : memref<8x128xf32, #tpu.memory_space<vmem>>, vector<1x128xf32>,
    %c5 = arith.constant 5 : index
    %20 = memref.load %arg0[%c5] : memref<8xi32, #tpu.memory_space<smem>>
    %21 = arith.index_cast %20 : i32 to index
    %c0_15 = arith.constant 0 : index
    %22 = vector.load %arg2[%21, %c0_15] : memref<256x128xf32, #tpu.memory_space<vmem>>, vector<1x128xf32>
    %c5_16 = arith.constant 5 : index
    %c0_17 = arith.constant 0 : index
    %23 = vector.load %arg19[%c5_16, %c0_17] : memref<8x128xf32, #tpu.memory_space<vmem>>, vector<1x128xf32>
    tpu.vector_store %arg19[%c5_16, %c0_17], %22 {strides = array<i32>} : memref<8x128xf32, #tpu.memory_space<vmem>>, vector<1x128xf32>,
    %c6 = arith.constant 6 : index
    %24 = memref.load %arg0[%c6] : memref<8xi32, #tpu.memory_space<smem>>
    %25 = arith.index_cast %24 : i32 to index
    %c0_18 = arith.constant 0 : index
    %26 = vector.load %arg2[%25, %c0_18] : memref<256x128xf32, #tpu.memory_space<vmem>>, vector<1x128xf32>
    %c6_19 = arith.constant 6 : index
    %c0_20 = arith.constant 0 : index
    %27 = vector.load %arg19[%c6_19, %c0_20] : memref<8x128xf32, #tpu.memory_space<vmem>>, vector<1x128xf32>
    tpu.vector_store %arg19[%c6_19, %c0_20], %26 {strides = array<i32>} : memref<8x128xf32, #tpu.memory_space<vmem>>, vector<1x128xf32>,
    %c7 = arith.constant 7 : index
    %28 = memref.load %arg0[%c7] : memref<8xi32, #tpu.memory_space<smem>>
    %29 = arith.index_cast %28 : i32 to index
    %c0_21 = arith.constant 0 : index
    %30 = vector.load %arg2[%29, %c0_21] : memref<256x128xf32, #tpu.memory_space<vmem>>, vector<1x128xf32>
    %c7_22 = arith.constant 7 : index
    %c0_23 = arith.constant 0 : index
    %31 = vector.load %arg19[%c7_22, %c0_23] : memref<8x128xf32, #tpu.memory_space<vmem>>, vector<1x128xf32>
    tpu.vector_store %arg19[%c7_22, %c0_23], %30 {strides = array<i32>} : memref<8x128xf32, #tpu.memory_space<vmem>>, vector<1x128xf32>,
    %c0_24 = arith.constant 0 : index
    %c0_25 = arith.constant 0 : index
    %32 = vector.load %arg19[%c0_24, %c0_25] : memref<8x128xf32, #tpu.memory_space<vmem>>, vector<8x128xf32>
    %c0_26 = arith.constant 0 : index
    %c0_27 = arith.constant 0 : index
    %33 = vector.load %arg1[%c0_26, %c0_27] : memref<32x128xf32, #tpu.memory_space<vmem>>, vector<8x128xf32>
    %34 = arith.addf %32, %33 : vector<8x128xf32>
    %35 = tpu.iota {dimensions = array<i32: 0>} : vector<32x8xi32>
    %36 = tpu.iota {dimensions = array<i32: 1>} : vector<32x8xi32>
    %c8_i32 = arith.constant 8 : i32
    %c0_i32 = arith.constant 0 : i32
    %37 = arith.cmpi eq, %c8_i32, %c0_i32 : i32
    %c1_i32 = arith.constant 1 : i32
    %38 = arith.select %37, %c1_i32, %c8_i32 : i32
    %39 = vector.broadcast %38 : i32 to vector<32x8xi32>
    %40 = arith.remsi %35, %39 : vector<32x8xi32>
    %c0_i32_28 = arith.constant 0 : i32
    %41 = vector.broadcast %c0_i32_28 : i32 to vector<32x8xi32>
    %42 = arith.cmpi ne, %40, %41 : vector<32x8xi32>
    %c0_i32_29 = arith.constant 0 : i32
    %43 = vector.broadcast %c0_i32_29 : i32 to vector<32x8xi32>
    %44 = arith.cmpi slt, %40, %43 : vector<32x8xi32>
    %c0_i32_30 = arith.constant 0 : i32
    %45 = arith.cmpi slt, %38, %c0_i32_30 : i32
    %46 = vector.broadcast %45 : i1 to vector<32x8xi1>
    %47 = vector.broadcast %46 : vector<32x8xi1> to vector<32x8xi1>
    %48 = arith.xori %44, %47 : vector<32x8xi1>
    %49 = arith.andi %48, %42 : vector<32x8xi1>
    %50 = vector.broadcast %38 : i32 to vector<32x8xi32>
    %51 = arith.addi %40, %50 : vector<32x8xi32>
    %52 = arith.select %49, %51, %40 : vector<32x8xi1>, vector<32x8xi32>
    %53 = arith.cmpi sle, %36, %52 : vector<32x8xi32>
    %cst = arith.constant 0.000000e+00 : f32
    %cst_31 = arith.constant -1.000000e+30 : f32
    %54 = vector.broadcast %cst : f32 to vector<32x8xf32>
    %55 = vector.broadcast %cst_31 : f32 to vector<32x8xf32>
    %56 = arith.select %53, %54, %55 : vector<32x8xi1>, vector<32x8xf32>
    %c0_32 = arith.constant 0 : index
    %c0_33 = arith.constant 0 : index
    %c0_34 = arith.constant 0 : index
    %57 = vector.load %arg3[%c0_32, %c0_33, %c0_34] : memref<2x1x128xf32, #tpu.memory_space<vmem>>, vector<1x1x128xf32>
    %58 = vector.shape_cast %57 : vector<1x1x128xf32> to vector<1x128xf32>
    %c0_35 = arith.constant 0 : index
    %c0_36 = arith.constant 0 : index
    %c0_37 = arith.constant 0 : index
    %59 = vector.load %arg4[%c0_35, %c0_36, %c0_37] : memref<2x1x128xf32, #tpu.memory_space<vmem>>, vector<1x1x128xf32>
    %60 = vector.shape_cast %59 : vector<1x1x128xf32> to vector<1x128xf32>
    %cst_38 = arith.constant dense<0.000000e+00> : vector<8xf32>
    %61 = vector.multi_reduction <add>, %34, %cst_38 [1] : vector<8x128xf32> to vector<8xf32>
    %62 = vector.shape_cast %61 : vector<8xf32> to vector<8x1xf32>
    %cst_39 = arith.constant 1.280000e+02 : f32
    %63 = vector.broadcast %cst_39 : f32 to vector<8x1xf32>
    %64 = arith.divf %62, %63 : vector<8x1xf32>
    %65 = vector.broadcast %64 : vector<8x1xf32> to vector<8x128xf32>
    %66 = arith.subf %34, %65 : vector<8x128xf32>
    %67 = arith.mulf %66, %66 : vector<8x128xf32>
    %cst_40 = arith.constant dense<0.000000e+00> : vector<8xf32>
    %68 = vector.multi_reduction <add>, %67, %cst_40 [1] : vector<8x128xf32> to vector<8xf32>
    %69 = vector.shape_cast %68 : vector<8xf32> to vector<8x1xf32>
    %cst_41 = arith.constant 1.280000e+02 : f32
    %70 = vector.broadcast %cst_41 : f32 to vector<8x1xf32>
    %71 = arith.divf %69, %70 : vector<8x1xf32>
    %cst_42 = arith.constant 9.99999974E-6 : f32
    %72 = vector.broadcast %cst_42 : f32 to vector<8x1xf32>
    %73 = arith.addf %71, %72 : vector<8x1xf32>
    %74 = math.rsqrt %73 : vector<8x1xf32>
    %75 = vector.broadcast %74 : vector<8x1xf32> to vector<8x128xf32>
    %76 = arith.mulf %66, %75 : vector<8x128xf32>
    %77 = vector.broadcast %58 : vector<1x128xf32> to vector<8x128xf32>
    %78 = arith.mulf %76, %77 : vector<8x128xf32>
    %79 = vector.broadcast %60 : vector<1x128xf32> to vector<8x128xf32>
    %80 = arith.addf %78, %79 : vector<8x128xf32>
    %81 = arith.truncf %80 : vector<8x128xf32> to vector<8x128xbf16>
    %c0_43 = arith.constant 0 : index
    %c0_44 = arith.constant 0 : index
    %c0_45 = arith.constant 0 : index
    %82 = vector.load %arg5[%c0_43, %c0_44, %c0_45] : memref<2x128x384xbf16, #tpu.memory_space<vmem>>, vector<1x128x384xbf16>
    %83 = vector.shape_cast %82 : vector<1x128x384xbf16> to vector<128x384xbf16>
    %cst_46 = arith.constant dense<0.000000e+00> : vector<8x384xf32>
    %84 = tpu.matmul %81, %83, %cst_46 {dimension_numbers = #tpu.dot_dimension_numbers<[1], [0], [0], [1], [0, 0, 1, 1], [], []>} : vector<8x128xbf16>, vector<128x384xbf16>, vector<8x384xf32> -> vector<8x384xf32>
    %c0_47 = arith.constant 0 : index
    %c0_48 = arith.constant 0 : index
    %c0_49 = arith.constant 0 : index
    %85 = vector.load %arg6[%c0_47, %c0_48, %c0_49] : memref<2x1x384xf32, #tpu.memory_space<vmem>>, vector<1x1x384xf32>
    %86 = vector.shape_cast %85 : vector<1x1x384xf32> to vector<1x384xf32>
    %87 = vector.broadcast %86 : vector<1x384xf32> to vector<8x384xf32>
    %88 = arith.addf %84, %87 : vector<8x384xf32>
    %89 = vector.extract_strided_slice %88 {offsets = [0, 0], sizes = [8, 128], strides = [1, 1]} : vector<8x384xf32> to vector<8x128xf32>
    %cst_50 = arith.constant 0.176776692 : f32
    %90 = vector.broadcast %cst_50 : f32 to vector<8x128xf32>
    %91 = arith.mulf %89, %90 : vector<8x128xf32>
    %92 = arith.truncf %91 : vector<8x128xf32> to vector<8x128xbf16>
    %93 = vector.extract_strided_slice %88 {offsets = [0, 128], sizes = [8, 128], strides = [1, 1]} : vector<8x384xf32> to vector<8x128xf32>
    %94 = tpu.transpose %93, [1, 0] : vector<8x128xf32> -> vector<128x8xf32>
    %95 = arith.truncf %94 : vector<128x8xf32> to vector<128x8xbf16>
    %96 = vector.extract_strided_slice %88 {offsets = [0, 256], sizes = [8, 128], strides = [1, 1]} : vector<8x384xf32> to vector<8x128xf32>
    %97 = arith.truncf %96 : vector<8x128xf32> to vector<8x128xbf16>
    %98 = vector.extract_strided_slice %92 {offsets = [0, 0], sizes = [8, 32], strides = [1, 1]} : vector<8x128xbf16> to vector<8x32xbf16>
    %99 = vector.extract_strided_slice %95 {offsets = [0, 0], sizes = [32, 8], strides = [1, 1]} : vector<128x8xbf16> to vector<32x8xbf16>
    %cst_51 = arith.constant dense<0.000000e+00> : vector<8x8xf32>
    %100 = tpu.matmul %98, %99, %cst_51 {dimension_numbers = #tpu.dot_dimension_numbers<[1], [0], [0], [1], [0, 0, 1, 1], [], []>} : vector<8x32xbf16>, vector<32x8xbf16>, vector<8x8xf32> -> vector<8x8xf32>
    %101 = vector.extract_strided_slice %92 {offsets = [0, 32], sizes = [8, 32], strides = [1, 1]} : vector<8x128xbf16> to vector<8x32xbf16>
    %102 = vector.extract_strided_slice %95 {offsets = [32, 0], sizes = [32, 8], strides = [1, 1]} : vector<128x8xbf16> to vector<32x8xbf16>
    %cst_52 = arith.constant dense<0.000000e+00> : vector<8x8xf32>
    %103 = tpu.matmul %101, %102, %cst_52 {dimension_numbers = #tpu.dot_dimension_numbers<[1], [0], [0], [1], [0, 0, 1, 1], [], []>} : vector<8x32xbf16>, vector<32x8xbf16>, vector<8x8xf32> -> vector<8x8xf32>
    %104 = vector.extract_strided_slice %92 {offsets = [0, 64], sizes = [8, 32], strides = [1, 1]} : vector<8x128xbf16> to vector<8x32xbf16>
    %105 = vector.extract_strided_slice %95 {offsets = [64, 0], sizes = [32, 8], strides = [1, 1]} : vector<128x8xbf16> to vector<32x8xbf16>
    %cst_53 = arith.constant dense<0.000000e+00> : vector<8x8xf32>
    %106 = tpu.matmul %104, %105, %cst_53 {dimension_numbers = #tpu.dot_dimension_numbers<[1], [0], [0], [1], [0, 0, 1, 1], [], []>} : vector<8x32xbf16>, vector<32x8xbf16>, vector<8x8xf32> -> vector<8x8xf32>
    %107 = vector.extract_strided_slice %92 {offsets = [0, 96], sizes = [8, 32], strides = [1, 1]} : vector<8x128xbf16> to vector<8x32xbf16>
    %108 = vector.extract_strided_slice %95 {offsets = [96, 0], sizes = [32, 8], strides = [1, 1]} : vector<128x8xbf16> to vector<32x8xbf16>
    %cst_54 = arith.constant dense<0.000000e+00> : vector<8x8xf32>
    %109 = tpu.matmul %107, %108, %cst_54 {dimension_numbers = #tpu.dot_dimension_numbers<[1], [0], [0], [1], [0, 0, 1, 1], [], []>} : vector<8x32xbf16>, vector<32x8xbf16>, vector<8x8xf32> -> vector<8x8xf32>
    %110 = tpu.concatenate %100, %103, %106, %109 in 0 : vector<8x8xf32>, vector<8x8xf32>, vector<8x8xf32>, vector<8x8xf32> -> vector<32x8xf32>
    %111 = arith.addf %110, %56 : vector<32x8xf32>
    %cst_55 = arith.constant dense<0xFF800000> : vector<32xf32>
    %112 = vector.multi_reduction <maximumf>, %111, %cst_55 [1] : vector<32x8xf32> to vector<32xf32>
    %113 = vector.shape_cast %112 : vector<32xf32> to vector<32x1xf32>
    %114 = vector.broadcast %113 : vector<32x1xf32> to vector<32x8xf32>
    %115 = arith.subf %111, %114 : vector<32x8xf32>
    %116 = math.exp %115 : vector<32x8xf32>
    %cst_56 = arith.constant dense<0.000000e+00> : vector<32xf32>
    %117 = vector.multi_reduction <add>, %116, %cst_56 [1] : vector<32x8xf32> to vector<32xf32>
    %118 = vector.shape_cast %117 : vector<32xf32> to vector<32x1xf32>
    %119 = tpu.reciprocal %118 {approx = true} : vector<32x1xf32> -> vector<32x1xf32>
    %120 = vector.broadcast %119 : vector<32x1xf32> to vector<32x8xf32>
    %121 = arith.mulf %116, %120 : vector<32x8xf32>
    %122 = vector.extract_strided_slice %121 {offsets = [0, 0], sizes = [8, 8], strides = [1, 1]} : vector<32x8xf32> to vector<8x8xf32>
    %123 = arith.truncf %122 : vector<8x8xf32> to vector<8x8xbf16>
    %124 = vector.extract_strided_slice %97 {offsets = [0, 0], sizes = [8, 32], strides = [1, 1]} : vector<8x128xbf16> to vector<8x32xbf16>
    %cst_57 = arith.constant dense<0.000000e+00> : vector<8x32xf32>
    %125 = tpu.matmul %123, %124, %cst_57 {dimension_numbers = #tpu.dot_dimension_numbers<[1], [0], [0], [1], [0, 0, 1, 1], [], []>} : vector<8x8xbf16>, vector<8x32xbf16>, vector<8x32xf32> -> vector<8x32xf32>
    %126 = vector.extract_strided_slice %121 {offsets = [8, 0], sizes = [8, 8], strides = [1, 1]} : vector<32x8xf32> to vector<8x8xf32>
    %127 = arith.truncf %126 : vector<8x8xf32> to vector<8x8xbf16>
    %128 = vector.extract_strided_slice %97 {offsets = [0, 32], sizes = [8, 32], strides = [1, 1]} : vector<8x128xbf16> to vector<8x32xbf16>
    %cst_58 = arith.constant dense<0.000000e+00> : vector<8x32xf32>
    %129 = tpu.matmul %127, %128, %cst_58 {dimension_numbers = #tpu.dot_dimension_numbers<[1], [0], [0], [1], [0, 0, 1, 1], [], []>} : vector<8x8xbf16>, vector<8x32xbf16>, vector<8x32xf32> -> vector<8x32xf32>
    %130 = vector.extract_strided_slice %121 {offsets = [16, 0], sizes = [8, 8], strides = [1, 1]} : vector<32x8xf32> to vector<8x8xf32>
    %131 = arith.truncf %130 : vector<8x8xf32> to vector<8x8xbf16>
    %132 = vector.extract_strided_slice %97 {offsets = [0, 64], sizes = [8, 32], strides = [1, 1]} : vector<8x128xbf16> to vector<8x32xbf16>
    %cst_59 = arith.constant dense<0.000000e+00> : vector<8x32xf32>
    %133 = tpu.matmul %131, %132, %cst_59 {dimension_numbers = #tpu.dot_dimension_numbers<[1], [0], [0], [1], [0, 0, 1, 1], [], []>} : vector<8x8xbf16>, vector<8x32xbf16>, vector<8x32xf32> -> vector<8x32xf32>
    %134 = vector.extract_strided_slice %121 {offsets = [24, 0], sizes = [8, 8], strides = [1, 1]} : vector<32x8xf32> to vector<8x8xf32>
    %135 = arith.truncf %134 : vector<8x8xf32> to vector<8x8xbf16>
    %136 = vector.extract_strided_slice %97 {offsets = [0, 96], sizes = [8, 32], strides = [1, 1]} : vector<8x128xbf16> to vector<8x32xbf16>
    %cst_60 = arith.constant dense<0.000000e+00> : vector<8x32xf32>
    %137 = tpu.matmul %135, %136, %cst_60 {dimension_numbers = #tpu.dot_dimension_numbers<[1], [0], [0], [1], [0, 0, 1, 1], [], []>} : vector<8x8xbf16>, vector<8x32xbf16>, vector<8x32xf32> -> vector<8x32xf32>
    %138 = tpu.concatenate %125, %129, %133, %137 in 1 : vector<8x32xf32>, vector<8x32xf32>, vector<8x32xf32>, vector<8x32xf32> -> vector<8x128xf32>
    %c0_61 = arith.constant 0 : index
    %c0_62 = arith.constant 0 : index
    %c0_63 = arith.constant 0 : index
    %139 = vector.load %arg8[%c0_61, %c0_62, %c0_63] : memref<2x1x128xf32, #tpu.memory_space<vmem>>, vector<1x1x128xf32>
    %140 = vector.shape_cast %139 : vector<1x1x128xf32> to vector<1x128xf32>
    %141 = vector.broadcast %140 : vector<1x128xf32> to vector<8x128xf32>
    %142 = arith.addf %34, %141 : vector<8x128xf32>
    %143 = arith.truncf %138 : vector<8x128xf32> to vector<8x128xbf16>
    %c0_64 = arith.constant 0 : index
    %c0_65 = arith.constant 0 : index
    %c0_66 = arith.constant 0 : index
    %144 = vector.load %arg7[%c0_64, %c0_65, %c0_66] : memref<2x128x128xbf16, #tpu.memory_space<vmem>>, vector<1x128x128xbf16>
    %145 = vector.shape_cast %144 : vector<1x128x128xbf16> to vector<128x128xbf16>
    %cst_67 = arith.constant dense<0.000000e+00> : vector<8x128xf32>
    %146 = tpu.matmul %143, %145, %cst_67 {dimension_numbers = #tpu.dot_dimension_numbers<[1], [0], [0], [1], [0, 0, 1, 1], [], []>} : vector<8x128xbf16>, vector<128x128xbf16>, vector<8x128xf32> -> vector<8x128xf32>
    %147 = arith.addf %142, %146 : vector<8x128xf32>
    %c0_68 = arith.constant 0 : index
    %c0_69 = arith.constant 0 : index
    %c0_70 = arith.constant 0 : index
    %148 = vector.load %arg9[%c0_68, %c0_69, %c0_70] : memref<2x1x128xf32, #tpu.memory_space<vmem>>, vector<1x1x128xf32>
    %149 = vector.shape_cast %148 : vector<1x1x128xf32> to vector<1x128xf32>
    %c0_71 = arith.constant 0 : index
    %c0_72 = arith.constant 0 : index
    %c0_73 = arith.constant 0 : index
    %150 = vector.load %arg10[%c0_71, %c0_72, %c0_73] : memref<2x1x128xf32, #tpu.memory_space<vmem>>, vector<1x1x128xf32>
    %151 = vector.shape_cast %150 : vector<1x1x128xf32> to vector<1x128xf32>
    %cst_74 = arith.constant dense<0.000000e+00> : vector<8xf32>
    %152 = vector.multi_reduction <add>, %147, %cst_74 [1] : vector<8x128xf32> to vector<8xf32>
    %153 = vector.shape_cast %152 : vector<8xf32> to vector<8x1xf32>
    %cst_75 = arith.constant 1.280000e+02 : f32
    %154 = vector.broadcast %cst_75 : f32 to vector<8x1xf32>
    %155 = arith.divf %153, %154 : vector<8x1xf32>
    %156 = vector.broadcast %155 : vector<8x1xf32> to vector<8x128xf32>
    %157 = arith.subf %147, %156 : vector<8x128xf32>
    %158 = arith.mulf %157, %157 : vector<8x128xf32>
    %cst_76 = arith.constant dense<0.000000e+00> : vector<8xf32>
    %159 = vector.multi_reduction <add>, %158, %cst_76 [1] : vector<8x128xf32> to vector<8xf32>
    %160 = vector.shape_cast %159 : vector<8xf32> to vector<8x1xf32>
    %cst_77 = arith.constant 1.280000e+02 : f32
    %161 = vector.broadcast %cst_77 : f32 to vector<8x1xf32>
    %162 = arith.divf %160, %161 : vector<8x1xf32>
    %cst_78 = arith.constant 9.99999974E-6 : f32
    %163 = vector.broadcast %cst_78 : f32 to vector<8x1xf32>
    %164 = arith.addf %162, %163 : vector<8x1xf32>
    %165 = math.rsqrt %164 : vector<8x1xf32>
    %166 = vector.broadcast %165 : vector<8x1xf32> to vector<8x128xf32>
    %167 = arith.mulf %157, %166 : vector<8x128xf32>
    %168 = vector.broadcast %149 : vector<1x128xf32> to vector<8x128xf32>
    %169 = arith.mulf %167, %168 : vector<8x128xf32>
    %170 = vector.broadcast %151 : vector<1x128xf32> to vector<8x128xf32>
    %171 = arith.addf %169, %170 : vector<8x128xf32>
    %172 = arith.truncf %171 : vector<8x128xf32> to vector<8x128xbf16>
    %c0_79 = arith.constant 0 : index
    %c0_80 = arith.constant 0 : index
    %c0_81 = arith.constant 0 : index
    %173 = vector.load %arg11[%c0_79, %c0_80, %c0_81] : memref<2x128x512xbf16, #tpu.memory_space<vmem>>, vector<1x128x512xbf16>
    %174 = vector.shape_cast %173 : vector<1x128x512xbf16> to vector<128x512xbf16>
    %cst_82 = arith.constant dense<0.000000e+00> : vector<8x512xf32>
    %175 = tpu.matmul %172, %174, %cst_82 {dimension_numbers = #tpu.dot_dimension_numbers<[1], [0], [0], [1], [0, 0, 1, 1], [], []>} : vector<8x128xbf16>, vector<128x512xbf16>, vector<8x512xf32> -> vector<8x512xf32>
    %c0_83 = arith.constant 0 : index
    %c0_84 = arith.constant 0 : index
    %c0_85 = arith.constant 0 : index
    %176 = vector.load %arg12[%c0_83, %c0_84, %c0_85] : memref<2x1x512xf32, #tpu.memory_space<vmem>>, vector<1x1x512xf32>
    %177 = vector.shape_cast %176 : vector<1x1x512xf32> to vector<1x512xf32>
    %178 = vector.broadcast %177 : vector<1x512xf32> to vector<8x512xf32>
    %179 = arith.addf %175, %178 : vector<8x512xf32>
    %cst_86 = arith.constant 5.000000e-01 : f32
    %180 = vector.broadcast %cst_86 : f32 to vector<8x512xf32>
    %181 = arith.mulf %180, %179 : vector<8x512xf32>
    %cst_87 = arith.constant 4.471500e-02 : f32
    %182 = vector.broadcast %cst_87 : f32 to vector<8x512xf32>
    %183 = arith.mulf %182, %179 : vector<8x512xf32>
    %184 = arith.mulf %183, %179 : vector<8x512xf32>
    %185 = arith.mulf %184, %179 : vector<8x512xf32>
    %186 = arith.addf %179, %185 : vector<8x512xf32>
    %cst_88 = arith.constant 0.797884583 : f32
    %187 = vector.broadcast %cst_88 : f32 to vector<8x512xf32>
    %188 = arith.mulf %187, %186 : vector<8x512xf32>
    %189 = math.tanh %188 : vector<8x512xf32>
    %cst_89 = arith.constant 1.000000e+00 : f32
    %190 = vector.broadcast %cst_89 : f32 to vector<8x512xf32>
    %191 = arith.addf %190, %189 : vector<8x512xf32>
    %192 = arith.mulf %181, %191 : vector<8x512xf32>
    %c0_90 = arith.constant 0 : index
    %c0_91 = arith.constant 0 : index
    %c0_92 = arith.constant 0 : index
    %193 = vector.load %arg14[%c0_90, %c0_91, %c0_92] : memref<2x1x128xf32, #tpu.memory_space<vmem>>, vector<1x1x128xf32>
    %194 = vector.shape_cast %193 : vector<1x1x128xf32> to vector<1x128xf32>
    %195 = vector.broadcast %194 : vector<1x128xf32> to vector<8x128xf32>
    %196 = arith.addf %147, %195 : vector<8x128xf32>
    %197 = arith.truncf %192 : vector<8x512xf32> to vector<8x512xbf16>
    %c0_93 = arith.constant 0 : index
    %c0_94 = arith.constant 0 : index
    %c0_95 = arith.constant 0 : index
    %198 = vector.load %arg13[%c0_93, %c0_94, %c0_95] : memref<2x512x128xbf16, #tpu.memory_space<vmem>>, vector<1x512x128xbf16>
    %199 = vector.shape_cast %198 : vector<1x512x128xbf16> to vector<512x128xbf16>
    %cst_96 = arith.constant dense<0.000000e+00> : vector<8x128xf32>
    %200 = tpu.matmul %197, %199, %cst_96 {dimension_numbers = #tpu.dot_dimension_numbers<[1], [0], [0], [1], [0, 0, 1, 1], [], []>} : vector<8x512xbf16>, vector<512x128xbf16>, vector<8x128xf32> -> vector<8x128xf32>
    %201 = arith.addf %196, %200 : vector<8x128xf32>
    %c1_97 = arith.constant 1 : index
    %c0_98 = arith.constant 0 : index
    %c0_99 = arith.constant 0 : index
    %202 = vector.load %arg3[%c1_97, %c0_98, %c0_99] : memref<2x1x128xf32, #tpu.memory_space<vmem>>, vector<1x1x128xf32>
    %203 = vector.shape_cast %202 : vector<1x1x128xf32> to vector<1x128xf32>
    %c1_100 = arith.constant 1 : index
    %c0_101 = arith.constant 0 : index
    %c0_102 = arith.constant 0 : index
    %204 = vector.load %arg4[%c1_100, %c0_101, %c0_102] : memref<2x1x128xf32, #tpu.memory_space<vmem>>, vector<1x1x128xf32>
    %205 = vector.shape_cast %204 : vector<1x1x128xf32> to vector<1x128xf32>
    %cst_103 = arith.constant dense<0.000000e+00> : vector<8xf32>
    %206 = vector.multi_reduction <add>, %201, %cst_103 [1] : vector<8x128xf32> to vector<8xf32>
    %207 = vector.shape_cast %206 : vector<8xf32> to vector<8x1xf32>
    %cst_104 = arith.constant 1.280000e+02 : f32
    %208 = vector.broadcast %cst_104 : f32 to vector<8x1xf32>
    %209 = arith.divf %207, %208 : vector<8x1xf32>
    %210 = vector.broadcast %209 : vector<8x1xf32> to vector<8x128xf32>
    %211 = arith.subf %201, %210 : vector<8x128xf32>
    %212 = arith.mulf %211, %211 : vector<8x128xf32>
    %cst_105 = arith.constant dense<0.000000e+00> : vector<8xf32>
    %213 = vector.multi_reduction <add>, %212, %cst_105 [1] : vector<8x128xf32> to vector<8xf32>
    %214 = vector.shape_cast %213 : vector<8xf32> to vector<8x1xf32>
    %cst_106 = arith.constant 1.280000e+02 : f32
    %215 = vector.broadcast %cst_106 : f32 to vector<8x1xf32>
    %216 = arith.divf %214, %215 : vector<8x1xf32>
    %cst_107 = arith.constant 9.99999974E-6 : f32
    %217 = vector.broadcast %cst_107 : f32 to vector<8x1xf32>
    %218 = arith.addf %216, %217 : vector<8x1xf32>
    %219 = math.rsqrt %218 : vector<8x1xf32>
    %220 = vector.broadcast %219 : vector<8x1xf32> to vector<8x128xf32>
    %221 = arith.mulf %211, %220 : vector<8x128xf32>
    %222 = vector.broadcast %203 : vector<1x128xf32> to vector<8x128xf32>
    %223 = arith.mulf %221, %222 : vector<8x128xf32>
    %224 = vector.broadcast %205 : vector<1x128xf32> to vector<8x128xf32>
    %225 = arith.addf %223, %224 : vector<8x128xf32>
    %226 = arith.truncf %225 : vector<8x128xf32> to vector<8x128xbf16>
    %c1_108 = arith.constant 1 : index
    %c0_109 = arith.constant 0 : index
    %c0_110 = arith.constant 0 : index
    %227 = vector.load %arg5[%c1_108, %c0_109, %c0_110] : memref<2x128x384xbf16, #tpu.memory_space<vmem>>, vector<1x128x384xbf16>
    %228 = vector.shape_cast %227 : vector<1x128x384xbf16> to vector<128x384xbf16>
    %cst_111 = arith.constant dense<0.000000e+00> : vector<8x384xf32>
    %229 = tpu.matmul %226, %228, %cst_111 {dimension_numbers = #tpu.dot_dimension_numbers<[1], [0], [0], [1], [0, 0, 1, 1], [], []>} : vector<8x128xbf16>, vector<128x384xbf16>, vector<8x384xf32> -> vector<8x384xf32>
    %c1_112 = arith.constant 1 : index
    %c0_113 = arith.constant 0 : index
    %c0_114 = arith.constant 0 : index
    %230 = vector.load %arg6[%c1_112, %c0_113, %c0_114] : memref<2x1x384xf32, #tpu.memory_space<vmem>>, vector<1x1x384xf32>
    %231 = vector.shape_cast %230 : vector<1x1x384xf32> to vector<1x384xf32>
    %232 = vector.broadcast %231 : vector<1x384xf32> to vector<8x384xf32>
    %233 = arith.addf %229, %232 : vector<8x384xf32>
    %234 = vector.extract_strided_slice %233 {offsets = [0, 0], sizes = [8, 128], strides = [1, 1]} : vector<8x384xf32> to vector<8x128xf32>
    %cst_115 = arith.constant 0.176776692 : f32
    %235 = vector.broadcast %cst_115 : f32 to vector<8x128xf32>
    %236 = arith.mulf %234, %235 : vector<8x128xf32>
    %237 = arith.truncf %236 : vector<8x128xf32> to vector<8x128xbf16>
    %238 = vector.extract_strided_slice %233 {offsets = [0, 128], sizes = [8, 128], strides = [1, 1]} : vector<8x384xf32> to vector<8x128xf32>
    %239 = tpu.transpose %238, [1, 0] : vector<8x128xf32> -> vector<128x8xf32>
    %240 = arith.truncf %239 : vector<128x8xf32> to vector<128x8xbf16>
    %241 = vector.extract_strided_slice %233 {offsets = [0, 256], sizes = [8, 128], strides = [1, 1]} : vector<8x384xf32> to vector<8x128xf32>
    %242 = arith.truncf %241 : vector<8x128xf32> to vector<8x128xbf16>
    %243 = vector.extract_strided_slice %237 {offsets = [0, 0], sizes = [8, 32], strides = [1, 1]} : vector<8x128xbf16> to vector<8x32xbf16>
    %244 = vector.extract_strided_slice %240 {offsets = [0, 0], sizes = [32, 8], strides = [1, 1]} : vector<128x8xbf16> to vector<32x8xbf16>
    %cst_116 = arith.constant dense<0.000000e+00> : vector<8x8xf32>
    %245 = tpu.matmul %243, %244, %cst_116 {dimension_numbers = #tpu.dot_dimension_numbers<[1], [0], [0], [1], [0, 0, 1, 1], [], []>} : vector<8x32xbf16>, vector<32x8xbf16>, vector<8x8xf32> -> vector<8x8xf32>
    %246 = vector.extract_strided_slice %237 {offsets = [0, 32], sizes = [8, 32], strides = [1, 1]} : vector<8x128xbf16> to vector<8x32xbf16>
    %247 = vector.extract_strided_slice %240 {offsets = [32, 0], sizes = [32, 8], strides = [1, 1]} : vector<128x8xbf16> to vector<32x8xbf16>
    %cst_117 = arith.constant dense<0.000000e+00> : vector<8x8xf32>
    %248 = tpu.matmul %246, %247, %cst_117 {dimension_numbers = #tpu.dot_dimension_numbers<[1], [0], [0], [1], [0, 0, 1, 1], [], []>} : vector<8x32xbf16>, vector<32x8xbf16>, vector<8x8xf32> -> vector<8x8xf32>
    %249 = vector.extract_strided_slice %237 {offsets = [0, 64], sizes = [8, 32], strides = [1, 1]} : vector<8x128xbf16> to vector<8x32xbf16>
    %250 = vector.extract_strided_slice %240 {offsets = [64, 0], sizes = [32, 8], strides = [1, 1]} : vector<128x8xbf16> to vector<32x8xbf16>
    %cst_118 = arith.constant dense<0.000000e+00> : vector<8x8xf32>
    %251 = tpu.matmul %249, %250, %cst_118 {dimension_numbers = #tpu.dot_dimension_numbers<[1], [0], [0], [1], [0, 0, 1, 1], [], []>} : vector<8x32xbf16>, vector<32x8xbf16>, vector<8x8xf32> -> vector<8x8xf32>
    %252 = vector.extract_strided_slice %237 {offsets = [0, 96], sizes = [8, 32], strides = [1, 1]} : vector<8x128xbf16> to vector<8x32xbf16>
    %253 = vector.extract_strided_slice %240 {offsets = [96, 0], sizes = [32, 8], strides = [1, 1]} : vector<128x8xbf16> to vector<32x8xbf16>
    %cst_119 = arith.constant dense<0.000000e+00> : vector<8x8xf32>
    %254 = tpu.matmul %252, %253, %cst_119 {dimension_numbers = #tpu.dot_dimension_numbers<[1], [0], [0], [1], [0, 0, 1, 1], [], []>} : vector<8x32xbf16>, vector<32x8xbf16>, vector<8x8xf32> -> vector<8x8xf32>
    %255 = tpu.concatenate %245, %248, %251, %254 in 0 : vector<8x8xf32>, vector<8x8xf32>, vector<8x8xf32>, vector<8x8xf32> -> vector<32x8xf32>
    %256 = arith.addf %255, %56 : vector<32x8xf32>
    %cst_120 = arith.constant dense<0xFF800000> : vector<32xf32>
    %257 = vector.multi_reduction <maximumf>, %256, %cst_120 [1] : vector<32x8xf32> to vector<32xf32>
    %258 = vector.shape_cast %257 : vector<32xf32> to vector<32x1xf32>
    %259 = vector.broadcast %258 : vector<32x1xf32> to vector<32x8xf32>
    %260 = arith.subf %256, %259 : vector<32x8xf32>
    %261 = math.exp %260 : vector<32x8xf32>
    %cst_121 = arith.constant dense<0.000000e+00> : vector<32xf32>
    %262 = vector.multi_reduction <add>, %261, %cst_121 [1] : vector<32x8xf32> to vector<32xf32>
    %263 = vector.shape_cast %262 : vector<32xf32> to vector<32x1xf32>
    %264 = tpu.reciprocal %263 {approx = true} : vector<32x1xf32> -> vector<32x1xf32>
    %265 = vector.broadcast %264 : vector<32x1xf32> to vector<32x8xf32>
    %266 = arith.mulf %261, %265 : vector<32x8xf32>
    %267 = vector.extract_strided_slice %266 {offsets = [0, 0], sizes = [8, 8], strides = [1, 1]} : vector<32x8xf32> to vector<8x8xf32>
    %268 = arith.truncf %267 : vector<8x8xf32> to vector<8x8xbf16>
    %269 = vector.extract_strided_slice %242 {offsets = [0, 0], sizes = [8, 32], strides = [1, 1]} : vector<8x128xbf16> to vector<8x32xbf16>
    %cst_122 = arith.constant dense<0.000000e+00> : vector<8x32xf32>
    %270 = tpu.matmul %268, %269, %cst_122 {dimension_numbers = #tpu.dot_dimension_numbers<[1], [0], [0], [1], [0, 0, 1, 1], [], []>} : vector<8x8xbf16>, vector<8x32xbf16>, vector<8x32xf32> -> vector<8x32xf32>
    %271 = vector.extract_strided_slice %266 {offsets = [8, 0], sizes = [8, 8], strides = [1, 1]} : vector<32x8xf32> to vector<8x8xf32>
    %272 = arith.truncf %271 : vector<8x8xf32> to vector<8x8xbf16>
    %273 = vector.extract_strided_slice %242 {offsets = [0, 32], sizes = [8, 32], strides = [1, 1]} : vector<8x128xbf16> to vector<8x32xbf16>
    %cst_123 = arith.constant dense<0.000000e+00> : vector<8x32xf32>
    %274 = tpu.matmul %272, %273, %cst_123 {dimension_numbers = #tpu.dot_dimension_numbers<[1], [0], [0], [1], [0, 0, 1, 1], [], []>} : vector<8x8xbf16>, vector<8x32xbf16>, vector<8x32xf32> -> vector<8x32xf32>
    %275 = vector.extract_strided_slice %266 {offsets = [16, 0], sizes = [8, 8], strides = [1, 1]} : vector<32x8xf32> to vector<8x8xf32>
    %276 = arith.truncf %275 : vector<8x8xf32> to vector<8x8xbf16>
    %277 = vector.extract_strided_slice %242 {offsets = [0, 64], sizes = [8, 32], strides = [1, 1]} : vector<8x128xbf16> to vector<8x32xbf16>
    %cst_124 = arith.constant dense<0.000000e+00> : vector<8x32xf32>
    %278 = tpu.matmul %276, %277, %cst_124 {dimension_numbers = #tpu.dot_dimension_numbers<[1], [0], [0], [1], [0, 0, 1, 1], [], []>} : vector<8x8xbf16>, vector<8x32xbf16>, vector<8x32xf32> -> vector<8x32xf32>
    %279 = vector.extract_strided_slice %266 {offsets = [24, 0], sizes = [8, 8], strides = [1, 1]} : vector<32x8xf32> to vector<8x8xf32>
    %280 = arith.truncf %279 : vector<8x8xf32> to vector<8x8xbf16>
    %281 = vector.extract_strided_slice %242 {offsets = [0, 96], sizes = [8, 32], strides = [1, 1]} : vector<8x128xbf16> to vector<8x32xbf16>
    %cst_125 = arith.constant dense<0.000000e+00> : vector<8x32xf32>
    %282 = tpu.matmul %280, %281, %cst_125 {dimension_numbers = #tpu.dot_dimension_numbers<[1], [0], [0], [1], [0, 0, 1, 1], [], []>} : vector<8x8xbf16>, vector<8x32xbf16>, vector<8x32xf32> -> vector<8x32xf32>
    %283 = tpu.concatenate %270, %274, %278, %282 in 1 : vector<8x32xf32>, vector<8x32xf32>, vector<8x32xf32>, vector<8x32xf32> -> vector<8x128xf32>
    %c1_126 = arith.constant 1 : index
    %c0_127 = arith.constant 0 : index
    %c0_128 = arith.constant 0 : index
    %284 = vector.load %arg8[%c1_126, %c0_127, %c0_128] : memref<2x1x128xf32, #tpu.memory_space<vmem>>, vector<1x1x128xf32>
    %285 = vector.shape_cast %284 : vector<1x1x128xf32> to vector<1x128xf32>
    %286 = vector.broadcast %285 : vector<1x128xf32> to vector<8x128xf32>
    %287 = arith.addf %201, %286 : vector<8x128xf32>
    %288 = arith.truncf %283 : vector<8x128xf32> to vector<8x128xbf16>
    %c1_129 = arith.constant 1 : index
    %c0_130 = arith.constant 0 : index
    %c0_131 = arith.constant 0 : index
    %289 = vector.load %arg7[%c1_129, %c0_130, %c0_131] : memref<2x128x128xbf16, #tpu.memory_space<vmem>>, vector<1x128x128xbf16>
    %290 = vector.shape_cast %289 : vector<1x128x128xbf16> to vector<128x128xbf16>
    %cst_132 = arith.constant dense<0.000000e+00> : vector<8x128xf32>
    %291 = tpu.matmul %288, %290, %cst_132 {dimension_numbers = #tpu.dot_dimension_numbers<[1], [0], [0], [1], [0, 0, 1, 1], [], []>} : vector<8x128xbf16>, vector<128x128xbf16>, vector<8x128xf32> -> vector<8x128xf32>
    %292 = arith.addf %287, %291 : vector<8x128xf32>
    %c1_133 = arith.constant 1 : index
    %c0_134 = arith.constant 0 : index
    %c0_135 = arith.constant 0 : index
    %293 = vector.load %arg9[%c1_133, %c0_134, %c0_135] : memref<2x1x128xf32, #tpu.memory_space<vmem>>, vector<1x1x128xf32>
    %294 = vector.shape_cast %293 : vector<1x1x128xf32> to vector<1x128xf32>
    %c1_136 = arith.constant 1 : index
    %c0_137 = arith.constant 0 : index
    %c0_138 = arith.constant 0 : index
    %295 = vector.load %arg10[%c1_136, %c0_137, %c0_138] : memref<2x1x128xf32, #tpu.memory_space<vmem>>, vector<1x1x128xf32>
    %296 = vector.shape_cast %295 : vector<1x1x128xf32> to vector<1x128xf32>
    %cst_139 = arith.constant dense<0.000000e+00> : vector<8xf32>
    %297 = vector.multi_reduction <add>, %292, %cst_139 [1] : vector<8x128xf32> to vector<8xf32>
    %298 = vector.shape_cast %297 : vector<8xf32> to vector<8x1xf32>
    %cst_140 = arith.constant 1.280000e+02 : f32
    %299 = vector.broadcast %cst_140 : f32 to vector<8x1xf32>
    %300 = arith.divf %298, %299 : vector<8x1xf32>
    %301 = vector.broadcast %300 : vector<8x1xf32> to vector<8x128xf32>
    %302 = arith.subf %292, %301 : vector<8x128xf32>
    %303 = arith.mulf %302, %302 : vector<8x128xf32>
    %cst_141 = arith.constant dense<0.000000e+00> : vector<8xf32>
    %304 = vector.multi_reduction <add>, %303, %cst_141 [1] : vector<8x128xf32> to vector<8xf32>
    %305 = vector.shape_cast %304 : vector<8xf32> to vector<8x1xf32>
    %cst_142 = arith.constant 1.280000e+02 : f32
    %306 = vector.broadcast %cst_142 : f32 to vector<8x1xf32>
    %307 = arith.divf %305, %306 : vector<8x1xf32>
    %cst_143 = arith.constant 9.99999974E-6 : f32
    %308 = vector.broadcast %cst_143 : f32 to vector<8x1xf32>
    %309 = arith.addf %307, %308 : vector<8x1xf32>
    %310 = math.rsqrt %309 : vector<8x1xf32>
    %311 = vector.broadcast %310 : vector<8x1xf32> to vector<8x128xf32>
    %312 = arith.mulf %302, %311 : vector<8x128xf32>
    %313 = vector.broadcast %294 : vector<1x128xf32> to vector<8x128xf32>
    %314 = arith.mulf %312, %313 : vector<8x128xf32>
    %315 = vector.broadcast %296 : vector<1x128xf32> to vector<8x128xf32>
    %316 = arith.addf %314, %315 : vector<8x128xf32>
    %317 = arith.truncf %316 : vector<8x128xf32> to vector<8x128xbf16>
    %c1_144 = arith.constant 1 : index
    %c0_145 = arith.constant 0 : index
    %c0_146 = arith.constant 0 : index
    %318 = vector.load %arg11[%c1_144, %c0_145, %c0_146] : memref<2x128x512xbf16, #tpu.memory_space<vmem>>, vector<1x128x512xbf16>
    %319 = vector.shape_cast %318 : vector<1x128x512xbf16> to vector<128x512xbf16>
    %cst_147 = arith.constant dense<0.000000e+00> : vector<8x512xf32>
    %320 = tpu.matmul %317, %319, %cst_147 {dimension_numbers = #tpu.dot_dimension_numbers<[1], [0], [0], [1], [0, 0, 1, 1], [], []>} : vector<8x128xbf16>, vector<128x512xbf16>, vector<8x512xf32> -> vector<8x512xf32>
    %c1_148 = arith.constant 1 : index
    %c0_149 = arith.constant 0 : index
    %c0_150 = arith.constant 0 : index
    %321 = vector.load %arg12[%c1_148, %c0_149, %c0_150] : memref<2x1x512xf32, #tpu.memory_space<vmem>>, vector<1x1x512xf32>
    %322 = vector.shape_cast %321 : vector<1x1x512xf32> to vector<1x512xf32>
    %323 = vector.broadcast %322 : vector<1x512xf32> to vector<8x512xf32>
    %324 = arith.addf %320, %323 : vector<8x512xf32>
    %cst_151 = arith.constant 5.000000e-01 : f32
    %325 = vector.broadcast %cst_151 : f32 to vector<8x512xf32>
    %326 = arith.mulf %325, %324 : vector<8x512xf32>
    %cst_152 = arith.constant 4.471500e-02 : f32
    %327 = vector.broadcast %cst_152 : f32 to vector<8x512xf32>
    %328 = arith.mulf %327, %324 : vector<8x512xf32>
    %329 = arith.mulf %328, %324 : vector<8x512xf32>
    %330 = arith.mulf %329, %324 : vector<8x512xf32>
    %331 = arith.addf %324, %330 : vector<8x512xf32>
    %cst_153 = arith.constant 0.797884583 : f32
    %332 = vector.broadcast %cst_153 : f32 to vector<8x512xf32>
    %333 = arith.mulf %332, %331 : vector<8x512xf32>
    %334 = math.tanh %333 : vector<8x512xf32>
    %cst_154 = arith.constant 1.000000e+00 : f32
    %335 = vector.broadcast %cst_154 : f32 to vector<8x512xf32>
    %336 = arith.addf %335, %334 : vector<8x512xf32>
    %337 = arith.mulf %326, %336 : vector<8x512xf32>
    %c1_155 = arith.constant 1 : index
    %c0_156 = arith.constant 0 : index
    %c0_157 = arith.constant 0 : index
    %338 = vector.load %arg14[%c1_155, %c0_156, %c0_157] : memref<2x1x128xf32, #tpu.memory_space<vmem>>, vector<1x1x128xf32>
    %339 = vector.shape_cast %338 : vector<1x1x128xf32> to vector<1x128xf32>
    %340 = vector.broadcast %339 : vector<1x128xf32> to vector<8x128xf32>
    %341 = arith.addf %292, %340 : vector<8x128xf32>
    %342 = arith.truncf %337 : vector<8x512xf32> to vector<8x512xbf16>
    %c1_158 = arith.constant 1 : index
    %c0_159 = arith.constant 0 : index
    %c0_160 = arith.constant 0 : index
    %343 = vector.load %arg13[%c1_158, %c0_159, %c0_160] : memref<2x512x128xbf16, #tpu.memory_space<vmem>>, vector<1x512x128xbf16>
    %344 = vector.shape_cast %343 : vector<1x512x128xbf16> to vector<512x128xbf16>
    %cst_161 = arith.constant dense<0.000000e+00> : vector<8x128xf32>
    %345 = tpu.matmul %342, %344, %cst_161 {dimension_numbers = #tpu.dot_dimension_numbers<[1], [0], [0], [1], [0, 0, 1, 1], [], []>} : vector<8x512xbf16>, vector<512x128xbf16>, vector<8x128xf32> -> vector<8x128xf32>
    %346 = arith.addf %341, %345 : vector<8x128xf32>
    %c0_162 = arith.constant 0 : index
    %c0_163 = arith.constant 0 : index
    %347 = vector.load %arg15[%c0_162, %c0_163] : memref<1x128xf32, #tpu.memory_space<vmem>>, vector<1x128xf32>
    %c0_164 = arith.constant 0 : index
    %c0_165 = arith.constant 0 : index
    %348 = vector.load %arg16[%c0_164, %c0_165] : memref<1x128xf32, #tpu.memory_space<vmem>>, vector<1x128xf32>
    %cst_166 = arith.constant dense<0.000000e+00> : vector<8xf32>
    %349 = vector.multi_reduction <add>, %346, %cst_166 [1] : vector<8x128xf32> to vector<8xf32>
    %350 = vector.shape_cast %349 : vector<8xf32> to vector<8x1xf32>
    %cst_167 = arith.constant 1.280000e+02 : f32
    %351 = vector.broadcast %cst_167 : f32 to vector<8x1xf32>
    %352 = arith.divf %350, %351 : vector<8x1xf32>
    %353 = vector.broadcast %352 : vector<8x1xf32> to vector<8x128xf32>
    %354 = arith.subf %346, %353 : vector<8x128xf32>
    %355 = arith.mulf %354, %354 : vector<8x128xf32>
    %cst_168 = arith.constant dense<0.000000e+00> : vector<8xf32>
    %356 = vector.multi_reduction <add>, %355, %cst_168 [1] : vector<8x128xf32> to vector<8xf32>
    %357 = vector.shape_cast %356 : vector<8xf32> to vector<8x1xf32>
    %cst_169 = arith.constant 1.280000e+02 : f32
    %358 = vector.broadcast %cst_169 : f32 to vector<8x1xf32>
    %359 = arith.divf %357, %358 : vector<8x1xf32>
    %cst_170 = arith.constant 9.99999974E-6 : f32
    %360 = vector.broadcast %cst_170 : f32 to vector<8x1xf32>
    %361 = arith.addf %359, %360 : vector<8x1xf32>
    %362 = math.rsqrt %361 : vector<8x1xf32>
    %363 = vector.broadcast %362 : vector<8x1xf32> to vector<8x128xf32>
    %364 = arith.mulf %354, %363 : vector<8x128xf32>
    %365 = vector.broadcast %347 : vector<1x128xf32> to vector<8x128xf32>
    %366 = arith.mulf %364, %365 : vector<8x128xf32>
    %367 = vector.broadcast %348 : vector<1x128xf32> to vector<8x128xf32>
    %368 = arith.addf %366, %367 : vector<8x128xf32>
    %369 = arith.truncf %368 : vector<8x128xf32> to vector<8x128xbf16>
    %c0_171 = arith.constant 0 : index
    %c0_172 = arith.constant 0 : index
    %370 = vector.load %arg17[%c0_171, %c0_172] : memref<128x256xbf16, #tpu.memory_space<vmem>>, vector<128x256xbf16>
    %cst_173 = arith.constant dense<0.000000e+00> : vector<8x256xf32>
    %371 = tpu.matmul %369, %370, %cst_173 {dimension_numbers = #tpu.dot_dimension_numbers<[1], [0], [0], [1], [0, 0, 1, 1], [], []>} : vector<8x128xbf16>, vector<128x256xbf16>, vector<8x256xf32> -> vector<8x256xf32>
    %c0_174 = arith.constant 0 : index
    %c0_175 = arith.constant 0 : index
    %372 = vector.load %arg18[%c0_174, %c0_175] : memref<8x256xf32, #tpu.memory_space<vmem>>, vector<8x256xf32>
    tpu.vector_store %arg18[%c0_174, %c0_175], %371 {strides = array<i32>} : memref<8x256xf32, #tpu.memory_space<vmem>>, vector<8x256xf32>,
    return
  }
}

</mosaic_0001>

<bundles_post_ra>
// kernel: gpt2_forward.1
= control target key start
LH: loop header
LB: loop body
LE: loop exit
PB: predicated region body
PF: predicated region fallthrough
CT: control target
= control target key end

     0   :  { %s5051_s0 = inlined_call_operand.vmem [shape: s32[8], index: 0, kind: input, shape index: {}]   ;;  %s5052_s1 = inlined_call_operand.hbm [shape: f32[32,128], index: 1, kind: input, shape index: {}]   ;;  %s5053_s2 = inlined_call_operand.hbm [shape: f32[256,128], index: 2, kind: input, shape index: {}]   ;;  %s5054_s3 = inlined_call_operand.vmem [shape: f32[2,1,128], index: 3, kind: input, shape index: {}]   ;;  %s5055_s4 = inlined_call_operand.hbm [shape: f32[2,1,128], index: 4, kind: input, shape index: {}]   ;;  %s5056_s5 = inlined_call_operand.hbm [shape: bf16[2,128,384], index: 5, kind: input, shape index: {}]   ;;  %s5057_s6 = inlined_call_operand.hbm [shape: f32[2,1,384], index: 6, kind: input, shape index: {}]   ;;  %s5058_s7 = inlined_call_operand.hbm [shape: bf16[2,128,128], index: 7, kind: input, shape index: {}]   ;;  %s5059_s8 = inlined_call_operand.vmem [shape: f32[2,1,128], index: 8, kind: input, shape index: {}]   ;;  %s5060_s9 = inlined_call_operand.vmem [shape: f32[2,1,128], index: 9, kind: input, shape index: {}]   ;;  %s5061_s10 = inlined_call_operand.hbm [shape: f32[2,1,128], index: 10, kind: input, shape index: {}]   ;;  %s5062_s11 = inlined_call_operand.hbm [shape: bf16[2,128,512], index: 11, kind: input, shape index: {}]   ;;  %s5063_s12 = inlined_call_operand.hbm [shape: f32[2,1,512], index: 12, kind: input, shape index: {}]   ;;  %s5064_s13 = inlined_call_operand.hbm [shape: bf16[2,512,128], index: 13, kind: input, shape index: {}]   ;;  %s5065_s14 = inlined_call_operand.vmem [shape: f32[2,1,128], index: 14, kind: input, shape index: {}]   ;;  %s5066_s15 = inlined_call_operand.hbm [shape: f32[1,128], index: 15, kind: input, shape index: {}]   ;;  %s5067_s16 = inlined_call_operand.hbm [shape: f32[1,128], index: 16, kind: input, shape index: {}]   ;;  %s5068_s17 = inlined_call_operand.hbm [shape: bf16[128,256], index: 17, kind: input, shape index: {}]   ;;  %s5069_s18 = inlined_call_operand.hbm [shape: f32[8,256], index: 18, kind: output, shape index: {}]  }
   0x1   :  { %5072 = sst [smem:[#allocation36_spill]] %s5051_s0 }
   0x2   :  { %5073 = sst [smem:[#allocation37_spill]] %s5052_s1 }
   0x3   :  { %5074 = sst [smem:[#allocation38_spill]] %s5053_s2 }
   0x4   :  { %23 = vsyncpa [#allocation6], 0 }
   0x5   :  { %24 = vsyncpa [#allocation4], 0 }
   0x6   :  { %25 = vsyncpa [#allocation9], 0 }
   0x7   :  { %26 = vsyncpa [#allocation12], 0 }
   0x8   :  { %27 = vsyncpa [#allocation15], 0 }
   0x9   :  { %28 = vsyncpa [#allocation18], 0 }
   0xa   :  { %29 = vsyncpa [#allocation21], 0 }
   0xb   :  { %30 = vsyncpa [#allocation24], 0 }
   0xc   :  { %31 = vsyncpa [#allocation5], 0  ;;  %s5075_s29 = sld [smem:[#allocation38_spill]]  ;;  %s4689_s0 = smov [#allocation8]  }
   0xd   :  { %s60_s19 = sshll.u32 %s4689_s0, 4  ;;  %s86_s21 = sshll.u32 %s5056_s5, 4  ;;  %s61_s19 = int_to_ptr.vmem [resolvable:$true] %s60_s19  ;;  %s87_s21 = int_to_ptr.hbm [resolvable:$true] %s86_s21 }
   0xe   :  { %s5070_s22 = smov 128   ;;  %s4691_s2 = smov 8  }
   0xf   :  { %s4692_s23 = smov [#allocation11]   ;;  %s4693_s25 = smov 192  }
  0x10   :  { %s88_s24 = sshll.u32 %s4692_s23, 4  ;;  %s4694_s26 = smov 12   ;;  %s89_s24 = int_to_ptr.vmem [resolvable:$true] %s88_s24 }
  0x11   :  { %94 = dma.hbm_to_vmem [thread:$0]  %s87_s21, 6144, %s89_s24, [#allocation12], %s4693_s25, %s4693_s25, %s4694_s26  }
  0x12   :  { %s58_s30 = sshll.u32 %s5075_s29, 4  ;;  %s112_s29 = sshll.u32 %s5058_s7, 4  ;;  %s59_s30 = int_to_ptr.hbm [resolvable:$true] %s58_s30  ;;  %s113_s29 = int_to_ptr.hbm [resolvable:$true] %s112_s29 }
  0x13   :  { %66 = dma.hbm_to_vmem [thread:$0]  %s59_s30, 4096, %s61_s19, [#allocation9], %s5070_s22, %s5070_s22, %s4691_s2  }
  0x14   :  { %s4695_s0 = smov [#allocation14]   ;;  %s4696_s1 = smov 64  }
  0x15   :  { %s114_s5 = sshll.u32 %s4695_s0, 4  ;;  %s4697_s20 = smov 4   ;;  %s115_s5 = int_to_ptr.vmem [resolvable:$true] %s114_s5 }
  0x16   :  { %120 = dma.hbm_to_vmem [thread:$0]  %s113_s29, 2048, %s115_s5, [#allocation15], %s4696_s1, %s4696_s1, %s4697_s20  }
  0x17   :  { %s142_s23 = sshll.u32 %s5062_s11, 4  ;;  %s4698_s21 = smov [#allocation17]   ;;  %s143_s23 = int_to_ptr.hbm [resolvable:$true] %s142_s23 }
  0x18   :  { %s144_s24 = sshll.u32 %s4698_s21, 4  ;;  %s4699_s25 = smov 256   ;;  %s145_s24 = int_to_ptr.vmem [resolvable:$true] %s144_s24 }
  0x19   :  { %s4700_s7 = smov 16   ;;  %s168_s28 = sshll.u32 %s5064_s13, 4  ;;  %s169_s28 = int_to_ptr.hbm [resolvable:$true] %s168_s28 }
  0x1a   :  { %150 = dma.hbm_to_vmem [thread:$0]  %s143_s23, 8192, %s145_s24, [#allocation18], %s4699_s25, %s4699_s25, %s4700_s7  }
  0x1b   :  { %s4701_s0 = smov [#allocation20]   ;;  %s195_s11 = sshll.u32 %s5067_s16, 4  ;;  %s196_s11 = int_to_ptr.hbm [resolvable:$true] %s195_s11 }
  0x1c   :  { %s170_s22 = sshll.u32 %s4701_s0, 4  ;;  %s4702_s30 = smov [#allocation23]   ;;  %s171_s22 = int_to_ptr.vmem [resolvable:$true] %s170_s22 }
  0x1d   :  { %176 = dma.hbm_to_vmem [thread:$0]  %s169_s28, 8192, %s171_s22, [#allocation21], %s4696_s1, %s4696_s1, %s4697_s20  }
  0x1e   :  { %s197_s19 = sshll.u32 %s4702_s30, 4  ;;  %s5076_s24 = sld [smem:[#allocation36_spill]]  ;;  %s198_s19 = int_to_ptr.vmem [resolvable:$true] %s197_s19 }
  0x1f   :  { %200 = dma.hbm_to_vmem [thread:$0]  %s196_s11, 16, %s198_s19, [#allocation24]  }
  0x20   :  { %s5077_s27 = sld [smem:[#allocation37_spill]]  ;;  %s4703_s29 = smov [#allocation3]  }
  0x21   :  { %s4704_s16 = smov [#allocation7]   ;;  %s73_s30 = sshll.u32 %s5055_s4, 4  ;;  %s74_s30 = int_to_ptr.hbm [resolvable:$true] %s73_s30 }
  0x22   :  { %s47_s5 = sshll.u32 %s4704_s16, 4  ;;  %s5078_s23 = smov 128   ;;  %s48_s5 = int_to_ptr.vmem [resolvable:$true] %s47_s5 }
  0x23   :  { %s4705_s11 = smov [#allocation10]   ;;  %s99_s13 = sshll.u32 %s5057_s6, 4  ;;  %s100_s13 = int_to_ptr.hbm [resolvable:$true] %s99_s13 }
  0x24   :  { %s37_s25 = sshll.u32 %s5076_s24, 4  ;;  %s75_s19 = sshll.u32 %s4705_s11, 4  ;;  %s38_s25 = int_to_ptr.vmem [resolvable:$true] %s37_s25  ;;  %s76_s19 = int_to_ptr.vmem [resolvable:$true] %s75_s19 }
  0x25   :  { %40 = dma.vmem_to_smem %s38_s25, 16, %s4703_s29, [#allocation6]  }
  0x26   :  { %s45_s0 = sshll.u32 %s5077_s27, 4  ;;  %s4706_s25 = smov 1   ;;  %s46_s0 = int_to_ptr.hbm [resolvable:$true] %s45_s0 }
  0x27   :  { %53 = dma.hbm_to_vmem [thread:$0]  %s46_s0, 512, %s48_s5, [#allocation4], %s5078_s23, %s5078_s23, %s4691_s2  }
  0x28   :  { %81 = dma.hbm_to_vmem [thread:$0]  %s74_s30, 32, %s76_s19, [#allocation9], %s4700_s7, %s4700_s7, %s4706_s25  }
  0x29   :  { %s4707_s26 = smov [#allocation13]   ;;  %s129_s16 = sshll.u32 %s5061_s10, 4  ;;  %s130_s16 = int_to_ptr.hbm [resolvable:$true] %s129_s16 }
  0x2a   :  { %s101_s4 = sshll.u32 %s4707_s26, 4  ;;  %s4708_s0 = smov 48   ;;  %s102_s4 = int_to_ptr.vmem [resolvable:$true] %s101_s4 }
  0x2b   :  { %s4709_s5 = smov 3   ;;  %s4710_s22 = smov [#allocation16]  }
  0x2c   :  { %107 = dma.hbm_to_vmem [thread:$0]  %s100_s13, 96, %s102_s4, [#allocation12], %s4708_s0, %s4708_s0, %s4709_s5  }
  0x2d   :  { %s131_s28 = sshll.u32 %s4710_s22, 4  ;;  %s155_s21 = sshll.u32 %s5063_s12, 4  ;;  %s132_s28 = int_to_ptr.vmem [resolvable:$true] %s131_s28  ;;  %s156_s21 = int_to_ptr.hbm [resolvable:$true] %s155_s21 }
  0x2e   :  { %137 = dma.hbm_to_vmem [thread:$0]  %s130_s16, 32, %s132_s28, [#allocation15], %s4700_s7, %s4700_s7, %s4706_s25  }
  0x2f   :  { %s184_s24 = sshll.u32 %s5066_s15, 4  ;;  %s4711_s10 = smov [#allocation19]   ;;  %s185_s24 = int_to_ptr.hbm [resolvable:$true] %s184_s24 }
  0x30   :  { %s157_s26 = sshll.u32 %s4711_s10, 4  ;;  %s4712_s13 = smov [#allocation22]   ;;  %s158_s26 = int_to_ptr.vmem [resolvable:$true] %s157_s26 }
  0x31   :  { %163 = dma.hbm_to_vmem [thread:$0]  %s156_s21, 128, %s158_s26, [#allocation18], %s4696_s1, %s4696_s1, %s4697_s20  }
  0x32   :  { %s186_s4 = sshll.u32 %s4712_s13, 4  ;;  %s205_s29 = sshll.u32 %s5068_s17, 4  ;;  %s187_s4 = int_to_ptr.vmem [resolvable:$true] %s186_s4  ;;  %s206_s29 = int_to_ptr.hbm [resolvable:$true] %s205_s29 }
  0x33   :  { %189 = dma.hbm_to_vmem [thread:$0]  %s185_s24, 16, %s187_s4, [#allocation21]  }
  0x34   :  { %s4713_s7 = smov [#allocation25]  }
  0x35   :  { %s207_s25 = sshll.u32 %s4713_s7, 4  ;;  %s208_s25 = int_to_ptr.vmem [resolvable:$true] %s207_s25 }
  0x36   :  { %213 = dma.hbm_to_vmem [thread:$0]  %s206_s29, 2048, %s208_s25, [#allocation24], %s5078_s23, %s5078_s23, %s4691_s2  }
  0x37   :  { %4671 = dma.done.wait [#allocation6], 16  }
  0x38   :  { %4672 = vsyncadd [#allocation6], 4294967280 }
  0x39   :  { %4673 = dma.done.wait [#allocation4], 512  }
  0x3a   :  { %4674 = vsyncadd [#allocation4], 4294966784 }
  0x3b   :  { %4675 = dma.done.wait [#allocation9], 4128  }
  0x3c   :  { %4676 = vsyncadd [#allocation9], 4294963168 }
  0x3d   :  { %4677 = dma.done.wait [#allocation12], 6240  }
  0x3e   :  { %4678 = vsyncadd [#allocation12], 4294961056 }
  0x3f   :  { %4679 = dma.done.wait [#allocation15], 2080  }
  0x40   :  { %4680 = vsyncadd [#allocation15], 4294965216 }
  0x41   :  { %4681 = dma.done.wait [#allocation18], 8320  }
  0x42   :  { %4682 = vsyncadd [#allocation18], 4294958976 }
  0x43   :  { %4683 = dma.done.wait [#allocation21], 8208  }
  0x44   :  { %4684 = vsyncadd [#allocation21], 4294959088 }
  0x45   :  { %4685 = dma.done.wait [#allocation24], 2064  }
  0x46   :  { %4686 = vsyncadd [#allocation24], 4294965232 }
  0x47   :  { %270 = sfence }
  0x48   :  { %s272_s15 = sld [smem:[#allocation3]]  ;;  %v305_v8 = vld [vmem:[#allocation7] sm:$0xff]  ;;  %v4714_v11 = vmov 128.0   ;;  %v3244_v12 = vld [vmem:[#allocation11 + $0xa8] sm:$0xf]  ;;  %vm841_vm4 = vcmask 1043456  }
  0x49   :  { %s3151_s17 = sld [smem:[#allocation3 + $0x1]]  ;;  %4263 = vrcp.f32 %v4714_v11  ;;  %v4032_v13 = vld [vmem:[#allocation11 + $0xb0] sm:$0xf0]  ;;  %v4031_v14 = vld [vmem:[#allocation11 + $0xac] sm:$0xf]  ;;  %s4715_s13 = smov 32  }
  0x4a   :  { %s3152_s2 = sld [smem:[#allocation3 + $0x2]]  ;;  %v3245_v15 = vor.u32 %v4032_v13, %v3244_v12  ;;  %v3246_v16 = vld [vmem:[#allocation11 + $0xb4] sm:$0xf0]  ;;  %v3252_v17 = vld [vmem:[#allocation11 + $0xb0] sm:$0xf]  ;;  %vm678_vm5 = vcmask 261120  }
  0x4b   :  { %s3153_s20 = sld [smem:[#allocation3 + $0x3]]  ;;  %v4033_v18 = vld [vmem:[#allocation11 + $0xb8] sm:$0xf0]  ;;  %v3249_v19 = vor.u32 %v4031_v14, %v3246_v16  ;;  %v3232_v31 = vld [vmem:[#allocation11 + $0x90] sm:$0xf]  ;;  %s4716_s4 = smov 96  }
  0x4c   :  { %s3154_s23 = sld [smem:[#allocation3 + $0x4]]  ;;  %v3253_v20 = vor.u32 %v4033_v18, %v3252_v17  ;;  %576 = vmatpush.bf16.msra.mxu0 %v3245_v15  ;;  %v4029_v32 = vld [vmem:[#allocation11 + $0x98] sm:$0xf0]  ;;  %v4028_v33 = vld [vmem:[#allocation11 + $0x94] sm:$0xf]  ;;  %vm792_vm8 = vcmask 64512  }
  0x4d   :  { %s3155_s16 = sld [smem:[#allocation3 + $0x5]]  ;;  %589 = vmatpush.bf16.msra.mxu1 %v3249_v19  ;;  %v3233_v34 = vor.u32 %v4029_v32, %v3232_v31  ;;  %v3234_v35 = vld [vmem:[#allocation11 + $0x9c] sm:$0xf0]  ;;  %v3240_v36 = vld [vmem:[#allocation11 + $0x98] sm:$0xf]  ;;  %vm940_vm11 = vcmask 523264  }
  0x4e   :  { %s3156_s0 = sld [smem:[#allocation3 + $0x6]]  ;;  %s273_s5 = scalar_lea.vmem [#allocation8], %s272_s15  ;;  %602 = vmatpush.bf16.msra.mxu2 %v3253_v20  ;;  %v4030_v37 = vld [vmem:[#allocation11 + $0xa0] sm:$0xf0]  ;;  %v3237_v38 = vor.u32 %v4028_v33, %v3234_v35  ;;  %v3220_v40 = vld [vmem:[#allocation11 + $0x78] sm:$0xf] }
  0x4f   :  { %v274_v0 = vld [vmem:[%s273_s5] sm:$0x1]  ;;  %s3157_s22 = sld [smem:[#allocation3 + $0x7]]  ;;  %s277_s28 = scalar_lea.vmem [#allocation8], %s3151_s17  ;;  %v4264_v21 = vpop.eup %4263  ;;  %v3241_v39 = vor.u32 %v4030_v37, %v3240_v36  ;;  %v4026_v41 = vld [vmem:[#allocation11 + $0x80] sm:$0xf0] }
  0x50   :  { %275 = vst [vmem:[#allocation2] sm:$0x1] %v274_v0  ;;  %v278_v1 = vld [vmem:[%s277_s28] sm:$0x1]  ;;  %s281_s6 = scalar_lea.vmem [#allocation8], %s3152_s2  ;;  %v375_v22 = vmul.f32 128.0, %v4264_v21  ;;  %vm379_vm0 = vweird.f32 %v4264_v21  ;;  %577 = vmatpush.bf16.msra.mxu0 %v3233_v34  ;;  %v3221_v43 = vor.u32 %v4026_v41, %v3220_v40 }
  0x51   :  { %279 = vst [vmem:[#allocation2 + $0x1] sm:$0x1] %v278_v1  ;;  %v282_v2 = vld [vmem:[%s281_s6] sm:$0x1]  ;;  %s285_s11 = scalar_lea.vmem [#allocation8], %s3153_s20  ;;  %590 = vmatpush.bf16.msra.mxu1 %v3237_v38  ;;  %vm942_vm12 = vcmask 785408  }
  0x52   :  { %283 = vst [vmem:[#allocation2 + $0x2] sm:$0x1] %v282_v2  ;;  %v286_v3 = vld [vmem:[%s285_s11] sm:$0x1]  ;;  %s289_s21 = scalar_lea.vmem [#allocation8], %s3154_s23  ;;  %v376_v23 = vsub.f32 1.0, %v375_v22  ;;  %603 = vmatpush.bf16.msra.mxu2 %v3241_v39 }
  0x53   :  { %287 = vst [vmem:[#allocation2 + $0x3] sm:$0x1] %v286_v3  ;;  %v290_v4 = vld [vmem:[%s289_s21] sm:$0x1]  ;;  %s293_s30 = scalar_lea.vmem [#allocation8], %s3155_s16 }
  0x54   :  { %291 = vst [vmem:[#allocation2 + $0x4] sm:$0x1] %v290_v4  ;;  %v294_v5 = vld [vmem:[%s293_s30] sm:$0x1]  ;;  %s297_s19 = scalar_lea.vmem [#allocation8], %s3156_s0  ;;  %v377_v24 = vmul.f32 %v4264_v21, %v376_v23  ;;  %578 = vmatpush.bf16.msra.mxu0 %v3221_v43 }
  0x55   :  { %295 = vst [vmem:[#allocation2 + $0x5] sm:$0x1] %v294_v5  ;;  %v298_v6 = vld [vmem:[%s297_s19] sm:$0x1]  ;;  %s301_s24 = scalar_lea.vmem [#allocation8], %s3157_s22  ;;  %s3126_s22 = sshll.u32 %s5069_s18, 4  ;;  %s3127_s22 = int_to_ptr.hbm [resolvable:$true] %s3126_s22 }
  0x56   :  { %299 = vst [vmem:[#allocation2 + $0x6] sm:$0x1] %v298_v6  ;;  %v302_v7 = vld [vmem:[%s301_s24] sm:$0x1]  ;;  %v378_v25 = vadd.f32 %v4264_v21, %v377_v24  ;;  %v4025_v42 = vld [vmem:[#allocation11 + $0x7c] sm:$0xf] }
  0x57   :  { %303 = vst [vmem:[#allocation2 + $0x7] sm:$0x1] %v302_v7  ;;  %v3222_v44 = vld [vmem:[#allocation11 + $0x84] sm:$0xf0]  ;;  %v3228_v45 = vld [vmem:[#allocation11 + $0x80] sm:$0xf] }
  0x58   :  { %v4882_v26 = vsel %vm379_vm0, %v4264_v21, %v378_v25  ;;  %v4027_v46 = vld [vmem:[#allocation11 + $0x88] sm:$0xf0]  ;;  %v3225_v47 = vor.u32 %v4025_v42, %v3222_v44  ;;  %v3208_v49 = vld [vmem:[#allocation11 + $0x60] sm:$0xf]  ;;  %v4022_v51 = vld [vmem:[#allocation11 + $0x64] sm:$0xf] }
  0x59   :  { %v3229_v48 = vor.u32 %v4027_v46, %v3228_v45  ;;  %v4023_v50 = vld [vmem:[#allocation11 + $0x68] sm:$0xf0]  ;;  %v3210_v53 = vld [vmem:[#allocation11 + $0x6c] sm:$0xf0]  ;;  %v3216_v54 = vld [vmem:[#allocation11 + $0x68] sm:$0xf] }
  0x5a   :  { %591 = vmatpush.bf16.msra.mxu1 %v3225_v47  ;;  %v3209_v52 = vor.u32 %v4023_v50, %v3208_v49  ;;  %v4024_v55 = vld [vmem:[#allocation11 + $0x70] sm:$0xf0]  ;;  %v3213_v56 = vor.u32 %v4022_v51, %v3210_v53  ;;  %v3196_v58 = vld [vmem:[#allocation11 + $0x48] sm:$0xf]  ;;  %v4019_v60 = vld [vmem:[#allocation11 + $0x4c] sm:$0xf] }
  0x5b   :  { %604 = vmatpush.bf16.msra.mxu2 %v3229_v48  ;;  %v3217_v57 = vor.u32 %v4024_v55, %v3216_v54  ;;  %v4020_v59 = vld [vmem:[#allocation11 + $0x50] sm:$0xf0]  ;;  %v3198_v62 = vld [vmem:[#allocation11 + $0x54] sm:$0xf0]  ;;  %v3204_v63 = vld [vmem:[#allocation11 + $0x50] sm:$0xf] }
  0x5c   :  { %579 = vmatpush.bf16.msra.mxu0 %v3209_v52  ;;  %v3197_v61 = vor.u32 %v4020_v59, %v3196_v58  ;;  %v4021_v0 = vld [vmem:[#allocation11 + $0x58] sm:$0xf0]  ;;  %v3201_v1 = vor.u32 %v4019_v60, %v3198_v62  ;;  %v3184_v3 = vld [vmem:[#allocation11 + $0x30] sm:$0xf]  ;;  %v4016_v5 = vld [vmem:[#allocation11 + $0x34] sm:$0xf] }
  0x5d   :  { %v3205_v2 = vor.u32 %v4021_v0, %v3204_v63  ;;  %v4017_v4 = vld [vmem:[#allocation11 + $0x38] sm:$0xf0]  ;;  %v3186_v7 = vld [vmem:[#allocation11 + $0x3c] sm:$0xf0]  ;;  %v3172_v13 = vld [vmem:[#allocation11 + $0x18] sm:$0xf] }
  0x5e   :  { %v304_v9 = vld [vmem:[#allocation2] sm:$0xff]  ;;  %592 = vmatpush.bf16.msra.mxu1 %v3213_v56  ;;  %v3185_v6 = vor.u32 %v4017_v4, %v3184_v3  ;;  %v3189_v11 = vor.u32 %v4016_v5, %v3186_v7  ;;  %v4014_v14 = vld [vmem:[#allocation11 + $0x20] sm:$0xf0]  ;;  %v3174_v17 = vld [vmem:[#allocation11 + $0x24] sm:$0xf0] }
  0x5f   :  { %v4879_v10 = vadd.f32 %v305_v8, %v304_v9  ;;  %605 = vmatpush.bf16.msra.mxu2 %v3217_v57  ;;  %v3192_v8 = vld [vmem:[#allocation11 + $0x38] sm:$0xf]  ;;  %v4018_v9 = vld [vmem:[#allocation11 + $0x40] sm:$0xf0]  ;;  %v4013_v15 = vld [vmem:[#allocation11 + $0x1c] sm:$0xf]  ;;  %v3173_v16 = vor.u32 %v4014_v14, %v3172_v13 }
  0x60   :  { %580 = vmatpush.bf16.msra.mxu0 %v3197_v61  ;;  %v3193_v12 = vor.u32 %v4018_v9, %v3192_v8  ;;  %v3180_v18 = vld [vmem:[#allocation11 + $0x20] sm:$0xf]  ;;  %v4015_v19 = vld [vmem:[#allocation11 + $0x28] sm:$0xf0]  ;;  %v3177_v20 = vor.u32 %v4013_v15, %v3174_v17  ;;  %v4010_v24 = vld [vmem:[#allocation11 + $0x4] sm:$0xf] }
  0x61   :  { %372 = vadd.xlane.f32.xlu0 %v4879_v10  ;;  %v3181_v21 = vor.u32 %v4015_v19, %v3180_v18  ;;  %v3160_v22 = vld [vmem:[#allocation11] sm:$0xf]  ;;  %v4011_v23 = vld [vmem:[#allocation11 + $0x8] sm:$0xf0]  ;;  %v4249_v42 = vld [vmem:[%s5054_s3] ss:$0 sm:$0xff] }
  0x62   :  { %593 = vmatpush.bf16.msra.mxu1 %v3201_v1  ;;  %v3161_v25 = vor.u32 %v4011_v23, %v3160_v22  ;;  %v4250_v45 = vld [vmem:[#allocation10] ss:$0 sm:$0xff]  ;;  %v440_v49 = vld [vmem:[#allocation13] sm:$0x7] }
  0x63   :  { %606 = vmatpush.bf16.msra.mxu2 %v3205_v2  ;;  %v442_v50 = vperm.slane %v440_v49, 0  ;;  %v443_v51 = vperm.slane %v440_v49, 1  ;;  %v444_v57 = vperm.slane %v440_v49, 2 }
  0x64   :  { %581 = vmatpush.bf16.msra.mxu0 %v3185_v6 }
  0x66   :  { %594 = vmatpush.bf16.msra.mxu1 %v3189_v11 }
  0x67   :  { %607 = vmatpush.bf16.msra.mxu2 %v3193_v12 }
  0x68   :  { %582 = vmatpush.bf16.msra.mxu0 %v3173_v16 }
  0x6a   :  { %595 = vmatpush.bf16.msra.mxu1 %v3177_v20 }
  0x6b   :  { %608 = vmatpush.bf16.msra.mxu2 %v3181_v21 }
  0x6c   :  { %583 = vmatpush.bf16.msra.mxu0 %v3161_v25 }
  0xd4   :  { %v373_v27 = vpop.xlane.xlu0 %372 }
  0xd5   :  { %v381_v28 = vmul.f32 %v4882_v26, %v373_v27  ;;  %v3162_v27 = vld [vmem:[#allocation11 + $0xc] sm:$0xf0] }
  0xd6   :  { %v3165_v31 = vor.u32 %v4010_v24, %v3162_v27 }
  0xd7   :  { %v4886_v29 = vsub.f32 %v4879_v10, %v381_v28  ;;  %v3168_v28 = vld [vmem:[#allocation11 + $0x8] sm:$0xf] }
  0xd8   :  { %596 = vmatpush.bf16.msra.mxu1 %v3165_v31 }
  0xd9   :  { %v383_v30 = vmul.f32 %v4886_v29, %v4886_v29 }
  0xdb   :  { %384 = vadd.xlane.f32.xlu0 %v383_v30  ;;  %v4012_v30 = vld [vmem:[#allocation11 + $0x10] sm:$0xf0] }
  0xdc   :  { %v3169_v32 = vor.u32 %v4012_v30, %v3168_v28 }
  0xde   :  { %609 = vmatpush.bf16.msra.mxu2 %v3169_v32 }
 0x14e   :  { %v385_v33 = vpop.xlane.xlu0 %384 }
 0x14f   :  { %v386_v34 = vmul.f32 %v385_v33, %v4882_v26 }
 0x151   :  { %v387_v35 = vadd.f32 1e-05, %v386_v34 }
 0x153   :  { %4265 = vrsqrt.f32 %v387_v35  ;;  %vm394_vm2 = vweird.f32 %v387_v35 }
 0x159   :  { %v4266_v36 = vpop.eup %4265 }
 0x15a   :  { %v389_v37 = vmul.f32 %v4266_v36, %v387_v35  ;;  %vm395_vm1 = vweird.f32 %v4266_v36 }
 0x15b   :  { %vm396_vm3 = vmor %vm394_vm2, %vm395_vm1 }
 0x15c   :  { %v390_v38 = vmul.f32 %v4266_v36, %v389_v37 }
 0x15e   :  { %v391_v39 = vmul.f32 0.5, %v390_v38 }
 0x160   :  { %v392_v40 = vsub.f32 1.5, %v391_v39 }
 0x162   :  { %v393_v41 = vmul.f32 %v4266_v36, %v392_v40 }
 0x164   :  { %v397_v43 = vsel %vm396_vm3, %v4266_v36, %v393_v41 }
 0x165   :  { %v398_v44 = vmul.f32 %v397_v43, %v4886_v29 }
 0x167   :  { %v402_v46 = vmul.f32 %v4249_v42, %v398_v44 }
 0x169   :  { %v406_v47 = vadd.f32 %v4250_v45, %v402_v46 }
 0x16b   :  { %v407_v48 = vpack.c.bf16 %v406_v47, %v406_v47 }
 0x16d   :  { %584 = vmatmul.bf16.vlgmr.msra.gmra.mxu0 %v407_v48  ;;  %597 = vmatmul.bf16.vlgmr.msra.gmra.mxu1 %v407_v48 }
 0x16e   :  { %610 = vmatmul.bf16.vlgmr.msra.gmra.mxu2 %v407_v48 }
 0x1ea   :  { %v585_v52 = vpop.f32.mrf.mxu0  ;;  %v598_v53 = vpop.f32.mrf.mxu1 }
 0x1eb   :  { %v586_v54 = vadd.f32 %v585_v52, %v442_v50  ;;  %v599_v55 = vadd.f32 %v598_v53, %v443_v51 }
 0x1ed   :  { %v615_v56 = vmul.f32 0.17677669, %v586_v54  ;;  %617 = vxpose.xlu1.b32.start.end [1/1] (short) %v599_v55, 128 }
 0x1ef   :  { %v616_v58 = vpack.c.bf16 %v615_v56, %v615_v56 }
 0x1f1   :  { %v696_v59 = vunpack.c.l.b16 %v616_v58  ;;  %v611_v29 = vpop.f32.mrf.mxu2 }
 0x1f2   :  { %v612_v60 = vadd.f32 %v611_v29, %v444_v57  ;;  %v587_v61 = vpop.f32.mrf.mxu0  ;;  %v600_v62 = vpop.f32.mrf.mxu1 }
 0x1f3   :  { %v697_v63 = vpack.c.b16 %v696_v59, %v696_v59 }
 0x1f4   :  { %v4895_v0 = vpack.c.bf16 %v612_v60, %v612_v60 }
 0x1f5   :  { %728 = vrot.lane.b32.xlu2 %v697_v63, %s4696_s1 }
 0x1f6   :  { %v843_v1 = vsel %vm841_vm4, %v4895_v0, 0 }
 0x1f7   :  { %852 = vmatpush.bf16.msrb.mxu1 %v843_v1 }
 0x1f9   :  { %v613_v2 = vpop.f32.mrf.mxu2 }
 0x1fd   :  { %758 = vrot.lane.b32.xlu2 %v697_v63, %s4715_s13 }
 0x24f   :  { %v729_v57 = vpop.permute.xlu2 %728 }
 0x257   :  { %v759_v62 = vpop.permute.xlu2 %758 }
 0x291   :  { %v633_v3 = vpop.trf.xlu1 }
 0x292   :  { %v649_v7 = vpack.c.bf16 %v633_v3, %v633_v3 }
 0x294   :  { %v670_v13 = vunpack.c.l.b16 %v649_v7 }
 0x299   :  { %v634_v4 = vpop.trf.xlu1 }
 0x29a   :  { %v650_v8 = vpack.c.bf16 %v634_v4, %v634_v4 }
 0x29c   :  { %v671_v14 = vunpack.c.l.b16 %v650_v8 }
 0x29e   :  { %v674_v17 = vpack.c.b16 %v671_v14, %v670_v13 }
 0x2a1   :  { %v635_v5 = vpop.trf.xlu1 }
 0x2a2   :  { %v651_v6 = vpack.c.bf16 %v635_v5, %v635_v5  ;;  %v307_v5 = vlaneseq }
 0x2a4   :  { %v672_v11 = vunpack.c.l.b16 %v651_v6  ;;  %v308_v6 = vshrl.u32 %v307_v5, 7 }
 0x2a6   :  { %v309_v7 = vadd.s32 8, %v308_v6 }
 0x2a8   :  { %v325_v8 = vand.u32 7, %v309_v7 }
 0x2a9   :  { %v636_v9 = vpop.trf.xlu1 }
 0x2aa   :  { %v652_v12 = vpack.c.bf16 %v636_v9, %v636_v9  ;;  %v313_v9 = vand.u32 127, %v307_v5 }
 0x2ac   :  { %v673_v15 = vunpack.c.l.b16 %v652_v12  ;;  %vm363_vm6 = vcmp.le.s32.totalorder %v313_v9, %v325_v8  ;;  %v4717_v12 = vmov -1e+30  }
 0x2ad   :  { %v4906_v13 = vsel %vm363_vm6, 0.0, %v4717_v12 }
 0x2ae   :  { %v675_v16 = vpack.c.b16 %v673_v15, %v672_v11  ;;  %v318_v11 = vand.u32 7, %v308_v6  ;;  %v311_v15 = vadd.s32 24, %v308_v6 }
 0x2b0   :  { %688 = vmatpush.bf16.msrb.mxu0 %v675_v16  ;;  %vm362_vm7 = vcmp.le.s32.totalorder %v313_v9, %v318_v11 }
 0x2b1   :  { %v637_v18 = vpop.trf.xlu1 }
 0x2b2   :  { %v653_v22 = vpack.c.bf16 %v637_v18, %v637_v18  ;;  %v310_v18 = vadd.s32 16, %v308_v6 }
 0x2b4   :  { %689 = vmatpush.bf16.msrb.mxu0 %v674_v17  ;;  %v704_v28 = vunpack.c.l.b16 %v653_v22  ;;  %v332_v22 = vand.u32 7, %v310_v18 }
 0x2b6   :  { %vm364_vm10 = vcmp.le.s32.totalorder %v313_v9, %v332_v22 }
 0x2b7   :  { %3254 = vmatmul.msk.bf16.vlgmr.msrb.gmra.mxu0 %vm678_vm5, %v616_v58 }
 0x2b9   :  { %v638_v19 = vpop.trf.xlu1 }
 0x2ba   :  { %v654_v23 = vpack.c.bf16 %v638_v19, %v638_v19  ;;  %v4910_v19 = vsel %vm362_vm7, 0.0, %v4717_v12 }
 0x2bc   :  { %v705_v30 = vunpack.c.l.b16 %v654_v23 }
 0x2be   :  { %v708_v33 = vpack.c.b16 %v705_v30, %v704_v28 }
 0x2bf   :  { %698 = vrot.lane.b32.xlu1 %v697_v63, %s4716_s4 }
 0x2c1   :  { %v639_v20 = vpop.trf.xlu1 }
 0x2c2   :  { %v655_v21 = vpack.c.bf16 %v639_v20, %v639_v20  ;;  %v339_v20 = vand.u32 7, %v311_v15 }
 0x2c4   :  { %v706_v25 = vunpack.c.l.b16 %v655_v21  ;;  %vm365_vm9 = vcmp.le.s32.totalorder %v313_v9, %v339_v20 }
 0x2c9   :  { %v640_v24 = vpop.trf.xlu1 }
 0x2ca   :  { %v656_v27 = vpack.c.bf16 %v640_v24, %v640_v24 }
 0x2cc   :  { %v707_v31 = vunpack.c.l.b16 %v656_v27  ;;  %v4916_v27 = vsel %vm364_vm10, 0.0, %v4717_v12 }
 0x2ce   :  { %v709_v32 = vpack.c.b16 %v707_v31, %v706_v25  ;;  %v4914_v25 = vsel %vm365_vm9, 0.0, %v4717_v12 }
 0x2d0   :  { %721 = vmatpush.bf16.msra.mxu3 %v709_v32 }
 0x2d1   :  { %v641_v34 = vpop.trf.xlu1 }
 0x2d2   :  { %v657_v38 = vpack.c.bf16 %v641_v34, %v641_v34 }
 0x2d4   :  { %722 = vmatpush.bf16.msra.mxu3 %v708_v33  ;;  %v734_v43 = vunpack.c.l.b16 %v657_v38 }
 0x2d9   :  { %v642_v35 = vpop.trf.xlu1 }
 0x2da   :  { %v658_v39 = vpack.c.bf16 %v642_v35, %v642_v35  ;;  %v860_v35 = vunpack.c.l.b16 %v4895_v0 }
 0x2dc   :  { %v735_v44 = vunpack.c.l.b16 %v658_v39 }
 0x2de   :  { %v738_v47 = vpack.c.b16 %v735_v44, %v734_v43 }
 0x2e1   :  { %v643_v36 = vpop.trf.xlu1 }
 0x2e2   :  { %v659_v37 = vpack.c.bf16 %v643_v36, %v643_v36  ;;  %v861_v36 = vpack.c.b16 %v860_v35, %v860_v35  ;;  %v4035_v35 = vld [vmem:[#allocation14 + $0x8] sm:$0xff] }
 0x2e4   :  { %v736_v41 = vunpack.c.l.b16 %v659_v37 }
 0x2e9   :  { %v644_v40 = vpop.trf.xlu1 }
 0x2ea   :  { %v660_v42 = vpack.c.bf16 %v644_v40, %v644_v40 }
 0x2ec   :  { %v737_v45 = vunpack.c.l.b16 %v660_v42 }
 0x2ee   :  { %v739_v46 = vpack.c.b16 %v737_v45, %v736_v41 }
 0x2f0   :  { %751 = vmatpush.bf16.msrb.mxu3 %v739_v46 }
 0x2f1   :  { %v645_v48 = vpop.trf.xlu1 }
 0x2f2   :  { %v661_v52 = vpack.c.bf16 %v645_v48, %v645_v48 }
 0x2f4   :  { %752 = vmatpush.bf16.msrb.mxu3 %v738_v47  ;;  %v764_v58 = vunpack.c.l.b16 %v661_v52 }
 0x2f9   :  { %v646_v49 = vpop.trf.xlu1 }
 0x2fa   :  { %v662_v53 = vpack.c.bf16 %v646_v49, %v646_v49 }
 0x2fc   :  { %v765_v59 = vunpack.c.l.b16 %v662_v53 }
 0x2fe   :  { %v768_v61 = vpack.c.b16 %v765_v59, %v764_v58 }
 0x301   :  { %v647_v50 = vpop.trf.xlu1 }
 0x302   :  { %v663_v51 = vpack.c.bf16 %v647_v50, %v647_v50 }
 0x304   :  { %v766_v55 = vunpack.c.l.b16 %v663_v51 }
 0x309   :  { %v648_v54 = vpop.trf.xlu1 }
 0x30a   :  { %v664_v56 = vpack.c.bf16 %v648_v54, %v648_v54 }
 0x30c   :  { %v767_v29 = vunpack.c.l.b16 %v664_v56 }
 0x30e   :  { %v769_v60 = vpack.c.b16 %v767_v29, %v766_v55 }
 0x310   :  { %781 = vmatpush.bf16.msra.mxu0 %v769_v60 }
 0x314   :  { %782 = vmatpush.bf16.msra.mxu0 %v768_v61 }
 0x317   :  { %3257 = vmatmul.msk.bf16.vlgmr.msra.gmra.mxu0 %vm678_vm5, %v759_v62 }
 0x331   :  { %v699_v63 = vpop.permute.xlu1 %698 }
 0x332   :  { %3255 = vmatmul.msk.bf16.vlgmr.msra.gmra.mxu3 %vm678_vm5, %v699_v63 }
 0x334   :  { %v691_v1 = vpop.f32.mrf.mxu0 }
 0x335   :  { %v788_v21 = vadd.f32 %v691_v1, %v4910_v19 }
 0x337   :  { %v793_v24 = vsel %vm792_vm8, %v788_v21, -inf }
 0x33c   :  { %v693_v2 = vpop.f32.mrf.mxu0 }
 0x342   :  { %3256 = vmatmul.msk.bf16.vlgmr.msrb.gmra.mxu3 %vm678_vm5, %v729_v57 }
 0x394   :  { %v784_v3 = vpop.f32.mrf.mxu0 }
 0x395   :  { %v791_v28 = vadd.f32 %v784_v3, %v4914_v25 }
 0x397   :  { %v802_v33 = vsel %vm792_vm8, %v791_v28, -inf }
 0x39c   :  { %v786_v4 = vpop.f32.mrf.mxu0 }
 0x3b5   :  { %v724_v14 = vpop.f32.mrf.mxu3 }
 0x3b6   :  { %v789_v16 = vadd.f32 %v724_v14, %v4906_v13 }
 0x3b8   :  { %v796_v17 = vsel %vm792_vm8, %v789_v16, -inf }
 0x3b9   :  { %797 = vmax.xlane.f32.xlu0 %v796_v17 }
 0x3bd   :  { %v726_v23 = vpop.f32.mrf.mxu3 }
 0x3be   :  { %v4041_v23 = vld [vmem:[#allocation14 + $0x38] sm:$0xff] }
 0x3bf   :  { %1014 = vmatpush.bf16.msra.mxu1 %v4041_v23  ;;  %v4063_v23 = vld [vmem:[#allocation17 + $0xac] sm:$0xf] }
 0x3c1   :  { %794 = vmax.xlane.f32.xlu0 %v793_v24  ;;  %v4040_v24 = vld [vmem:[#allocation14 + $0x30] sm:$0xff] }
 0x3c3   :  { %1015 = vmatpush.bf16.msra.mxu1 %v4040_v24  ;;  %v3386_v24 = vld [vmem:[#allocation17 + $0xb8] sm:$0xf0] }
 0x3c5   :  { %v754_v30 = vpop.f32.mrf.mxu3 }
 0x3c6   :  { %v790_v31 = vadd.f32 %v754_v30, %v4916_v27  ;;  %v4038_v30 = vld [vmem:[#allocation14 + $0x20] sm:$0xff] }
 0x3c8   :  { %v799_v32 = vsel %vm792_vm8, %v790_v31, -inf }
 0x3c9   :  { %800 = vmax.xlane.f32.xlu2 %v799_v32  ;;  %803 = vmax.xlane.f32.xlu0 %v802_v33 }
 0x3cd   :  { %v756_v34 = vpop.f32.mrf.mxu3 }
 0x3ce   :  { %v4036_v34 = vld [vmem:[#allocation14 + $0x10] sm:$0xff] }
 0x3e1   :  { %862 = vrot.lane.b32.xlu2 %v861_v36, %s4716_s4 }
 0x3e9   :  { %906 = vrot.lane.b32.xlu2 %v861_v36, %s4715_s13 }
 0x42c   :  { %v798_v37 = vpop.xlane.xlu0 %797 }
 0x42d   :  { %v806_v38 = vsub.f32 %v789_v16, %v798_v37 }
 0x42f   :  { %v811_v39 = vmul.f32 1.442695, %v806_v38 }
 0x431   :  { %4267 = vpow2.f32 %v811_v39 }
 0x434   :  { %v795_v40 = vpop.xlane.xlu0 %794 }
 0x435   :  { %v805_v56 = vsub.f32 %v788_v21, %v795_v40 }
 0x437   :  { %v4268_v41 = vpop.eup %4267  ;;  %v809_v57 = vmul.f32 1.442695, %v805_v56 }
 0x438   :  { %v820_v42 = vsel %vm792_vm8, %v4268_v41, 0.0 }
 0x439   :  { %821 = vadd.xlane.f32.xlu0 %v820_v42 }
 0x43c   :  { %v801_v43 = vpop.xlane.xlu2 %800  ;;  %v804_v44 = vpop.xlane.xlu0 %803 }
 0x43d   :  { %v807_v45 = vsub.f32 %v790_v31, %v801_v43  ;;  %v808_v47 = vsub.f32 %v791_v28, %v804_v44  ;;  %v4039_v28 = vld [vmem:[#allocation14 + $0x28] sm:$0xff]  ;;  %v4037_v31 = vld [vmem:[#allocation14 + $0x18] sm:$0xff]  ;;  %v4251_v44 = vld [vmem:[%s5059_s8] ss:$0 sm:$0xff] }
 0x43e   :  { %1016 = vmatpush.bf16.msra.mxu1 %v4039_v28  ;;  %v3389_v28 = vor.u32 %v4063_v23, %v3386_v24  ;;  %v3304_v23 = vld [vmem:[#allocation17 + $0x8] sm:$0xf]  ;;  %v4045_v24 = vld [vmem:[#allocation17 + $0x14] sm:$0xf0] }
 0x43f   :  { %v813_v46 = vmul.f32 1.442695, %v807_v45  ;;  %v815_v0 = vmul.f32 1.442695, %v808_v47  ;;  %v948_v45 = vadd.f32 %v4251_v44, %v4879_v10  ;;  %v4054_v44 = vld [vmem:[#allocation17 + $0x64] sm:$0xf] }
 0x441   :  { %4269 = vpow2.f32 %v813_v46 }
 0x442   :  { %4271 = vpow2.f32 %v815_v0  ;;  %1017 = vmatpush.bf16.msra.mxu1 %v4038_v30  ;;  %v3360_v30 = vld [vmem:[#allocation17 + $0x80] sm:$0xf] }
 0x443   :  { %4273 = vpow2.f32 %v809_v57  ;;  %v4071_v57 = vld [vmem:[#allocation17 + $0xec] sm:$0xf] }
 0x444   :  { %v863_v48 = vpop.permute.xlu2 %862 }
 0x445   :  { %v868_v49 = vsel %vm841_vm4, %v863_v48, 0  ;;  %v3408_v48 = vld [vmem:[#allocation17 + $0xe0] sm:$0xf] }
 0x446   :  { %877 = vmatpush.bf16.msrb.mxu2 %v868_v49  ;;  %1018 = vmatpush.bf16.msra.mxu1 %v4037_v31  ;;  %v4072_v49 = vld [vmem:[#allocation17 + $0xec] sm:$0xf0] }
 0x447   :  { %v4270_v50 = vpop.eup %4269  ;;  %v4060_v31 = vld [vmem:[#allocation17 + $0x8c] sm:$0xf0] }
 0x448   :  { %v823_v51 = vsel %vm792_vm8, %v4270_v50, 0.0  ;;  %v4272_v53 = vpop.eup %4271 }
 0x449   :  { %824 = vadd.xlane.f32.xlu0 %v823_v51  ;;  %v826_v55 = vsel %vm792_vm8, %v4272_v53, 0.0  ;;  %v4274_v58 = vpop.eup %4273  ;;  %v3409_v51 = vor.u32 %v4072_v49, %v3408_v48  ;;  %v4057_v48 = vld [vmem:[#allocation17 + $0x74] sm:$0xf0] }
 0x44a   :  { %v817_v59 = vsel %vm792_vm8, %v4274_v58, 0.0  ;;  %1019 = vmatpush.bf16.msra.mxu1 %v4036_v34  ;;  %v3362_v34 = vld [vmem:[#allocation17 + $0x90] sm:$0xf0] }
 0x44b   :  { %1261 = vmatpush.bf16.msra.mxu2 %v3409_v51  ;;  %v4055_v51 = vld [vmem:[#allocation17 + $0x6c] sm:$0xf] }
 0x44c   :  { %v907_v52 = vpop.permute.xlu2 %906 }
 0x44d   :  { %v912_v54 = vsel %vm841_vm4, %v907_v52, 0  ;;  %v3410_v52 = vld [vmem:[#allocation17 + $0xf0] sm:$0xf0] }
 0x44e   :  { %921 = vmatpush.bf16.msrb.mxu0 %v912_v54  ;;  %1020 = vmatpush.bf16.msra.mxu1 %v4035_v35  ;;  %v4073_v54 = vld [vmem:[#allocation17 + $0xf4] sm:$0xf0]  ;;  %v3368_v35 = vld [vmem:[#allocation17 + $0x88] sm:$0xf] }
 0x451   :  { %827 = vadd.xlane.f32.xlu0 %v826_v55 }
 0x465   :  { %884 = vrot.lane.b32.xlu0 %v861_v36, %s4696_s1  ;;  %v4034_v36 = vld [vmem:[#allocation14] sm:$0xff] }
 0x466   :  { %1021 = vmatpush.bf16.msra.mxu1 %v4034_v36  ;;  %v4061_v36 = vld [vmem:[#allocation17 + $0x94] sm:$0xf0] }
 0x48f   :  { %818 = vadd.xlane.f32.xlu0 %v817_v59 }
 0x4ac   :  { %v822_v29 = vpop.xlane.xlu0 %821 }
 0x4ad   :  { %4275 = vrcp.f32 %v822_v29 }
 0x4b3   :  { %v4276_v60 = vpop.eup %4275 }
 0x4b4   :  { %v834_v61 = vmul.f32 %v4276_v60, %v4268_v41 }
 0x4b6   :  { %v858_v62 = vpack.c.bf16 %v834_v61, %v834_v61 }
 0x4b8   :  { %3259 = vmatmul.msk.bf16.vlgmr.msrb.gmra.mxu2 %vm792_vm8, %v858_v62  ;;  %v3392_v62 = vld [vmem:[#allocation17 + $0xc0] sm:$0xf] }
 0x4bc   :  { %v825_v63 = vpop.xlane.xlu0 %824 }
 0x4c4   :  { %v828_v1 = vpop.xlane.xlu0 %827 }
 0x4c5   :  { %4277 = vrcp.f32 %v828_v1  ;;  %v4066_v1 = vld [vmem:[#allocation17 + $0xc4] sm:$0xf] }
 0x4c6   :  { %4279 = vrcp.f32 %v825_v63  ;;  %v4068_v63 = vld [vmem:[#allocation17 + $0xcc] sm:$0xf0] }
 0x4cb   :  { %v4278_v2 = vpop.eup %4277 }
 0x4cc   :  { %v836_v3 = vmul.f32 %v4278_v2, %v4272_v53  ;;  %v4280_v5 = vpop.eup %4279  ;;  %v3416_v53 = vld [vmem:[#allocation17 + $0xe8] sm:$0xf]  ;;  %v3393_v2 = vor.u32 %v4068_v63, %v3392_v62  ;;  %v4051_v62 = vld [vmem:[#allocation17 + $0x4c] sm:$0xf]  ;;  %v3338_v63 = vld [vmem:[#allocation17 + $0x58] sm:$0xf0] }
 0x4cd   :  { %v835_v6 = vmul.f32 %v4280_v5, %v4270_v50  ;;  %v4070_v50 = vld [vmem:[#allocation17 + $0xe4] sm:$0xf]  ;;  %v3417_v56 = vor.u32 %v4073_v54, %v3416_v53  ;;  %v4069_v5 = vld [vmem:[#allocation17 + $0xd4] sm:$0xf0]  ;;  %v3328_v54 = vld [vmem:[#allocation17 + $0x40] sm:$0xf] }
 0x4ce   :  { %v905_v4 = vpack.c.bf16 %v836_v3, %v836_v3  ;;  %v3413_v55 = vor.u32 %v4070_v50, %v3410_v52  ;;  %v3394_v3 = vld [vmem:[#allocation17 + $0xd0] sm:$0xf0]  ;;  %1262 = vmatpush.bf16.msra.mxu2 %v3393_v2  ;;  %v3354_v52 = vld [vmem:[#allocation17 + $0x78] sm:$0xf0]  ;;  %v3312_v2 = vld [vmem:[#allocation17 + $0x20] sm:$0xf] }
 0x4cf   :  { %v883_v9 = vpack.c.bf16 %v835_v6, %v835_v6  ;;  %1287 = vmatpush.bf16.msra.mxu0 %v3417_v56  ;;  %v3397_v6 = vor.u32 %v4066_v1, %v3394_v3  ;;  %v3357_v53 = vor.u32 %v4055_v51, %v3354_v52  ;;  %v4050_v56 = vld [vmem:[#allocation17 + $0x44] sm:$0xf]  ;;  %v3341_v1 = vor.u32 %v4051_v62, %v3338_v63  ;;  %v4048_v3 = vld [vmem:[#allocation17 + $0x2c] sm:$0xf0]  ;;  %v4078_v63 = vld [vmem:[#allocation20 + $0x20] sm:$0xff] }
 0x4d0   :  { %3261 = vmatmul.msk.bf16.vlgmr.msrb.gmra.mxu0 %vm792_vm8, %v905_v4  ;;  %v3400_v4 = vld [vmem:[#allocation17 + $0xc8] sm:$0xf]  ;;  %v4101_v62 = vld [vmem:[#allocation20 + $0xd8] sm:$0xff] }
 0x4d7   :  { %v885_v7 = vpop.permute.xlu0 %884 }
 0x4d8   :  { %v890_v8 = vsel %vm841_vm4, %v885_v7, 0  ;;  %v3401_v7 = vor.u32 %v4069_v5, %v3400_v4  ;;  %v4046_v4 = vld [vmem:[#allocation17 + $0x24] sm:$0xf]  ;;  %v3313_v5 = vor.u32 %v4048_v3, %v3312_v2  ;;  %v4092_v2 = vld [vmem:[#allocation20 + $0x90] sm:$0xff] }
 0x4d9   :  { %899 = vmatpush.bf16.msra.mxu3 %v890_v8  ;;  %v4067_v8 = vld [vmem:[#allocation17 + $0xcc] sm:$0xf]  ;;  %v4100_v3 = vld [vmem:[#allocation20 + $0xd0] sm:$0xff] }
 0x4da   :  { %1288 = vmatpush.bf16.msra.mxu0 %v3401_v7  ;;  %v3320_v7 = vld [vmem:[#allocation17 + $0x28] sm:$0xf] }
 0x4dc   :  { %3260 = vmatmul.msk.bf16.vlgmr.msra.gmra.mxu3 %vm792_vm8, %v883_v9  ;;  %v3402_v9 = vld [vmem:[#allocation17 + $0xd8] sm:$0xf0] }
 0x4dd   :  { %1274 = vmatpush.bf16.msrb.mxu3 %v3413_v55  ;;  %v4052_v55 = vld [vmem:[#allocation17 + $0x4c] sm:$0xf0] }
 0x4e1   :  { %1275 = vmatpush.bf16.msrb.mxu3 %v3397_v6  ;;  %v3314_v6 = vld [vmem:[#allocation17 + $0x30] sm:$0xf0] }
 0x502   :  { %v819_v11 = vpop.xlane.xlu0 %818 }
 0x503   :  { %4281 = vrcp.f32 %v819_v11  ;;  %v3405_v11 = vor.u32 %v4067_v8, %v3402_v9  ;;  %v4049_v8 = vld [vmem:[#allocation17 + $0x34] sm:$0xf0]  ;;  %v3317_v9 = vor.u32 %v4046_v4, %v3314_v6  ;;  %v4077_v4 = vld [vmem:[#allocation20 + $0x18] sm:$0xff]  ;;  %v4091_v6 = vld [vmem:[#allocation20 + $0x88] sm:$0xff] }
 0x509   :  { %v4282_v12 = vpop.eup %4281 }
 0x50a   :  { %v833_v14 = vmul.f32 %v4282_v12, %v4274_v58  ;;  %v3418_v58 = vld [vmem:[#allocation17 + $0xf8] sm:$0xf0]  ;;  %v3376_v12 = vld [vmem:[#allocation17 + $0xa0] sm:$0xf] }
 0x50b   :  { %v3421_v59 = vor.u32 %v4071_v57, %v3418_v58  ;;  %v3329_v57 = vor.u32 %v4052_v55, %v3328_v54  ;;  %v3330_v58 = vld [vmem:[#allocation17 + $0x50] sm:$0xf0]  ;;  %v4089_v54 = vld [vmem:[#allocation20 + $0x78] sm:$0xff] }
 0x50c   :  { %v837_v15 = vpack.c.bf16 %v833_v14, %v833_v14  ;;  %v4064_v14 = vld [vmem:[#allocation17 + $0xac] sm:$0xf0] }
 0x50d   :  { %v4095_v55 = vld [vmem:[#allocation20 + $0xa8] sm:$0xff] }
 0x50e   :  { %3258 = vmatmul.msk.bf16.vlgmr.msrb.gmra.mxu1 %vm792_vm8, %v837_v15  ;;  %v4062_v15 = vld [vmem:[#allocation17 + $0xa4] sm:$0xf] }
 0x50f   :  { %1300 = vmatpush.bf16.msrb.mxu1 %v3421_v59  ;;  %v3336_v59 = vld [vmem:[#allocation17 + $0x48] sm:$0xf] }
 0x513   :  { %1301 = vmatpush.bf16.msrb.mxu1 %v3405_v11  ;;  %v3321_v11 = vor.u32 %v4049_v8, %v3320_v7  ;;  %v4099_v7 = vld [vmem:[#allocation20 + $0xc8] sm:$0xff]  ;;  %v4076_v8 = vld [vmem:[#allocation20 + $0x10] sm:$0xff] }
 0x517   :  { %1302 = vmatpush.bf16.msrb.mxu1 %v3389_v28  ;;  %v4043_v28 = vld [vmem:[#allocation17 + $0xc] sm:$0xf] }
 0x53b   :  { %v879_v16 = vpop.f32.mrf.mxu2 }
 0x53c   :  { %928 = vrot.lane.b32.xlu2 %v879_v16, %s4715_s13  ;;  %v3377_v16 = vor.u32 %v4064_v14, %v3376_v12  ;;  %v4047_v12 = vld [vmem:[#allocation17 + $0x2c] sm:$0xf]  ;;  %v3322_v14 = vld [vmem:[#allocation17 + $0x38] sm:$0xf0] }
 0x53e   :  { %1263 = vmatpush.bf16.msra.mxu2 %v3377_v16  ;;  %v3325_v16 = vor.u32 %v4047_v12, %v3322_v14  ;;  %v4098_v12 = vld [vmem:[#allocation20 + $0xc0] sm:$0xff]  ;;  %v4075_v14 = vld [vmem:[#allocation20 + $0x8] sm:$0xff] }
 0x543   :  { %v881_v17 = vpop.f32.mrf.mxu2 }
 0x544   :  { %v3378_v17 = vld [vmem:[#allocation17 + $0xb0] sm:$0xf0] }
 0x54d   :  { %v923_v18 = vpop.f32.mrf.mxu0 }
 0x555   :  { %v925_v20 = vpop.f32.mrf.mxu0 }
 0x556   :  { %v4065_v20 = vld [vmem:[#allocation17 + $0xb4] sm:$0xf0] }
 0x55f   :  { %v901_v21 = vpop.f32.mrf.mxu3 }
 0x560   :  { %932 = vrot.lane.b32.xlu2 %v901_v21, %s4696_s1  ;;  %v3381_v21 = vor.u32 %v4062_v15, %v3378_v17  ;;  %v3296_v15 = vld [vmem:[#allocation17] sm:$0xf]  ;;  %v4044_v17 = vld [vmem:[#allocation17 + $0xc] sm:$0xf0] }
 0x562   :  { %1276 = vmatpush.bf16.msrb.mxu3 %v3381_v21  ;;  %v3297_v21 = vor.u32 %v4044_v17, %v3296_v15  ;;  %v4083_v15 = vld [vmem:[#allocation20 + $0x48] sm:$0xff]  ;;  %v4074_v17 = vld [vmem:[#allocation20] sm:$0xff] }
 0x567   :  { %v903_v22 = vpop.f32.mrf.mxu3 }
 0x568   :  { %936 = vrot.lane.b32.xlu2 %v923_v18, %s4716_s4  ;;  %v3384_v18 = vld [vmem:[#allocation17 + $0xa8] sm:$0xf] }
 0x569   :  { %v3385_v22 = vor.u32 %v4065_v20, %v3384_v18  ;;  %v4042_v18 = vld [vmem:[#allocation17 + $0x4] sm:$0xf]  ;;  %v3298_v20 = vld [vmem:[#allocation17 + $0x10] sm:$0xf0] }
 0x56b   :  { %1289 = vmatpush.bf16.msra.mxu0 %v3385_v22  ;;  %v3301_v22 = vor.u32 %v4042_v18, %v3298_v20  ;;  %v4082_v18 = vld [vmem:[#allocation20 + $0x40] sm:$0xff] }
 0x58b   :  { %v854_v32 = vpop.f32.mrf.mxu1 }
 0x593   :  { %v856_v33 = vpop.f32.mrf.mxu1 }
 0x594   :  { %v3361_v33 = vor.u32 %v4060_v31, %v3360_v30  ;;  %v3305_v30 = vor.u32 %v4045_v24, %v3304_v23  ;;  %v3306_v31 = vld [vmem:[#allocation17 + $0x18] sm:$0xf0] }
 0x596   :  { %v929_v37 = vpop.permute.xlu2 %928  ;;  %1264 = vmatpush.bf16.msra.mxu2 %v3361_v33 }
 0x597   :  { %v939_v39 = vsel %vm678_vm5, %v854_v32, %v929_v37  ;;  %v4058_v32 = vld [vmem:[#allocation17 + $0x84] sm:$0xf] }
 0x598   :  { %v3365_v37 = vor.u32 %v4058_v32, %v3362_v34  ;;  %v3309_v32 = vor.u32 %v4043_v28, %v3306_v31  ;;  %v4097_v34 = vld [vmem:[#allocation20 + $0xb8] sm:$0xff] }
 0x59a   :  { %1277 = vmatpush.bf16.msrb.mxu3 %v3365_v37  ;;  %v4096_v37 = vld [vmem:[#allocation20 + $0xb0] sm:$0xff] }
 0x5ba   :  { %v933_v38 = vpop.permute.xlu2 %932 }
 0x5bb   :  { %v941_v40 = vsel %vm940_vm11, %v939_v39, %v933_v38  ;;  %v3369_v38 = vor.u32 %v4061_v36, %v3368_v35  ;;  %v4059_v39 = vld [vmem:[#allocation17 + $0x8c] sm:$0xf]  ;;  %v4105_v35 = vld [vmem:[#allocation20 + $0xf8] sm:$0xff] }
 0x5bd   :  { %1290 = vmatpush.bf16.msra.mxu0 %v3369_v38  ;;  %v4104_v38 = vld [vmem:[#allocation20 + $0xf0] sm:$0xff] }
 0x5c2   :  { %v937_v41 = vpop.permute.xlu2 %936 }
 0x5c3   :  { %v943_v42 = vsel %vm942_vm12, %v941_v40, %v937_v41  ;;  %v3370_v40 = vld [vmem:[#allocation17 + $0x98] sm:$0xf0] }
 0x5c4   :  { %v949_v43 = vpack.c.bf16 %v943_v42, %v943_v42  ;;  %v3373_v41 = vor.u32 %v4059_v39, %v3370_v40  ;;  %v3344_v42 = vld [vmem:[#allocation17 + $0x60] sm:$0xf] }
 0x5c6   :  { %1022 = vmatmul.bf16.vlgmr.msra.gmra.mxu1 %v949_v43  ;;  %v4056_v43 = vld [vmem:[#allocation17 + $0x6c] sm:$0xf0] }
 0x5c7   :  { %1303 = vmatpush.bf16.msrb.mxu1 %v3373_v41 }
 0x5cb   :  { %1304 = vmatpush.bf16.msrb.mxu1 %v3357_v53  ;;  %v4081_v53 = vld [vmem:[#allocation20 + $0x38] sm:$0xff] }
 0x5cf   :  { %1305 = vmatpush.bf16.msrb.mxu1 %v3341_v1  ;;  %v4086_v1 = vld [vmem:[#allocation20 + $0x60] sm:$0xff] }
 0x5d3   :  { %1306 = vmatpush.bf16.msrb.mxu1 %v3325_v16  ;;  %v1091_v16 = vld [vmem:[#allocation19] sm:$0xf] }
 0x5d4   :  { %v1095_v20 = vperm.slane %v1091_v16, 2  ;;  %v1094_v31 = vperm.slane %v1091_v16, 1 }
 0x5d7   :  { %1307 = vmatpush.bf16.msrb.mxu1 %v3309_v32 }
 0x5db   :  { %1653 = vmatpush.bf16.msra.mxu1 %v4105_v35 }
 0x5df   :  { %1654 = vmatpush.bf16.msra.mxu1 %v4104_v38 }
 0x643   :  { %v1023_v46 = vpop.f32.mrf.mxu1 }
 0x644   :  { %v4947_v47 = vadd.f32 %v1023_v46, %v948_v45  ;;  %v3345_v45 = vor.u32 %v4056_v43, %v3344_v42  ;;  %v3346_v46 = vld [vmem:[#allocation17 + $0x70] sm:$0xf0] }
 0x645   :  { %v3349_v49 = vor.u32 %v4054_v44, %v3346_v46  ;;  %v4253_v46 = vld [vmem:[%s5060_s9] ss:$0 sm:$0xff] }
 0x646   :  { %1030 = vadd.xlane.f32.xlu2 %v4947_v47  ;;  %1265 = vmatpush.bf16.msra.mxu2 %v3345_v45 }
 0x647   :  { %1278 = vmatpush.bf16.msrb.mxu3 %v3349_v49  ;;  %v4254_v49 = vld [vmem:[#allocation16] ss:$0 sm:$0xff] }
 0x64a   :  { %1266 = vmatpush.bf16.msra.mxu2 %v3329_v57  ;;  %v4080_v57 = vld [vmem:[#allocation20 + $0x30] sm:$0xff] }
 0x64b   :  { %v1025_v0 = vpop.f32.mrf.mxu1 }
 0x64c   :  { %v3352_v0 = vld [vmem:[#allocation17 + $0x68] sm:$0xf] }
 0x64d   :  { %v3353_v50 = vor.u32 %v4057_v48, %v3352_v0 }
 0x64e   :  { %1267 = vmatpush.bf16.msra.mxu2 %v3313_v5  ;;  %v4085_v5 = vld [vmem:[#allocation20 + $0x58] sm:$0xff] }
 0x64f   :  { %1291 = vmatpush.bf16.msra.mxu0 %v3353_v50 }
 0x652   :  { %1268 = vmatpush.bf16.msra.mxu2 %v3297_v21  ;;  %v1096_v21 = vperm.slane %v1091_v16, 3 }
 0x656   :  { %1614 = vmatpush.bf16.msrb.mxu2 %v4081_v53 }
 0x65a   :  { %1615 = vmatpush.bf16.msrb.mxu2 %v4080_v57 }
 0x6b9   :  { %v1031_v10 = vpop.xlane.xlu2 %1030 }
 0x6ba   :  { %v1032_v29 = vmul.f32 %v1031_v10, %v4882_v26  ;;  %v4053_v10 = vld [vmem:[#allocation17 + $0x54] sm:$0xf0] }
 0x6bc   :  { %v4952_v60 = vsub.f32 %v4947_v47, %v1032_v29  ;;  %v3333_v29 = vor.u32 %v4050_v56, %v3330_v58  ;;  %v4103_v56 = vld [vmem:[#allocation20 + $0xe8] sm:$0xff]  ;;  %v4088_v58 = vld [vmem:[#allocation20 + $0x70] sm:$0xff] }
 0x6bd   :  { %1655 = vmatpush.bf16.msra.mxu1 %v4103_v56 }
 0x6be   :  { %v1034_v61 = vmul.f32 %v4952_v60, %v4952_v60  ;;  %1279 = vmatpush.bf16.msrb.mxu3 %v3333_v29  ;;  %v4087_v29 = vld [vmem:[#allocation20 + $0x68] sm:$0xff] }
 0x6c0   :  { %1035 = vadd.xlane.f32.xlu0 %v1034_v61  ;;  %v3337_v61 = vor.u32 %v4053_v10, %v3336_v59  ;;  %v4102_v59 = vld [vmem:[#allocation20 + $0xe0] sm:$0xff]  ;;  %v4079_v10 = vld [vmem:[#allocation20 + $0x28] sm:$0xff] }
 0x6c1   :  { %1656 = vmatpush.bf16.msra.mxu1 %v4102_v59  ;;  %1616 = vmatpush.bf16.msrb.mxu2 %v4079_v10 }
 0x6c2   :  { %1292 = vmatpush.bf16.msra.mxu0 %v3337_v61  ;;  %1280 = vmatpush.bf16.msrb.mxu3 %v3317_v9  ;;  %v4093_v61 = vld [vmem:[#allocation20 + $0x98] sm:$0xff]  ;;  %v4084_v9 = vld [vmem:[#allocation20 + $0x50] sm:$0xff] }
 0x6c5   :  { %1657 = vmatpush.bf16.msra.mxu1 %v4101_v62  ;;  %1617 = vmatpush.bf16.msrb.mxu2 %v4078_v63 }
 0x6c6   :  { %1293 = vmatpush.bf16.msra.mxu0 %v3321_v11  ;;  %1281 = vmatpush.bf16.msrb.mxu3 %v3301_v22  ;;  %v4090_v11 = vld [vmem:[#allocation20 + $0x80] sm:$0xff] }
 0x6c9   :  { %1658 = vmatpush.bf16.msra.mxu1 %v4100_v3  ;;  %1618 = vmatpush.bf16.msrb.mxu2 %v4077_v4 }
 0x6ca   :  { %1294 = vmatpush.bf16.msra.mxu0 %v3305_v30  ;;  %1627 = vmatpush.bf16.msra.mxu3 %v4089_v54  ;;  %v1093_v30 = vperm.slane %v1091_v16, 0 }
 0x6cd   :  { %1659 = vmatpush.bf16.msra.mxu1 %v4099_v7  ;;  %1619 = vmatpush.bf16.msrb.mxu2 %v4076_v8 }
 0x6ce   :  { %1640 = vmatpush.bf16.msrb.mxu0 %v4097_v34  ;;  %1628 = vmatpush.bf16.msra.mxu3 %v4088_v58 }
 0x6d1   :  { %1660 = vmatpush.bf16.msra.mxu1 %v4098_v12  ;;  %1620 = vmatpush.bf16.msrb.mxu2 %v4075_v14 }
 0x6d2   :  { %1641 = vmatpush.bf16.msrb.mxu0 %v4096_v37  ;;  %1629 = vmatpush.bf16.msra.mxu3 %v4087_v29 }
 0x6d5   :  { %1621 = vmatpush.bf16.msrb.mxu2 %v4074_v17 }
 0x6d6   :  { %1642 = vmatpush.bf16.msrb.mxu0 %v4095_v55  ;;  %1630 = vmatpush.bf16.msra.mxu3 %v4086_v1 }
 0x6da   :  { %1631 = vmatpush.bf16.msra.mxu3 %v4085_v5 }
 0x6de   :  { %1632 = vmatpush.bf16.msra.mxu3 %v4084_v9 }
 0x6e2   :  { %1633 = vmatpush.bf16.msra.mxu3 %v4083_v15 }
 0x6e6   :  { %1634 = vmatpush.bf16.msra.mxu3 %v4082_v18 }
 0x733   :  { %v1036_v33 = vpop.xlane.xlu0 %1035 }
 0x734   :  { %v1037_v36 = vmul.f32 %v1036_v33, %v4882_v26 }
 0x736   :  { %v1038_v39 = vadd.f32 1e-05, %v1037_v36 }
 0x738   :  { %4283 = vrsqrt.f32 %v1038_v39  ;;  %vm1045_vm14 = vweird.f32 %v1038_v39 }
 0x73e   :  { %v4284_v40 = vpop.eup %4283 }
 0x73f   :  { %v1040_v41 = vmul.f32 %v4284_v40, %v1038_v39  ;;  %vm1046_vm13 = vweird.f32 %v4284_v40 }
 0x740   :  { %vm1047_vm15 = vmor %vm1045_vm14, %vm1046_vm13 }
 0x741   :  { %v1041_v42 = vmul.f32 %v4284_v40, %v1040_v41 }
 0x743   :  { %v1042_v43 = vmul.f32 0.5, %v1041_v42 }
 0x745   :  { %v1043_v44 = vsub.f32 1.5, %v1042_v43 }
 0x747   :  { %v1044_v45 = vmul.f32 %v4284_v40, %v1043_v44 }
 0x749   :  { %v1048_v0 = vsel %vm1047_vm15, %v4284_v40, %v1044_v45 }
 0x74a   :  { %v1049_v48 = vmul.f32 %v1048_v0, %v4952_v60  ;;  %v4094_v60 = vld [vmem:[#allocation20 + $0xa0] sm:$0xff] }
 0x74b   :  { %1643 = vmatpush.bf16.msrb.mxu0 %v4094_v60 }
 0x74c   :  { %v1053_v50 = vmul.f32 %v4253_v46, %v1049_v48 }
 0x74e   :  { %v1057_v51 = vadd.f32 %v4254_v49, %v1053_v50 }
 0x74f   :  { %1644 = vmatpush.bf16.msrb.mxu0 %v4093_v61 }
 0x750   :  { %v1058_v52 = vpack.c.bf16 %v1057_v51, %v1057_v51 }
 0x752   :  { %1269 = vmatmul.bf16.vlgmr.msra.gmra.mxu2 %v1058_v52  ;;  %1282 = vmatmul.bf16.vlgmr.msrb.gmra.mxu3 %v1058_v52 }
 0x753   :  { %1295 = vmatmul.bf16.vlgmr.msra.gmra.mxu0 %v1058_v52  ;;  %1308 = vmatmul.bf16.vlgmr.msrb.gmra.mxu1 %v1058_v52 }
 0x754   :  { %1645 = vmatpush.bf16.msrb.mxu0 %v4092_v2 }
 0x758   :  { %1646 = vmatpush.bf16.msrb.mxu0 %v4091_v6 }
 0x75c   :  { %1647 = vmatpush.bf16.msrb.mxu0 %v4090_v11 }
 0x7d0   :  { %v1296_v22 = vpop.f32.mrf.mxu0  ;;  %v1309_v23 = vpop.f32.mrf.mxu1 }
 0x7d1   :  { %v1297_v24 = vadd.f32 %v1296_v22, %v1095_v20  ;;  %v1310_v28 = vadd.f32 %v1309_v23, %v1096_v21 }
 0x7d3   :  { %v1319_v32 = vmul.f32 0.044715, %v1297_v24  ;;  %v1320_v33 = vmul.f32 0.044715, %v1310_v28  ;;  %v1315_v29 = vmul.f32 0.5, %v1297_v24  ;;  %v1316_v62 = vmul.f32 0.5, %v1310_v28 }
 0x7d5   :  { %v1323_v34 = vmul.f32 %v1319_v32, %v1297_v24  ;;  %v1324_v35 = vmul.f32 %v1320_v33, %v1310_v28  ;;  %v1270_v36 = vpop.f32.mrf.mxu2  ;;  %v1283_v37 = vpop.f32.mrf.mxu3 }
 0x7d6   :  { %v1271_v38 = vadd.f32 %v1270_v36, %v1093_v30  ;;  %v1284_v39 = vadd.f32 %v1283_v37, %v1094_v31  ;;  %v3637_v36 = vld [vmem:[#allocation11 + $0x168] sm:$0xf]  ;;  %v4128_v37 = vld [vmem:[#allocation11 + $0x170] sm:$0xf0] }
 0x7d7   :  { %v1327_v40 = vmul.f32 %v1323_v34, %v1297_v24  ;;  %v1328_v41 = vmul.f32 %v1324_v35, %v1310_v28 }
 0x7d8   :  { %v1317_v42 = vmul.f32 0.044715, %v1271_v38  ;;  %v1318_v43 = vmul.f32 0.044715, %v1284_v39  ;;  %v1298_v44 = vpop.f32.mrf.mxu0  ;;  %v1311_v45 = vpop.f32.mrf.mxu1  ;;  %v1313_v7 = vmul.f32 0.5, %v1271_v38  ;;  %v1314_v9 = vmul.f32 0.5, %v1284_v39 }
 0x7d9   :  { %v1331_v46 = vadd.f32 %v1327_v40, %v1297_v24  ;;  %v1332_v0 = vadd.f32 %v1328_v41, %v1310_v28  ;;  %v4252_v24 = vld [vmem:[%s5065_s14] ss:$0 sm:$0xff]  ;;  %v3639_v40 = vld [vmem:[#allocation11 + $0x174] sm:$0xf0]  ;;  %v3645_v41 = vld [vmem:[#allocation11 + $0x170] sm:$0xf] }
 0x7da   :  { %v1321_v48 = vmul.f32 %v1317_v42, %v1271_v38  ;;  %v1322_v49 = vmul.f32 %v1318_v43, %v1284_v39  ;;  %v1353_v31 = vadd.f32 %v4252_v24, %v4947_v47  ;;  %v4129_v42 = vld [vmem:[#allocation11 + $0x178] sm:$0xf0]  ;;  %v4112_v24 = vld [vmem:[#allocation11 + $0xf4] sm:$0xf] }
 0x7db   :  { %v1335_v50 = vmul.f32 0.7978846, %v1331_v46  ;;  %v1336_v51 = vmul.f32 0.7978846, %v1332_v0  ;;  %v3646_v44 = vor.u32 %v4129_v42, %v3645_v41  ;;  %v3573_v41 = vld [vmem:[#allocation11 + $0xe0] sm:$0xf] }
 0x7dc   :  { %v1325_v52 = vmul.f32 %v1321_v48, %v1271_v38  ;;  %v1326_v53 = vmul.f32 %v1322_v49, %v1284_v39  ;;  %v3625_v48 = vld [vmem:[#allocation11 + $0x150] sm:$0xf]  ;;  %v4125_v49 = vld [vmem:[#allocation11 + $0x158] sm:$0xf0]  ;;  %v4111_v42 = vld [vmem:[#allocation11 + $0xe8] sm:$0xf0] }
 0x7dd   :  { %v1272_v54 = vpop.f32.mrf.mxu2  ;;  %v1285_v55 = vpop.f32.mrf.mxu3  ;;  %4285 = vtanh.f32 %v1335_v50  ;;  %1896 = vmatpush.bf16.msra.mxu0 %v3646_v44  ;;  %v4124_v50 = vld [vmem:[#allocation11 + $0x154] sm:$0xf]  ;;  %v3574_v44 = vor.u32 %v4111_v42, %v3573_v41 }
 0x7de   :  { %4287 = vtanh.f32 %v1336_v51  ;;  %v1329_v56 = vadd.f32 %v1325_v52, %v1271_v38  ;;  %v1330_v57 = vadd.f32 %v1326_v53, %v1284_v39  ;;  %v4127_v38 = vld [vmem:[#allocation11 + $0x16c] sm:$0xf]  ;;  %v3638_v39 = vor.u32 %v4128_v37, %v3637_v36  ;;  %v3627_v52 = vld [vmem:[#allocation11 + $0x15c] sm:$0xf0]  ;;  %v3633_v53 = vld [vmem:[#allocation11 + $0x158] sm:$0xf] }
 0x7df   :  { %v3642_v43 = vor.u32 %v4127_v38, %v3639_v40  ;;  %v3626_v51 = vor.u32 %v4125_v49, %v3625_v48  ;;  %v4126_v54 = vld [vmem:[#allocation11 + $0x160] sm:$0xf0]  ;;  %v3630_v55 = vor.u32 %v4124_v50, %v3627_v52  ;;  %v3565_v36 = vld [vmem:[#allocation11 + $0xd8] sm:$0xf]  ;;  %v4109_v38 = vld [vmem:[#allocation11 + $0xdc] sm:$0xf] }
 0x7e0   :  { %v1333_v58 = vmul.f32 0.7978846, %v1329_v56  ;;  %v1334_v60 = vmul.f32 0.7978846, %v1330_v57  ;;  %1870 = vmatpush.bf16.msra.mxu2 %v3638_v39  ;;  %v3634_v56 = vor.u32 %v4126_v54, %v3633_v53  ;;  %v3613_v57 = vld [vmem:[#allocation11 + $0x138] sm:$0xf] }
 0x7e1   :  { %1883 = vmatpush.bf16.msrb.mxu3 %v3642_v43  ;;  %v4110_v37 = vld [vmem:[#allocation11 + $0xe0] sm:$0xf0]  ;;  %v3567_v40 = vld [vmem:[#allocation11 + $0xe4] sm:$0xf0]  ;;  %v3555_v49 = vld [vmem:[#allocation11 + $0xcc] sm:$0xf0] }
 0x7e2   :  { %4289 = vtanh.f32 %v1333_v58  ;;  %1897 = vmatpush.bf16.msra.mxu0 %v3634_v56  ;;  %v4122_v58 = vld [vmem:[#allocation11 + $0x140] sm:$0xf0]  ;;  %v3566_v39 = vor.u32 %v4110_v37, %v3565_v36  ;;  %v3570_v43 = vor.u32 %v4109_v38, %v3567_v40  ;;  %v3561_v50 = vld [vmem:[#allocation11 + $0xc8] sm:$0xf] }
 0x7e3   :  { %v4286_v59 = vpop.eup %4285  ;;  %4291 = vtanh.f32 %v1334_v60  ;;  %v4121_v60 = vld [vmem:[#allocation11 + $0x13c] sm:$0xf] }
 0x7e4   :  { %v4288_v10 = vpop.eup %4287  ;;  %v1343_v61 = vadd.f32 1.0, %v4286_v59  ;;  %1871 = vmatpush.bf16.msra.mxu2 %v3626_v51  ;;  %v3614_v59 = vor.u32 %v4122_v58, %v3613_v57  ;;  %v4108_v51 = vld [vmem:[#allocation11 + $0xd0] sm:$0xf0] }
 0x7e5   :  { %v1344_v63 = vadd.f32 1.0, %v4288_v10  ;;  %1884 = vmatpush.bf16.msrb.mxu3 %v3630_v55  ;;  %v3615_v10 = vld [vmem:[#allocation11 + $0x144] sm:$0xf0]  ;;  %v3562_v53 = vor.u32 %v4108_v51, %v3561_v50 }
 0x7e6   :  { %v1347_v1 = vmul.f32 %v1343_v61, %v1315_v29  ;;  %v3621_v29 = vld [vmem:[#allocation11 + $0x140] sm:$0xf]  ;;  %v4123_v61 = vld [vmem:[#allocation11 + $0x148] sm:$0xf0] }
 0x7e7   :  { %v1348_v2 = vmul.f32 %v1344_v63, %v1316_v62  ;;  %v3618_v62 = vor.u32 %v4121_v60, %v3615_v10  ;;  %v3622_v63 = vor.u32 %v4123_v61, %v3621_v29  ;;  %v4255_v61 = vld [vmem:[%s5054_s3 + $0x1] ss:$0 sm:$0xff] }
 0x7e8   :  { %v4290_v3 = vpop.eup %4289  ;;  %v1356_v4 = vpack.c.bf16 %v1347_v1, %v1347_v1  ;;  %1872 = vmatpush.bf16.msra.mxu2 %v3614_v59  ;;  %v3601_v1 = vld [vmem:[#allocation11 + $0x120] sm:$0xf] }
 0x7e9   :  { %v4292_v5 = vpop.eup %4291  ;;  %v1357_v6 = vpack.c.bf16 %v1348_v2, %v1348_v2  ;;  %v1341_v8 = vadd.f32 1.0, %v4290_v3  ;;  %1885 = vmatpush.bf16.msrb.mxu3 %v3618_v62  ;;  %1898 = vmatpush.bf16.msra.mxu0 %v3622_v63  ;;  %v4119_v2 = vld [vmem:[#allocation11 + $0x128] sm:$0xf0]  ;;  %v4118_v3 = vld [vmem:[#allocation11 + $0x124] sm:$0xf] }
 0x7ea   :  { %1648 = vmatmul.bf16.vlgmr.msrb.gmra.mxu0 %v1356_v4  ;;  %v1342_v11 = vadd.f32 1.0, %v4292_v5  ;;  %v3602_v4 = vor.u32 %v4119_v2, %v3601_v1  ;;  %v3603_v5 = vld [vmem:[#allocation11 + $0x12c] sm:$0xf0]  ;;  %v4256_v1 = vld [vmem:[#allocation10 + $0x1] ss:$0 sm:$0xff] }
 0x7eb   :  { %1661 = vmatmul.bf16.vlgmr.msra.gmra.mxu1 %v1357_v6  ;;  %v1345_v12 = vmul.f32 %v1341_v8, %v1313_v7  ;;  %v3609_v6 = vld [vmem:[#allocation11 + $0x128] sm:$0xf]  ;;  %v4120_v7 = vld [vmem:[#allocation11 + $0x130] sm:$0xf0]  ;;  %v3606_v8 = vor.u32 %v4118_v3, %v3603_v5 }
 0x7ec   :  { %v1346_v14 = vmul.f32 %v1342_v11, %v1314_v9  ;;  %v3610_v9 = vor.u32 %v4120_v7, %v3609_v6  ;;  %1873 = vmatpush.bf16.msra.mxu2 %v3602_v4  ;;  %v3589_v11 = vld [vmem:[#allocation11 + $0x108] sm:$0xf]  ;;  %v1734_v6 = vld [vmem:[#allocation13 + $0x3] sm:$0x7] }
 0x7ed   :  { %v1354_v15 = vpack.c.bf16 %v1345_v12, %v1345_v12  ;;  %1886 = vmatpush.bf16.msrb.mxu3 %v3606_v8  ;;  %v4116_v12 = vld [vmem:[#allocation11 + $0x110] sm:$0xf0]  ;;  %v1736_v7 = vperm.slane %v1734_v6, 0  ;;  %v1737_v8 = vperm.slane %v1734_v6, 1 }
 0x7ee   :  { %v1355_v16 = vpack.c.bf16 %v1346_v14, %v1346_v14  ;;  %1899 = vmatpush.bf16.msra.mxu0 %v3610_v9  ;;  %v4115_v14 = vld [vmem:[#allocation11 + $0x10c] sm:$0xf] }
 0x7ef   :  { %1622 = vmatmul.bf16.vlgmr.msrb.gmra.mxu2 %v1354_v15  ;;  %v3590_v15 = vor.u32 %v4116_v12, %v3589_v11 }
 0x7f0   :  { %1635 = vmatmul.bf16.vlgmr.msra.gmra.mxu3 %v1355_v16  ;;  %v3591_v16 = vld [vmem:[#allocation11 + $0x114] sm:$0xf0] }
 0x7f1   :  { %1874 = vmatpush.bf16.msra.mxu2 %v3590_v15 }
 0x867   :  { %v1649_v17 = vpop.f32.mrf.mxu0 }
 0x868   :  { %v1662_v18 = vpop.f32.mrf.mxu1 }
 0x86f   :  { %v1651_v20 = vpop.f32.mrf.mxu0 }
 0x870   :  { %v1664_v21 = vpop.f32.mrf.mxu1  ;;  %v3594_v20 = vor.u32 %v4115_v14, %v3591_v16 }
 0x872   :  { %v1623_v22 = vpop.f32.mrf.mxu2  ;;  %1887 = vmatpush.bf16.msrb.mxu3 %v3594_v20 }
 0x873   :  { %v1636_v23 = vpop.f32.mrf.mxu3 }
 0x874   :  { %v1637_v28 = vadd.f32 %v1636_v23, %v1623_v22  ;;  %v3577_v22 = vld [vmem:[#allocation11 + $0xf0] sm:$0xf]  ;;  %v4113_v23 = vld [vmem:[#allocation11 + $0xf8] sm:$0xf0] }
 0x876   :  { %v1650_v30 = vadd.f32 %v1649_v17, %v1637_v28  ;;  %v3597_v17 = vld [vmem:[#allocation11 + $0x110] sm:$0xf]  ;;  %v3578_v28 = vor.u32 %v4113_v23, %v3577_v22 }
 0x878   :  { %v1663_v32 = vadd.f32 %v1662_v18, %v1650_v30  ;;  %v4117_v18 = vld [vmem:[#allocation11 + $0x118] sm:$0xf0]  ;;  %v3579_v30 = vld [vmem:[#allocation11 + $0xfc] sm:$0xf0]  ;;  %1875 = vmatpush.bf16.msra.mxu2 %v3578_v28  ;;  %v1738_v28 = vperm.slane %v1734_v6, 2 }
 0x879   :  { %v3598_v21 = vor.u32 %v4117_v18, %v3597_v17 }
 0x87a   :  { %v1625_v33 = vpop.f32.mrf.mxu2  ;;  %v4965_v34 = vadd.f32 %v1663_v32, %v1353_v31  ;;  %v3585_v31 = vld [vmem:[#allocation11 + $0xf8] sm:$0xf]  ;;  %v4114_v32 = vld [vmem:[#allocation11 + $0x100] sm:$0xf0] }
 0x87b   :  { %v1638_v35 = vpop.f32.mrf.mxu3  ;;  %1900 = vmatpush.bf16.msra.mxu0 %v3598_v21  ;;  %v3582_v33 = vor.u32 %v4112_v24, %v3579_v30 }
 0x87c   :  { %1671 = vadd.xlane.f32.xlu0 %v4965_v34  ;;  %v3586_v35 = vor.u32 %v4114_v32, %v3585_v31  ;;  %1876 = vmatpush.bf16.msra.mxu2 %v3566_v39 }
 0x87d   :  { %1888 = vmatpush.bf16.msrb.mxu3 %v3582_v33 }
 0x87f   :  { %1901 = vmatpush.bf16.msra.mxu0 %v3586_v35 }
 0x881   :  { %1889 = vmatpush.bf16.msrb.mxu3 %v3570_v43 }
 0x883   :  { %1902 = vmatpush.bf16.msra.mxu0 %v3574_v44 }
 0x887   :  { %1903 = vmatpush.bf16.msra.mxu0 %v3562_v53 }
 0x8ef   :  { %v1672_v47 = vpop.xlane.xlu0 %1671 }
 0x8f0   :  { %v1673_v45 = vmul.f32 %v1672_v47, %v4882_v26  ;;  %v3553_v47 = vld [vmem:[#allocation11 + $0xc0] sm:$0xf] }
 0x8f2   :  { %v4970_v46 = vsub.f32 %v4965_v34, %v1673_v45  ;;  %v4107_v45 = vld [vmem:[#allocation11 + $0xc8] sm:$0xf0] }
 0x8f3   :  { %v3554_v48 = vor.u32 %v4107_v45, %v3553_v47 }
 0x8f4   :  { %v1675_v0 = vmul.f32 %v4970_v46, %v4970_v46 }
 0x8f5   :  { %1877 = vmatpush.bf16.msra.mxu2 %v3554_v48 }
 0x8f6   :  { %1676 = vadd.xlane.f32.xlu0 %v1675_v0  ;;  %v4106_v0 = vld [vmem:[#allocation11 + $0xc4] sm:$0xf] }
 0x8f7   :  { %v3558_v52 = vor.u32 %v4106_v0, %v3555_v49 }
 0x8f9   :  { %1890 = vmatpush.bf16.msrb.mxu3 %v3558_v52 }
 0x969   :  { %v1677_v54 = vpop.xlane.xlu0 %1676 }
 0x96a   :  { %v1678_v55 = vmul.f32 %v1677_v54, %v4882_v26 }
 0x96c   :  { %v1679_v56 = vadd.f32 1e-05, %v1678_v55 }
 0x96e   :  { %4293 = vrsqrt.f32 %v1679_v56  ;;  %vm1686_vm1 = vweird.f32 %v1679_v56 }
 0x974   :  { %v4294_v57 = vpop.eup %4293 }
 0x975   :  { %v1681_v58 = vmul.f32 %v4294_v57, %v1679_v56  ;;  %vm1687_vm0 = vweird.f32 %v4294_v57 }
 0x976   :  { %vm1688_vm2 = vmor %vm1686_vm1, %vm1687_vm0 }
 0x977   :  { %v1682_v60 = vmul.f32 %v4294_v57, %v1681_v58 }
 0x979   :  { %v1683_v59 = vmul.f32 0.5, %v1682_v60 }
 0x97b   :  { %v1684_v10 = vsub.f32 1.5, %v1683_v59 }
 0x97d   :  { %v1685_v29 = vmul.f32 %v4294_v57, %v1684_v10 }
 0x97f   :  { %v1689_v62 = vsel %vm1688_vm2, %v4294_v57, %v1685_v29 }
 0x980   :  { %v1690_v63 = vmul.f32 %v1689_v62, %v4970_v46 }
 0x982   :  { %v1694_v2 = vmul.f32 %v4255_v61, %v1690_v63 }
 0x984   :  { %v1698_v3 = vadd.f32 %v4256_v1, %v1694_v2 }
 0x986   :  { %v1699_v4 = vpack.c.bf16 %v1698_v3, %v1698_v3 }
 0x988   :  { %1878 = vmatmul.bf16.vlgmr.msra.gmra.mxu2 %v1699_v4  ;;  %1891 = vmatmul.bf16.vlgmr.msrb.gmra.mxu3 %v1699_v4 }
 0x989   :  { %1904 = vmatmul.bf16.vlgmr.msra.gmra.mxu0 %v1699_v4 }
 0xa06   :  { %v1905_v5 = vpop.f32.mrf.mxu0 }
 0xa07   :  { %v1906_v35 = vadd.f32 %v1905_v5, %v1738_v28 }
 0xa09   :  { %v4982_v41 = vpack.c.bf16 %v1906_v35, %v1906_v35 }
 0xa0b   :  { %v1879_v9 = vpop.f32.mrf.mxu2  ;;  %v1892_v11 = vpop.f32.mrf.mxu3  ;;  %v2134_v47 = vsel %vm841_vm4, %v4982_v41, 0 }
 0xa0c   :  { %v1880_v12 = vadd.f32 %v1879_v9, %v1736_v7  ;;  %v1893_v14 = vadd.f32 %v1892_v11, %v1737_v8 }
 0xa0e   :  { %v1909_v15 = vmul.f32 0.17677669, %v1880_v12  ;;  %v1907_v16 = vpop.f32.mrf.mxu0  ;;  %1911 = vxpose.xlu0.b32.start.end [1/1] (short) %v1893_v14, 128 }
 0xa10   :  { %v1910_v17 = vpack.c.bf16 %v1909_v15, %v1909_v15 }
 0xa12   :  { %v1989_v46 = vunpack.c.l.b16 %v1910_v17 }
 0xa13   :  { %v1881_v18 = vpop.f32.mrf.mxu2  ;;  %v1894_v20 = vpop.f32.mrf.mxu3 }
 0xa14   :  { %v1990_v21 = vpack.c.b16 %v1989_v46, %v1989_v46 }
 0xa16   :  { %1991 = vrot.lane.b32.xlu2 %v1990_v21, %s4716_s4 }
 0xa1e   :  { %2021 = vrot.lane.b32.xlu2 %v1990_v21, %s4696_s1 }
 0xa26   :  { %2051 = vrot.lane.b32.xlu2 %v1990_v21, %s4715_s13 }
 0xa70   :  { %v1992_v59 = vpop.permute.xlu2 %1991 }
 0xa78   :  { %v2022_v11 = vpop.permute.xlu2 %2021 }
 0xab2   :  { %v1927_v22 = vpop.trf.xlu0 }
 0xab3   :  { %v1943_v36 = vpack.c.bf16 %v1927_v22, %v1927_v22 }
 0xab5   :  { %v1964_v42 = vunpack.c.l.b16 %v1943_v36 }
 0xaba   :  { %v1928_v23 = vpop.trf.xlu0 }
 0xabb   :  { %v1944_v32 = vpack.c.bf16 %v1928_v23, %v1928_v23 }
 0xabd   :  { %v1965_v39 = vunpack.c.l.b16 %v1944_v32 }
 0xabf   :  { %v1968_v44 = vpack.c.b16 %v1965_v39, %v1964_v42 }
 0xac2   :  { %v1929_v24 = vpop.trf.xlu0 }
 0xac3   :  { %v1945_v30 = vpack.c.bf16 %v1929_v24, %v1929_v24 }
 0xac5   :  { %v1966_v37 = vunpack.c.l.b16 %v1945_v30  ;;  %v2052_v30 = vpop.permute.xlu2 %2051 }
 0xaca   :  { %v1930_v31 = vpop.trf.xlu0 }
 0xacb   :  { %v1946_v33 = vpack.c.bf16 %v1930_v31, %v1930_v31 }
 0xacd   :  { %v1967_v38 = vunpack.c.l.b16 %v1946_v33 }
 0xacf   :  { %v1969_v40 = vpack.c.b16 %v1967_v38, %v1966_v37 }
 0xad1   :  { %1981 = vmatpush.bf16.msrb.mxu1 %v1969_v40 }
 0xad2   :  { %v1931_v43 = vpop.trf.xlu0 }
 0xad3   :  { %v1947_v52 = vpack.c.bf16 %v1931_v43, %v1931_v43 }
 0xad5   :  { %1982 = vmatpush.bf16.msrb.mxu1 %v1968_v44  ;;  %v1997_v57 = vunpack.c.l.b16 %v1947_v52 }
 0xad8   :  { %3647 = vmatmul.msk.bf16.vlgmr.msrb.gmra.mxu1 %vm678_vm5, %v1910_v17 }
 0xad9   :  { %2143 = vmatpush.bf16.msra.mxu1 %v2134_v47 }
 0xada   :  { %v1932_v45 = vpop.trf.xlu0 }
 0xadb   :  { %v1948_v50 = vpack.c.bf16 %v1932_v45, %v1932_v45 }
 0xadd   :  { %v1998_v55 = vunpack.c.l.b16 %v1948_v50 }
 0xadf   :  { %v2001_v60 = vpack.c.b16 %v1998_v55, %v1997_v57 }
 0xae2   :  { %v1933_v0 = vpop.trf.xlu0 }
 0xae3   :  { %v1949_v48 = vpack.c.bf16 %v1933_v0, %v1933_v0 }
 0xae5   :  { %v1999_v53 = vunpack.c.l.b16 %v1949_v48  ;;  %v2151_v48 = vunpack.c.l.b16 %v4982_v41 }
 0xaea   :  { %v1934_v49 = vpop.trf.xlu0 }
 0xaeb   :  { %v1950_v51 = vpack.c.bf16 %v1934_v49, %v1934_v49  ;;  %v2152_v49 = vpack.c.b16 %v2151_v48, %v2151_v48 }
 0xaed   :  { %v2000_v54 = vunpack.c.l.b16 %v1950_v51 }
 0xaef   :  { %v2002_v56 = vpack.c.b16 %v2000_v54, %v1999_v53 }
 0xaf1   :  { %2014 = vmatpush.bf16.msrb.mxu2 %v2002_v56 }
 0xaf2   :  { %v1935_v58 = vpop.trf.xlu0 }
 0xaf3   :  { %v1951_v2 = vpack.c.bf16 %v1935_v58, %v1935_v58 }
 0xaf5   :  { %2015 = vmatpush.bf16.msrb.mxu2 %v2001_v60  ;;  %v2027_v7 = vunpack.c.l.b16 %v1951_v2 }
 0xaf8   :  { %3648 = vmatmul.msk.bf16.vlgmr.msrb.gmra.mxu2 %vm678_vm5, %v1992_v59 }
 0xafa   :  { %v1936_v10 = vpop.trf.xlu0 }
 0xafb   :  { %v1952_v63 = vpack.c.bf16 %v1936_v10, %v1936_v10 }
 0xafd   :  { %v2028_v5 = vunpack.c.l.b16 %v1952_v63 }
 0xaff   :  { %v2031_v9 = vpack.c.b16 %v2028_v5, %v2027_v7 }
 0xb02   :  { %v1937_v29 = vpop.trf.xlu0 }
 0xb03   :  { %v1953_v61 = vpack.c.bf16 %v1937_v29, %v1937_v29 }
 0xb05   :  { %v2029_v3 = vunpack.c.l.b16 %v1953_v61 }
 0xb0a   :  { %v1938_v62 = vpop.trf.xlu0 }
 0xb0b   :  { %v1954_v1 = vpack.c.bf16 %v1938_v62, %v1938_v62 }
 0xb0d   :  { %v2030_v4 = vunpack.c.l.b16 %v1954_v1 }
 0xb0f   :  { %v2032_v6 = vpack.c.b16 %v2030_v4, %v2029_v3 }
 0xb11   :  { %2044 = vmatpush.bf16.msra.mxu3 %v2032_v6 }
 0xb12   :  { %v1939_v8 = vpop.trf.xlu0 }
 0xb13   :  { %v1955_v18 = vpack.c.bf16 %v1939_v8, %v1939_v8 }
 0xb15   :  { %2045 = vmatpush.bf16.msra.mxu3 %v2031_v9  ;;  %v2057_v24 = vunpack.c.l.b16 %v1955_v18 }
 0xb18   :  { %3649 = vmatmul.msk.bf16.vlgmr.msra.gmra.mxu3 %vm678_vm5, %v2022_v11 }
 0xb1a   :  { %v1940_v12 = vpop.trf.xlu0 }
 0xb1b   :  { %v1956_v17 = vpack.c.bf16 %v1940_v12, %v1940_v12 }
 0xb1d   :  { %v2058_v22 = vunpack.c.l.b16 %v1956_v17 }
 0xb1f   :  { %v2061_v28 = vpack.c.b16 %v2058_v22, %v2057_v24 }
 0xb22   :  { %v1941_v14 = vpop.trf.xlu0 }
 0xb23   :  { %v1957_v15 = vpack.c.bf16 %v1941_v14, %v1941_v14 }
 0xb25   :  { %v2059_v20 = vunpack.c.l.b16 %v1957_v15 }
 0xb2a   :  { %v1942_v16 = vpop.trf.xlu0 }
 0xb2b   :  { %v1958_v46 = vpack.c.bf16 %v1942_v16, %v1942_v16 }
 0xb2d   :  { %v2060_v21 = vunpack.c.l.b16 %v1958_v46 }
 0xb2f   :  { %v2062_v23 = vpack.c.b16 %v2060_v21, %v2059_v20 }
 0xb31   :  { %2074 = vmatpush.bf16.msrb.mxu0 %v2062_v23 }
 0xb35   :  { %2075 = vmatpush.bf16.msrb.mxu0 %v2061_v28 }
 0xb38   :  { %3650 = vmatmul.msk.bf16.vlgmr.msrb.gmra.mxu0 %vm678_vm5, %v2052_v30 }
 0xb55   :  { %v1984_v31 = vpop.f32.mrf.mxu1 }
 0xb56   :  { %v2081_v42 = vadd.f32 %v1984_v31, %v4910_v19 }
 0xb58   :  { %v2085_v44 = vsel %vm792_vm8, %v2081_v42, -inf }
 0xb5d   :  { %v1986_v32 = vpop.f32.mrf.mxu1 }
 0xb7b   :  { %v2017_v33 = vpop.f32.mrf.mxu2 }
 0xb7c   :  { %v2082_v35 = vadd.f32 %v2017_v33, %v4906_v13 }
 0xb7e   :  { %v2088_v36 = vsel %vm792_vm8, %v2082_v35, -inf }
 0xb7f   :  { %2089 = vmax.xlane.f32.xlu0 %v2088_v36  ;;  %v4137_v36 = vld [vmem:[#allocation14 + $0x78] sm:$0xff] }
 0xb80   :  { %2305 = vmatpush.bf16.msrb.mxu1 %v4137_v36  ;;  %v4156_v36 = vld [vmem:[#allocation17 + $0x18c] sm:$0xf0] }
 0xb83   :  { %v2019_v37 = vpop.f32.mrf.mxu2 }
 0xb84   :  { %v4136_v37 = vld [vmem:[#allocation14 + $0x70] sm:$0xff] }
 0xb85   :  { %2306 = vmatpush.bf16.msrb.mxu1 %v4136_v37  ;;  %v4154_v37 = vld [vmem:[#allocation17 + $0x184] sm:$0xf] }
 0xb9b   :  { %v2047_v38 = vpop.f32.mrf.mxu3 }
 0xb9c   :  { %v2083_v39 = vadd.f32 %v2047_v38, %v4916_v27  ;;  %v4135_v38 = vld [vmem:[#allocation14 + $0x68] sm:$0xff] }
 0xb9d   :  { %2307 = vmatpush.bf16.msrb.mxu1 %v4135_v38 }
 0xb9e   :  { %v2091_v40 = vsel %vm792_vm8, %v2083_v39, -inf }
 0xb9f   :  { %2092 = vmax.xlane.f32.xlu2 %v2091_v40  ;;  %v4133_v40 = vld [vmem:[#allocation14 + $0x58] sm:$0xff] }
 0xba3   :  { %v2049_v43 = vpop.f32.mrf.mxu3 }
 0xba7   :  { %2086 = vmax.xlane.f32.xlu2 %v2085_v44  ;;  %v4132_v44 = vld [vmem:[#allocation14 + $0x50] sm:$0xff] }
 0xbb5   :  { %v2077_v47 = vpop.f32.mrf.mxu0 }
 0xbb6   :  { %v2084_v45 = vadd.f32 %v2077_v47, %v4914_v25  ;;  %v4131_v47 = vld [vmem:[#allocation14 + $0x48] sm:$0xff] }
 0xbb8   :  { %v2094_v13 = vsel %vm792_vm8, %v2084_v45, -inf }
 0xbb9   :  { %2095 = vmax.xlane.f32.xlu1 %v2094_v13 }
 0xbbd   :  { %v2079_v0 = vpop.f32.mrf.mxu0 }
 0xbd2   :  { %2153 = vrot.lane.b32.xlu1 %v2152_v49, %s4716_s4 }
 0xbda   :  { %2197 = vrot.lane.b32.xlu1 %v2152_v49, %s4715_s13 }
 0xbf2   :  { %v2090_v27 = vpop.xlane.xlu0 %2089 }
 0xbf3   :  { %v2098_v19 = vsub.f32 %v2082_v35, %v2090_v27 }
 0xbf5   :  { %v2103_v50 = vmul.f32 1.442695, %v2098_v19 }
 0xbf7   :  { %4295 = vpow2.f32 %v2103_v50 }
 0xbfd   :  { %v4296_v51 = vpop.eup %4295 }
 0xbfe   :  { %v2112_v52 = vsel %vm792_vm8, %v4296_v51, 0.0 }
 0xbff   :  { %2113 = vadd.xlane.f32.xlu2 %v2112_v52 }
 0xc12   :  { %v2093_v25 = vpop.xlane.xlu2 %2092 }
 0xc13   :  { %v2099_v53 = vsub.f32 %v2083_v39, %v2093_v25  ;;  %v4134_v39 = vld [vmem:[#allocation14 + $0x60] sm:$0xff] }
 0xc14   :  { %2308 = vmatpush.bf16.msrb.mxu1 %v4134_v39  ;;  %v3757_v39 = vld [vmem:[#allocation17 + $0x190] sm:$0xf0] }
 0xc15   :  { %v2105_v54 = vmul.f32 1.442695, %v2099_v53 }
 0xc17   :  { %4297 = vpow2.f32 %v2105_v54 }
 0xc18   :  { %2309 = vmatpush.bf16.msrb.mxu1 %v4133_v40  ;;  %v3763_v40 = vld [vmem:[#allocation17 + $0x188] sm:$0xf] }
 0xc1a   :  { %v2087_v63 = vpop.xlane.xlu2 %2086 }
 0xc1b   :  { %v2097_v1 = vsub.f32 %v2081_v42, %v2087_v63 }
 0xc1c   :  { %2310 = vmatpush.bf16.msrb.mxu1 %v4132_v44 }
 0xc1d   :  { %v4298_v55 = vpop.eup %4297  ;;  %v2101_v2 = vmul.f32 1.442695, %v2097_v1 }
 0xc1e   :  { %v2115_v41 = vsel %vm792_vm8, %v4298_v55, 0.0 }
 0xc1f   :  { %2116 = vadd.xlane.f32.xlu2 %v2115_v41  ;;  %v4168_v41 = vld [vmem:[#allocation17 + $0x1ec] sm:$0xf0] }
 0xc20   :  { %2311 = vmatpush.bf16.msrb.mxu1 %v4131_v47  ;;  %v4155_v47 = vld [vmem:[#allocation17 + $0x18c] sm:$0xf] }
 0xc2c   :  { %v2096_v56 = vpop.xlane.xlu1 %2095 }
 0xc2d   :  { %v2100_v57 = vsub.f32 %v2084_v45, %v2096_v56  ;;  %v4130_v45 = vld [vmem:[#allocation14 + $0x40] sm:$0xff] }
 0xc2e   :  { %2312 = vmatpush.bf16.msrb.mxu1 %v4130_v45  ;;  %v4166_v56 = vld [vmem:[#allocation17 + $0x1e4] sm:$0xf]  ;;  %v3765_v45 = vld [vmem:[#allocation17 + $0x198] sm:$0xf0] }
 0xc2f   :  { %v2107_v58 = vmul.f32 1.442695, %v2100_v57 }
 0xc31   :  { %4299 = vpow2.f32 %v2107_v58  ;;  %v3805_v58 = vld [vmem:[#allocation17 + $0x1f0] sm:$0xf0] }
 0xc32   :  { %4301 = vpow2.f32 %v2101_v2 }
 0xc37   :  { %v4300_v60 = vpop.eup %4299 }
 0xc38   :  { %v2118_v59 = vsel %vm792_vm8, %v4300_v60, 0.0  ;;  %v4302_v4 = vpop.eup %4301 }
 0xc39   :  { %2119 = vadd.xlane.f32.xlu2 %v2118_v59  ;;  %v2109_v6 = vsel %vm792_vm8, %v4302_v4, 0.0  ;;  %v4169_v59 = vld [vmem:[#allocation17 + $0x1f4] sm:$0xf0] }
 0xc44   :  { %v2154_v10 = vpop.permute.xlu1 %2153 }
 0xc45   :  { %v2159_v29 = vsel %vm841_vm4, %v2154_v10, 0  ;;  %v3808_v10 = vor.u32 %v4166_v56, %v3805_v58  ;;  %v3723_v56 = vld [vmem:[#allocation17 + $0x140] sm:$0xf]  ;;  %v4146_v58 = vld [vmem:[#allocation17 + $0x144] sm:$0xf] }
 0xc46   :  { %2168 = vmatpush.bf16.msra.mxu2 %v2159_v29 }
 0xc4c   :  { %v2198_v61 = vpop.permute.xlu1 %2197 }
 0xc4d   :  { %v2203_v62 = vsel %vm841_vm4, %v2198_v61, 0  ;;  %v4167_v61 = vld [vmem:[#allocation17 + $0x1ec] sm:$0xf] }
 0xc4e   :  { %2212 = vmatpush.bf16.msra.mxu0 %v2203_v62  ;;  %v3813_v62 = vld [vmem:[#allocation17 + $0x1f8] sm:$0xf0] }
 0xc4f   :  { %v3816_v63 = vor.u32 %v4167_v61, %v3813_v62 }
 0xc51   :  { %2175 = vrot.lane.b32.xlu2 %v2152_v49, %s4696_s1 }
 0xc72   :  { %v2114_v3 = vpop.xlane.xlu2 %2113 }
 0xc73   :  { %4303 = vrcp.f32 %v2114_v3 }
 0xc79   :  { %v4304_v5 = vpop.eup %4303 }
 0xc7a   :  { %v2126_v7 = vmul.f32 %v4304_v5, %v4296_v51  ;;  %2110 = vadd.xlane.f32.xlu2 %v2109_v6  ;;  %v4257_v51 = vld [vmem:[%s5059_s8 + $0x1] ss:$0 sm:$0xff]  ;;  %v4164_v5 = vld [vmem:[#allocation17 + $0x1cc] sm:$0xf0]  ;;  %v4162_v6 = vld [vmem:[#allocation17 + $0x1c4] sm:$0xf] }
 0xc7b   :  { %v2238_v52 = vadd.f32 %v4257_v51, %v4965_v34  ;;  %v4153_v51 = vld [vmem:[#allocation17 + $0x174] sm:$0xf0] }
 0xc7c   :  { %v2149_v8 = vpack.c.bf16 %v2126_v7, %v2126_v7 }
 0xc7e   :  { %3652 = vmatmul.msk.bf16.vlgmr.msra.gmra.mxu2 %vm792_vm8, %v2149_v8  ;;  %v3789_v8 = vld [vmem:[#allocation17 + $0x1d0] sm:$0xf0] }
 0xc92   :  { %v2117_v9 = vpop.xlane.xlu2 %2116 }
 0xc93   :  { %4305 = vrcp.f32 %v2117_v9  ;;  %v3795_v9 = vld [vmem:[#allocation17 + $0x1c8] sm:$0xf] }
 0xc99   :  { %v4306_v12 = vpop.eup %4305 }
 0xc9a   :  { %v2127_v15 = vmul.f32 %v4306_v12, %v4298_v55  ;;  %v3803_v55 = vld [vmem:[#allocation17 + $0x1e0] sm:$0xf]  ;;  %v3792_v12 = vor.u32 %v4162_v6, %v3789_v8  ;;  %v3715_v8 = vld [vmem:[#allocation17 + $0x128] sm:$0xf] }
 0xc9b   :  { %v3804_v57 = vor.u32 %v4168_v41, %v3803_v55  ;;  %v3749_v55 = vld [vmem:[#allocation17 + $0x178] sm:$0xf0] }
 0xc9c   :  { %v2174_v20 = vpack.c.bf16 %v2127_v15, %v2127_v15  ;;  %v4163_v15 = vld [vmem:[#allocation17 + $0x1cc] sm:$0xf] }
 0xc9d   :  { %2556 = vmatpush.bf16.msrb.mxu2 %v3804_v57  ;;  %v4148_v57 = vld [vmem:[#allocation17 + $0x14c] sm:$0xf0] }
 0xcac   :  { %v2120_v11 = vpop.xlane.xlu2 %2119 }
 0xcad   :  { %4307 = vrcp.f32 %v2120_v11  ;;  %v4165_v11 = vld [vmem:[#allocation17 + $0x1d4] sm:$0xf0] }
 0xcb3   :  { %v4308_v14 = vpop.eup %4307 }
 0xcb4   :  { %v2128_v16 = vmul.f32 %v4308_v14, %v4300_v60  ;;  %v2176_v17 = vpop.permute.xlu2 %2175  ;;  %v3811_v60 = vld [vmem:[#allocation17 + $0x1e8] sm:$0xf]  ;;  %v3796_v14 = vor.u32 %v4165_v11, %v3795_v9  ;;  %v4145_v9 = vld [vmem:[#allocation17 + $0x134] sm:$0xf0] }
 0xcb5   :  { %v2181_v46 = vsel %vm841_vm4, %v2176_v17, 0  ;;  %v3812_v29 = vor.u32 %v4169_v59, %v3811_v60  ;;  %v3724_v60 = vor.u32 %v4148_v57, %v3723_v56  ;;  %v3725_v59 = vld [vmem:[#allocation17 + $0x150] sm:$0xf0]  ;;  %v4184_v56 = vld [vmem:[#allocation20 + $0x170] sm:$0xff]  ;;  %v4198_v57 = vld [vmem:[#allocation20 + $0x1e0] sm:$0xff] }
 0xcb6   :  { %v2196_v18 = vpack.c.bf16 %v2128_v16, %v2128_v16  ;;  %2190 = vmatpush.bf16.msrb.mxu3 %v2181_v46  ;;  %v3797_v16 = vld [vmem:[#allocation17 + $0x1d8] sm:$0xf0]  ;;  %v3771_v46 = vld [vmem:[#allocation17 + $0x1a0] sm:$0xf]  ;;  %v3728_v61 = vor.u32 %v4146_v58, %v3725_v59  ;;  %v4175_v58 = vld [vmem:[#allocation20 + $0x128] sm:$0xff] }
 0xcb7   :  { %2582 = vmatpush.bf16.msrb.mxu0 %v3812_v29  ;;  %v3800_v17 = vor.u32 %v4163_v15, %v3797_v16  ;;  %v4149_v29 = vld [vmem:[#allocation17 + $0x154] sm:$0xf0]  ;;  %v3717_v15 = vld [vmem:[#allocation17 + $0x138] sm:$0xf0]  ;;  %v3691_v16 = vld [vmem:[#allocation17 + $0x100] sm:$0xf] }
 0xcb8   :  { %3654 = vmatmul.msk.bf16.vlgmr.msra.gmra.mxu0 %vm792_vm8, %v2196_v18  ;;  %v4160_v18 = vld [vmem:[#allocation17 + $0x1ac] sm:$0xf0]  ;;  %v4189_v59 = vld [vmem:[#allocation20 + $0x198] sm:$0xff] }
 0xcb9   :  { %3653 = vmatmul.msk.bf16.vlgmr.msrb.gmra.mxu3 %vm792_vm8, %v2174_v20  ;;  %v4158_v20 = vld [vmem:[#allocation17 + $0x1a4] sm:$0xf] }
 0xcba   :  { %2569 = vmatpush.bf16.msra.mxu3 %v3808_v10  ;;  %v3731_v10 = vld [vmem:[#allocation17 + $0x148] sm:$0xf] }
 0xcbb   :  { %2583 = vmatpush.bf16.msrb.mxu0 %v3796_v14  ;;  %v3732_v62 = vor.u32 %v4149_v29, %v3731_v10  ;;  %v4143_v14 = vld [vmem:[#allocation17 + $0x12c] sm:$0xf]  ;;  %v4197_v10 = vld [vmem:[#allocation20 + $0x1d8] sm:$0xff] }
 0xcbc   :  { %v4174_v29 = vld [vmem:[#allocation20 + $0x120] sm:$0xff] }
 0xcbe   :  { %2570 = vmatpush.bf16.msra.mxu3 %v3792_v12  ;;  %v3716_v12 = vor.u32 %v4145_v9, %v3715_v8  ;;  %v4194_v8 = vld [vmem:[#allocation20 + $0x1c0] sm:$0xff]  ;;  %v4171_v9 = vld [vmem:[#allocation20 + $0x108] sm:$0xff] }
 0xced   :  { %v2111_v21 = vpop.xlane.xlu2 %2110 }
 0xcee   :  { %4309 = vrcp.f32 %v2111_v21  ;;  %v3772_v21 = vor.u32 %v4160_v18, %v3771_v46  ;;  %v4140_v46 = vld [vmem:[#allocation17 + $0x10c] sm:$0xf0]  ;;  %v4138_v18 = vld [vmem:[#allocation17 + $0x104] sm:$0xf] }
 0xcf4   :  { %v4310_v22 = vpop.eup %4309 }
 0xcf5   :  { %v2125_v23 = vmul.f32 %v4310_v22, %v4302_v4  ;;  %v3787_v4 = vld [vmem:[#allocation17 + $0x1c0] sm:$0xf]  ;;  %v3773_v22 = vld [vmem:[#allocation17 + $0x1b0] sm:$0xf0] }
 0xcf6   :  { %v3788_v7 = vor.u32 %v4164_v5, %v3787_v4  ;;  %v4144_v4 = vld [vmem:[#allocation17 + $0x12c] sm:$0xf0]  ;;  %v4142_v5 = vld [vmem:[#allocation17 + $0x124] sm:$0xf] }
 0xcf7   :  { %v2129_v24 = vpack.c.bf16 %v2125_v23, %v2125_v23  ;;  %v3779_v23 = vld [vmem:[#allocation17 + $0x1a8] sm:$0xf] }
 0xcf8   :  { %2557 = vmatpush.bf16.msrb.mxu2 %v3788_v7  ;;  %v3709_v7 = vld [vmem:[#allocation17 + $0x130] sm:$0xf0] }
 0xcf9   :  { %3651 = vmatmul.msk.bf16.vlgmr.msra.gmra.mxu1 %vm792_vm8, %v2129_v24  ;;  %v4161_v24 = vld [vmem:[#allocation17 + $0x1b4] sm:$0xf0]  ;;  %v3712_v11 = vor.u32 %v4142_v5, %v3709_v7  ;;  %v4186_v7 = vld [vmem:[#allocation20 + $0x180] sm:$0xff] }
 0xcfa   :  { %2595 = vmatpush.bf16.msra.mxu1 %v3816_v63  ;;  %v4147_v63 = vld [vmem:[#allocation17 + $0x14c] sm:$0xf]  ;;  %v4172_v5 = vld [vmem:[#allocation20 + $0x110] sm:$0xff] }
 0xcfc   :  { %2558 = vmatpush.bf16.msrb.mxu2 %v3772_v21  ;;  %v3692_v21 = vor.u32 %v4140_v46, %v3691_v16 }
 0xcfe   :  { %2596 = vmatpush.bf16.msra.mxu1 %v3800_v17  ;;  %v3720_v17 = vor.u32 %v4143_v14, %v3717_v15  ;;  %v4170_v14 = vld [vmem:[#allocation20 + $0x100] sm:$0xff] }
 0xcff   :  { %v4178_v15 = vld [vmem:[#allocation20 + $0x140] sm:$0xff] }
 0xd01   :  { %v2170_v28 = vpop.f32.mrf.mxu2 }
 0xd02   :  { %2219 = vrot.lane.b32.xlu1 %v2170_v28, %s4715_s13  ;;  %v3776_v28 = vor.u32 %v4158_v20, %v3773_v22  ;;  %v3693_v20 = vld [vmem:[#allocation17 + $0x110] sm:$0xf0] }
 0xd03   :  { %v3696_v22 = vor.u32 %v4138_v18, %v3693_v20 }
 0xd04   :  { %2571 = vmatpush.bf16.msra.mxu3 %v3776_v28  ;;  %v4139_v28 = vld [vmem:[#allocation17 + $0x10c] sm:$0xf] }
 0xd09   :  { %v2172_v30 = vpop.f32.mrf.mxu2 }
 0xd0a   :  { %v3780_v30 = vor.u32 %v4161_v24, %v3779_v23  ;;  %v3699_v23 = vld [vmem:[#allocation17 + $0x108] sm:$0xf]  ;;  %v4141_v24 = vld [vmem:[#allocation17 + $0x114] sm:$0xf0] }
 0xd0c   :  { %2584 = vmatpush.bf16.msrb.mxu0 %v3780_v30  ;;  %v3700_v30 = vor.u32 %v4141_v24, %v3699_v23 }
 0xd35   :  { %v2214_v31 = vpop.f32.mrf.mxu0 }
 0xd3c   :  { %v2192_v32 = vpop.f32.mrf.mxu3 }
 0xd3d   :  { %v2216_v33 = vpop.f32.mrf.mxu0  ;;  %2223 = vrot.lane.b32.xlu1 %v2192_v32, %s4696_s1  ;;  %v3781_v32 = vld [vmem:[#allocation17 + $0x1b8] sm:$0xf0] }
 0xd44   :  { %v2194_v35 = vpop.f32.mrf.mxu3 }
 0xd45   :  { %2227 = vrot.lane.b32.xlu1 %v2214_v31, %s4716_s4  ;;  %v4159_v31 = vld [vmem:[#allocation17 + $0x1ac] sm:$0xf]  ;;  %v3755_v35 = vld [vmem:[#allocation17 + $0x180] sm:$0xf] }
 0xd46   :  { %v3784_v33 = vor.u32 %v4159_v31, %v3781_v32  ;;  %v3756_v38 = vor.u32 %v4156_v36, %v3755_v35  ;;  %v3701_v31 = vld [vmem:[#allocation17 + $0x118] sm:$0xf0]  ;;  %v4193_v35 = vld [vmem:[#allocation20 + $0x1b8] sm:$0xff] }
 0xd47   :  { %v3704_v32 = vor.u32 %v4139_v28, %v3701_v31  ;;  %v4201_v36 = vld [vmem:[#allocation20 + $0x1f8] sm:$0xff] }
 0xd48   :  { %2597 = vmatpush.bf16.msra.mxu1 %v3784_v33  ;;  %2559 = vmatpush.bf16.msrb.mxu2 %v3756_v38  ;;  %v4192_v38 = vld [vmem:[#allocation20 + $0x1b0] sm:$0xff] }
 0xd74   :  { %v2220_v13 = vpop.permute.xlu1 %2219 }
 0xd76   :  { %v2145_v42 = vpop.f32.mrf.mxu1 }
 0xd77   :  { %v2230_v48 = vsel %vm678_vm5, %v2145_v42, %v2220_v13  ;;  %v4157_v42 = vld [vmem:[#allocation17 + $0x194] sm:$0xf0]  ;;  %v3768_v13 = vor.u32 %v4155_v47, %v3765_v45 }
 0xd78   :  { %v3764_v44 = vor.u32 %v4157_v42, %v3763_v40 }
 0xd79   :  { %2598 = vmatpush.bf16.msra.mxu1 %v3768_v13 }
 0xd7a   :  { %2585 = vmatpush.bf16.msrb.mxu0 %v3764_v44 }
 0xd7e   :  { %v2147_v43 = vpop.f32.mrf.mxu1 }
 0xd7f   :  { %v3760_v43 = vor.u32 %v4154_v37, %v3757_v39  ;;  %v4200_v39 = vld [vmem:[#allocation20 + $0x1f0] sm:$0xff] }
 0xd81   :  { %2572 = vmatpush.bf16.msra.mxu3 %v3760_v43 }
 0xdaf   :  { %v2224_v0 = vpop.permute.xlu1 %2223 }
 0xdb0   :  { %v2231_v49 = vsel %vm940_vm11, %v2230_v48, %v2224_v0  ;;  %v3739_v0 = vld [vmem:[#allocation17 + $0x160] sm:$0xf]  ;;  %v4152_v48 = vld [vmem:[#allocation17 + $0x16c] sm:$0xf0] }
 0xdb7   :  { %v2228_v27 = vpop.permute.xlu1 %2227 }
 0xdb8   :  { %v2232_v19 = vsel %vm942_vm12, %v2231_v49, %v2228_v27  ;;  %v4150_v49 = vld [vmem:[#allocation17 + $0x164] sm:$0xf]  ;;  %v3740_v27 = vor.u32 %v4152_v48, %v3739_v0  ;;  %v4258_v0 = vld [vmem:[%s5060_s9 + $0x1] ss:$0 sm:$0xff] }
 0xdb9   :  { %v2239_v50 = vpack.c.bf16 %v2232_v19, %v2232_v19  ;;  %v3741_v19 = vld [vmem:[#allocation17 + $0x170] sm:$0xf0] }
 0xdba   :  { %2560 = vmatpush.bf16.msrb.mxu2 %v3740_v27  ;;  %v4259_v27 = vld [vmem:[#allocation16 + $0x1] ss:$0 sm:$0xff] }
 0xdbb   :  { %2313 = vmatmul.bf16.vlgmr.msrb.gmra.mxu1 %v2239_v50  ;;  %v3747_v50 = vld [vmem:[#allocation17 + $0x168] sm:$0xf] }
 0xdbe   :  { %2561 = vmatpush.bf16.msrb.mxu2 %v3724_v60  ;;  %v4183_v60 = vld [vmem:[#allocation20 + $0x168] sm:$0xff] }
 0xe38   :  { %v2314_v25 = vpop.f32.mrf.mxu1 }
 0xe39   :  { %v5023_v53 = vadd.f32 %v2314_v25, %v2238_v52  ;;  %v3744_v52 = vor.u32 %v4150_v49, %v3741_v19  ;;  %v3748_v25 = vor.u32 %v4153_v51, %v3747_v50 }
 0xe3b   :  { %2323 = vadd.xlane.f32.xlu1 %v5023_v53  ;;  %2573 = vmatpush.bf16.msra.mxu3 %v3744_v52  ;;  %v4177_v52 = vld [vmem:[#allocation20 + $0x138] sm:$0xff] }
 0xe3c   :  { %2586 = vmatpush.bf16.msrb.mxu0 %v3748_v25  ;;  %v4185_v25 = vld [vmem:[#allocation20 + $0x178] sm:$0xff] }
 0xe3f   :  { %2574 = vmatpush.bf16.msra.mxu3 %v3728_v61  ;;  %v4182_v61 = vld [vmem:[#allocation20 + $0x160] sm:$0xff] }
 0xe40   :  { %v2316_v54 = vpop.f32.mrf.mxu1  ;;  %2587 = vmatpush.bf16.msrb.mxu0 %v3732_v62  ;;  %v4188_v62 = vld [vmem:[#allocation20 + $0x190] sm:$0xff] }
 0xe41   :  { %v4151_v54 = vld [vmem:[#allocation17 + $0x16c] sm:$0xf] }
 0xe42   :  { %v3752_v41 = vor.u32 %v4151_v54, %v3749_v55  ;;  %v4191_v54 = vld [vmem:[#allocation20 + $0x1a8] sm:$0xff] }
 0xe43   :  { %2575 = vmatpush.bf16.msra.mxu3 %v3712_v11  ;;  %v4199_v55 = vld [vmem:[#allocation20 + $0x1e8] sm:$0xff] }
 0xe44   :  { %2599 = vmatpush.bf16.msra.mxu1 %v3752_v41  ;;  %2588 = vmatpush.bf16.msrb.mxu0 %v3716_v12  ;;  %v4176_v41 = vld [vmem:[#allocation20 + $0x130] sm:$0xff]  ;;  %v4179_v11 = vld [vmem:[#allocation20 + $0x148] sm:$0xff]  ;;  %v2386_v12 = vld [vmem:[#allocation19 + $0x4] sm:$0xf] }
 0xe45   :  { %v2390_v16 = vperm.slane %v2386_v12, 2  ;;  %v2389_v23 = vperm.slane %v2386_v12, 1 }
 0xe47   :  { %2576 = vmatpush.bf16.msra.mxu3 %v3696_v22  ;;  %v2388_v22 = vperm.slane %v2386_v12, 0 }
 0xe48   :  { %2589 = vmatpush.bf16.msrb.mxu0 %v3700_v30 }
 0xe4b   :  { %2924 = vmatpush.bf16.msrb.mxu3 %v4185_v25 }
 0xe4c   :  { %2937 = vmatpush.bf16.msra.mxu0 %v4193_v35 }
 0xe4f   :  { %2925 = vmatpush.bf16.msrb.mxu3 %v4184_v56 }
 0xe50   :  { %2938 = vmatpush.bf16.msra.mxu0 %v4192_v38 }
 0xe53   :  { %2926 = vmatpush.bf16.msrb.mxu3 %v4183_v60 }
 0xe54   :  { %2939 = vmatpush.bf16.msra.mxu0 %v4191_v54 }
 0xe57   :  { %2927 = vmatpush.bf16.msrb.mxu3 %v4182_v61 }
 0xeae   :  { %v2324_v34 = vpop.xlane.xlu1 %2323 }
 0xeaf   :  { %v2325_v1 = vmul.f32 %v2324_v34, %v4882_v26  ;;  %v3733_v34 = vld [vmem:[#allocation17 + $0x158] sm:$0xf0] }
 0xeb1   :  { %v5028_v2 = vsub.f32 %v5023_v53, %v2325_v1  ;;  %v3736_v1 = vor.u32 %v4147_v63, %v3733_v34  ;;  %v4196_v63 = vld [vmem:[#allocation20 + $0x1d0] sm:$0xff]  ;;  %v4173_v34 = vld [vmem:[#allocation20 + $0x118] sm:$0xff] }
 0xeb3   :  { %v2327_v3 = vmul.f32 %v5028_v2, %v5028_v2  ;;  %2600 = vmatpush.bf16.msra.mxu1 %v3736_v1  ;;  %v4181_v1 = vld [vmem:[#allocation20 + $0x158] sm:$0xff] }
 0xeb4   :  { %2928 = vmatpush.bf16.msrb.mxu3 %v4181_v1 }
 0xeb5   :  { %2328 = vadd.xlane.f32.xlu2 %v2327_v3  ;;  %v3707_v3 = vld [vmem:[#allocation17 + $0x120] sm:$0xf] }
 0xeb6   :  { %v3708_v6 = vor.u32 %v4144_v4, %v3707_v3  ;;  %v4187_v3 = vld [vmem:[#allocation20 + $0x188] sm:$0xff] }
 0xeb7   :  { %2601 = vmatpush.bf16.msra.mxu1 %v3720_v17  ;;  %v4195_v4 = vld [vmem:[#allocation20 + $0x1c8] sm:$0xff]  ;;  %v2391_v17 = vperm.slane %v2386_v12, 3 }
 0xeb8   :  { %2562 = vmatpush.bf16.msrb.mxu2 %v3708_v6  ;;  %v4180_v6 = vld [vmem:[#allocation20 + $0x150] sm:$0xff] }
 0xeb9   :  { %2929 = vmatpush.bf16.msrb.mxu3 %v4180_v6 }
 0xebb   :  { %2602 = vmatpush.bf16.msra.mxu1 %v3704_v32 }
 0xebc   :  { %2563 = vmatpush.bf16.msrb.mxu2 %v3692_v21 }
 0xebd   :  { %2930 = vmatpush.bf16.msrb.mxu3 %v4179_v11 }
 0xebf   :  { %2950 = vmatpush.bf16.msrb.mxu1 %v4201_v36 }
 0xec0   :  { %2911 = vmatpush.bf16.msra.mxu2 %v4177_v52 }
 0xec1   :  { %2931 = vmatpush.bf16.msrb.mxu3 %v4178_v15 }
 0xec3   :  { %2951 = vmatpush.bf16.msrb.mxu1 %v4200_v39 }
 0xec4   :  { %2912 = vmatpush.bf16.msra.mxu2 %v4176_v41 }
 0xec7   :  { %2952 = vmatpush.bf16.msrb.mxu1 %v4199_v55 }
 0xec8   :  { %2913 = vmatpush.bf16.msra.mxu2 %v4175_v58 }
 0xecb   :  { %2953 = vmatpush.bf16.msrb.mxu1 %v4198_v57 }
 0xecc   :  { %2914 = vmatpush.bf16.msra.mxu2 %v4174_v29 }
 0xecf   :  { %2954 = vmatpush.bf16.msrb.mxu1 %v4197_v10 }
 0xed0   :  { %2915 = vmatpush.bf16.msra.mxu2 %v4173_v34 }
 0xed3   :  { %2955 = vmatpush.bf16.msrb.mxu1 %v4196_v63 }
 0xed4   :  { %2916 = vmatpush.bf16.msra.mxu2 %v4172_v5 }
 0xed7   :  { %2956 = vmatpush.bf16.msrb.mxu1 %v4195_v4 }
 0xed8   :  { %2917 = vmatpush.bf16.msra.mxu2 %v4171_v9 }
 0xedb   :  { %2957 = vmatpush.bf16.msrb.mxu1 %v4194_v8 }
 0xedc   :  { %2918 = vmatpush.bf16.msra.mxu2 %v4170_v14 }
 0xf28   :  { %v2329_v33 = vpop.xlane.xlu2 %2328 }
 0xf29   :  { %v2330_v37 = vmul.f32 %v2329_v33, %v4882_v26 }
 0xf2b   :  { %v2331_v40 = vadd.f32 1e-05, %v2330_v37 }
 0xf2d   :  { %4311 = vrsqrt.f32 %v2331_v40  ;;  %vm2338_vm4 = vweird.f32 %v2331_v40 }
 0xf33   :  { %v4312_v42 = vpop.eup %4311 }
 0xf34   :  { %v2333_v43 = vmul.f32 %v4312_v42, %v2331_v40  ;;  %vm2339_vm3 = vweird.f32 %v4312_v42 }
 0xf35   :  { %vm2340_vm5 = vmor %vm2338_vm4, %vm2339_vm3 }
 0xf36   :  { %v2334_v44 = vmul.f32 %v4312_v42, %v2333_v43 }
 0xf38   :  { %v2335_v47 = vmul.f32 0.5, %v2334_v44 }
 0xf3a   :  { %v2336_v45 = vsub.f32 1.5, %v2335_v47 }
 0xf3c   :  { %v2337_v13 = vmul.f32 %v4312_v42, %v2336_v45 }
 0xf3e   :  { %v2341_v48 = vsel %vm2340_vm5, %v4312_v42, %v2337_v13 }
 0xf3f   :  { %v2342_v49 = vmul.f32 %v2341_v48, %v5028_v2  ;;  %v4190_v2 = vld [vmem:[#allocation20 + $0x1a0] sm:$0xff] }
 0xf40   :  { %2940 = vmatpush.bf16.msra.mxu0 %v4190_v2 }
 0xf41   :  { %v2346_v19 = vmul.f32 %v4258_v0, %v2342_v49 }
 0xf43   :  { %v2350_v50 = vadd.f32 %v4259_v27, %v2346_v19 }
 0xf44   :  { %2941 = vmatpush.bf16.msra.mxu0 %v4189_v59 }
 0xf45   :  { %v2351_v51 = vpack.c.bf16 %v2350_v50, %v2350_v50 }
 0xf47   :  { %2564 = vmatmul.bf16.vlgmr.msrb.gmra.mxu2 %v2351_v51  ;;  %2577 = vmatmul.bf16.vlgmr.msra.gmra.mxu3 %v2351_v51 }
 0xf48   :  { %2590 = vmatmul.bf16.vlgmr.msrb.gmra.mxu0 %v2351_v51  ;;  %2603 = vmatmul.bf16.vlgmr.msra.gmra.mxu1 %v2351_v51 }
 0xf49   :  { %2942 = vmatpush.bf16.msra.mxu0 %v4188_v62 }
 0xf4d   :  { %2943 = vmatpush.bf16.msra.mxu0 %v4187_v3 }
 0xf51   :  { %2944 = vmatpush.bf16.msra.mxu0 %v4186_v7 }
 0xfc5   :  { %v2591_v46 = vpop.f32.mrf.mxu0  ;;  %v2604_v18 = vpop.f32.mrf.mxu1 }
 0xfc6   :  { %v2592_v20 = vadd.f32 %v2591_v46, %v2390_v16  ;;  %v2605_v21 = vadd.f32 %v2604_v18, %v2391_v17  ;;  %v4260_v17 = vld [vmem:[%s5065_s14 + $0x1] ss:$0 sm:$0xff]  ;;  %s4718_s14 = smov [#allocation26]  }
 0xfc7   :  { %v2649_v18 = vadd.f32 %v4260_v17, %v5023_v53  ;;  %s3124_s16 = sshll.u32 %s4718_s14, 4  ;;  %s3125_s16 = int_to_ptr.vmem [resolvable:$true] %s3124_s16 }
 0xfc8   :  { %v2614_v24 = vmul.f32 0.044715, %v2592_v20  ;;  %v2615_v28 = vmul.f32 0.044715, %v2605_v21  ;;  %v2610_v56 = vmul.f32 0.5, %v2592_v20  ;;  %v2611_v57 = vmul.f32 0.5, %v2605_v21 }
 0xfca   :  { %v2618_v30 = vmul.f32 %v2614_v24, %v2592_v20  ;;  %v2619_v31 = vmul.f32 %v2615_v28, %v2605_v21  ;;  %v2565_v32 = vpop.f32.mrf.mxu2  ;;  %v2578_v33 = vpop.f32.mrf.mxu3  ;;  %v4004_v24 = vld [vmem:[#allocation25 + $0x70] sm:$0xf]  ;;  %v4217_v28 = vld [vmem:[#allocation25 + $0x74] sm:$0xf0] }
 0xfcb   :  { %v2566_v35 = vadd.f32 %v2565_v32, %v2388_v22  ;;  %v2579_v36 = vadd.f32 %v2578_v33, %v2389_v23  ;;  %v4006_v32 = vld [vmem:[#allocation25 + $0x78] sm:$0xf0] }
 0xfcc   :  { %v2622_v37 = vmul.f32 %v2618_v30, %v2592_v20  ;;  %v2623_v38 = vmul.f32 %v2619_v31, %v2605_v21  ;;  %v4216_v30 = vld [vmem:[#allocation25 + $0x74] sm:$0xf]  ;;  %v4005_v31 = vor.u32 %v4217_v28, %v4004_v24  ;;  %v4262_v28 = vld [vmem:[#allocation23] ss:$0 sm:$0xff] }
 0xfcd   :  { %v2612_v39 = vmul.f32 0.044715, %v2566_v35  ;;  %v2613_v40 = vmul.f32 0.044715, %v2579_v36  ;;  %v2593_v42 = vpop.f32.mrf.mxu0  ;;  %v2606_v43 = vpop.f32.mrf.mxu1  ;;  %v2608_v63 = vmul.f32 0.5, %v2566_v35  ;;  %v2609_v1 = vmul.f32 0.5, %v2579_v36 }
 0xfce   :  { %v2626_v44 = vadd.f32 %v2622_v37, %v2592_v20  ;;  %v2627_v47 = vadd.f32 %v2623_v38, %v2605_v21  ;;  %v4009_v33 = vor.u32 %v4216_v30, %v4006_v32  ;;  %3091 = vmatpush.bf16.msrb.mxu2 %v4005_v31  ;;  %v3996_v38 = vld [vmem:[#allocation25 + $0x60] sm:$0xf]  ;;  %v3998_v43 = vld [vmem:[#allocation25 + $0x68] sm:$0xf0] }
 0xfcf   :  { %v2616_v45 = vmul.f32 %v2612_v39, %v2566_v35  ;;  %v2617_v13 = vmul.f32 %v2613_v40, %v2579_v36  ;;  %v4215_v39 = vld [vmem:[#allocation25 + $0x64] sm:$0xf0]  ;;  %v4214_v40 = vld [vmem:[#allocation25 + $0x64] sm:$0xf] }
 0xfd0   :  { %v2630_v0 = vmul.f32 0.7978846, %v2626_v44  ;;  %v2631_v48 = vmul.f32 0.7978846, %v2627_v47  ;;  %3104 = vmatpush.bf16.msra.mxu3 %v4009_v33  ;;  %v3997_v42 = vor.u32 %v4215_v39, %v3996_v38  ;;  %v4001_v44 = vor.u32 %v4214_v40, %v3998_v43  ;;  %v3988_v47 = vld [vmem:[#allocation25 + $0x50] sm:$0xf] }
 0xfd1   :  { %v2620_v49 = vmul.f32 %v2616_v45, %v2566_v35  ;;  %v2621_v27 = vmul.f32 %v2617_v13, %v2579_v36  ;;  %v4213_v45 = vld [vmem:[#allocation25 + $0x54] sm:$0xf0]  ;;  %v4212_v13 = vld [vmem:[#allocation25 + $0x54] sm:$0xf] }
 0xfd2   :  { %v2567_v19 = vpop.f32.mrf.mxu2  ;;  %v2580_v50 = vpop.f32.mrf.mxu3  ;;  %4313 = vtanh.f32 %v2630_v0  ;;  %3092 = vmatpush.bf16.msrb.mxu2 %v3997_v42  ;;  %v3989_v0 = vor.u32 %v4213_v45, %v3988_v47 }
 0xfd3   :  { %4315 = vtanh.f32 %v2631_v48  ;;  %v2624_v51 = vadd.f32 %v2620_v49, %v2566_v35  ;;  %v2625_v52 = vadd.f32 %v2621_v27, %v2579_v36  ;;  %v3990_v48 = vld [vmem:[#allocation25 + $0x58] sm:$0xf0]  ;;  %v3980_v27 = vld [vmem:[#allocation25 + $0x40] sm:$0xf]  ;;  %v4211_v19 = vld [vmem:[#allocation25 + $0x44] sm:$0xf0] }
 0xfd4   :  { %3105 = vmatpush.bf16.msra.mxu3 %v4001_v44  ;;  %v3993_v49 = vor.u32 %v4212_v13, %v3990_v48  ;;  %v4210_v50 = vld [vmem:[#allocation25 + $0x44] sm:$0xf] }
 0xfd5   :  { %v2628_v25 = vmul.f32 0.7978846, %v2624_v51  ;;  %v2629_v54 = vmul.f32 0.7978846, %v2625_v52  ;;  %v3981_v51 = vor.u32 %v4211_v19, %v3980_v27  ;;  %v3982_v52 = vld [vmem:[#allocation25 + $0x48] sm:$0xf0] }
 0xfd6   :  { %3093 = vmatpush.bf16.msrb.mxu2 %v3989_v0 }
 0xfd7   :  { %4317 = vtanh.f32 %v2628_v25  ;;  %v3985_v25 = vor.u32 %v4210_v50, %v3982_v52 }
 0xfd8   :  { %v4314_v55 = vpop.eup %4313  ;;  %4319 = vtanh.f32 %v2629_v54  ;;  %3106 = vmatpush.bf16.msra.mxu3 %v3993_v49  ;;  %v3972_v54 = vld [vmem:[#allocation25 + $0x30] sm:$0xf] }
 0xfd9   :  { %v4316_v41 = vpop.eup %4315  ;;  %v2638_v2 = vadd.f32 1.0, %v4314_v55  ;;  %v4209_v55 = vld [vmem:[#allocation25 + $0x34] sm:$0xf0] }
 0xfda   :  { %v2639_v58 = vadd.f32 1.0, %v4316_v41  ;;  %3094 = vmatpush.bf16.msrb.mxu2 %v3981_v51  ;;  %v4208_v41 = vld [vmem:[#allocation25 + $0x34] sm:$0xf] }
 0xfdb   :  { %v2642_v60 = vmul.f32 %v2638_v2, %v2610_v56  ;;  %v3973_v56 = vor.u32 %v4209_v55, %v3972_v54  ;;  %v3974_v2 = vld [vmem:[#allocation25 + $0x38] sm:$0xf0] }
 0xfdc   :  { %v2643_v59 = vmul.f32 %v2639_v58, %v2611_v57  ;;  %3107 = vmatpush.bf16.msra.mxu3 %v3985_v25  ;;  %v3977_v57 = vor.u32 %v4208_v41, %v3974_v2  ;;  %v3964_v58 = vld [vmem:[#allocation25 + $0x20] sm:$0xf] }
 0xfdd   :  { %v4318_v10 = vpop.eup %4317  ;;  %v2652_v29 = vpack.c.bf16 %v2642_v60, %v2642_v60  ;;  %v4207_v60 = vld [vmem:[#allocation25 + $0x24] sm:$0xf0] }
 0xfde   :  { %v4320_v61 = vpop.eup %4319  ;;  %v2653_v62 = vpack.c.bf16 %v2643_v59, %v2643_v59  ;;  %v2636_v34 = vadd.f32 1.0, %v4318_v10  ;;  %3095 = vmatpush.bf16.msrb.mxu2 %v3973_v56  ;;  %v4206_v59 = vld [vmem:[#allocation25 + $0x24] sm:$0xf]  ;;  %v3965_v10 = vor.u32 %v4207_v60, %v3964_v58 }
 0xfdf   :  { %2945 = vmatmul.bf16.vlgmr.msra.gmra.mxu0 %v2652_v29  ;;  %v2637_v3 = vadd.f32 1.0, %v4320_v61  ;;  %v3966_v29 = vld [vmem:[#allocation25 + $0x28] sm:$0xf0] }
 0xfe0   :  { %2958 = vmatmul.bf16.vlgmr.msrb.gmra.mxu1 %v2653_v62  ;;  %v2640_v4 = vmul.f32 %v2636_v34, %v2608_v63  ;;  %3108 = vmatpush.bf16.msra.mxu3 %v3977_v57  ;;  %v3969_v61 = vor.u32 %v4206_v59, %v3966_v29  ;;  %v3956_v62 = vld [vmem:[#allocation25 + $0x10] sm:$0xf]  ;;  %v4205_v63 = vld [vmem:[#allocation25 + $0x14] sm:$0xf0]  ;;  %v4204_v34 = vld [vmem:[#allocation25 + $0x14] sm:$0xf] }
 0xfe1   :  { %v2641_v5 = vmul.f32 %v2637_v3, %v2609_v1  ;;  %v3957_v1 = vor.u32 %v4205_v63, %v3956_v62  ;;  %v3958_v3 = vld [vmem:[#allocation25 + $0x18] sm:$0xf0] }
 0xfe2   :  { %v2650_v6 = vpack.c.bf16 %v2640_v4, %v2640_v4  ;;  %3096 = vmatpush.bf16.msrb.mxu2 %v3965_v10  ;;  %v3948_v4 = vld [vmem:[#allocation25] sm:$0xf] }
 0xfe3   :  { %v2651_v7 = vpack.c.bf16 %v2641_v5, %v2641_v5  ;;  %v4203_v5 = vld [vmem:[#allocation25 + $0x4] sm:$0xf0] }
 0xfe4   :  { %2919 = vmatmul.bf16.vlgmr.msra.gmra.mxu2 %v2650_v6  ;;  %3109 = vmatpush.bf16.msra.mxu3 %v3969_v61  ;;  %v3961_v6 = vor.u32 %v4204_v34, %v3958_v3 }
 0xfe5   :  { %2932 = vmatmul.bf16.vlgmr.msrb.gmra.mxu3 %v2651_v7  ;;  %v4202_v7 = vld [vmem:[#allocation25 + $0x4] sm:$0xf] }
 0xfe6   :  { %3097 = vmatpush.bf16.msrb.mxu2 %v3957_v1 }
 0xfe8   :  { %3110 = vmatpush.bf16.msra.mxu3 %v3961_v6 }
0x105c   :  { %v2946_v8 = vpop.f32.mrf.mxu0 }
0x105d   :  { %v2959_v9 = vpop.f32.mrf.mxu1 }
0x1064   :  { %v2948_v11 = vpop.f32.mrf.mxu0 }
0x1065   :  { %v2961_v12 = vpop.f32.mrf.mxu1 }
0x1067   :  { %v2920_v14 = vpop.f32.mrf.mxu2 }
0x1068   :  { %v2933_v15 = vpop.f32.mrf.mxu3 }
0x1069   :  { %v2934_v16 = vadd.f32 %v2933_v15, %v2920_v14 }
0x106b   :  { %v2947_v46 = vadd.f32 %v2946_v8, %v2934_v16  ;;  %v3950_v8 = vld [vmem:[#allocation25 + $0x8] sm:$0xf0] }
0x106c   :  { %v3953_v11 = vor.u32 %v4202_v7, %v3950_v8 }
0x106d   :  { %v2960_v20 = vadd.f32 %v2959_v9, %v2947_v46  ;;  %v3949_v9 = vor.u32 %v4203_v5, %v3948_v4 }
0x106e   :  { %3111 = vmatpush.bf16.msra.mxu3 %v3953_v11 }
0x106f   :  { %v2922_v21 = vpop.f32.mrf.mxu2  ;;  %v2963_v22 = vadd.f32 %v2960_v20, %v2649_v18  ;;  %3098 = vmatpush.bf16.msrb.mxu2 %v3949_v9 }
0x1070   :  { %v2935_v23 = vpop.f32.mrf.mxu3 }
0x1071   :  { %2966 = vadd.xlane.f32.xlu2 %v2963_v22 }
0x10e4   :  { %v2967_v35 = vpop.xlane.xlu2 %2966 }
0x10e5   :  { %v2968_v36 = vmul.f32 %v2967_v35, %v4882_v26 }
0x10e7   :  { %v5042_v37 = vsub.f32 %v2963_v22, %v2968_v36  ;;  %v4261_v22 = vld [vmem:[#allocation22] ss:$0 sm:$0xff] }
0x10e9   :  { %v2970_v53 = vmul.f32 %v5042_v37, %v5042_v37 }
0x10eb   :  { %2971 = vadd.xlane.f32.xlu2 %v2970_v53 }
0x115e   :  { %v2972_v12 = vpop.xlane.xlu2 %2971 }
0x115f   :  { %v2973_v14 = vmul.f32 %v2972_v12, %v4882_v26 }
0x1161   :  { %v2974_v15 = vadd.f32 1e-05, %v2973_v14 }
0x1163   :  { %4321 = vrsqrt.f32 %v2974_v15  ;;  %vm2981_vm7 = vweird.f32 %v2974_v15 }
0x1169   :  { %v4322_v16 = vpop.eup %4321 }
0x116a   :  { %v2976_v17 = vmul.f32 %v4322_v16, %v2974_v15  ;;  %vm2982_vm6 = vweird.f32 %v4322_v16 }
0x116b   :  { %vm2983_vm8 = vmor %vm2981_vm7, %vm2982_vm6 }
0x116c   :  { %v2977_v46 = vmul.f32 %v4322_v16, %v2976_v17 }
0x116e   :  { %v2978_v18 = vmul.f32 0.5, %v2977_v46 }
0x1170   :  { %v2979_v20 = vsub.f32 1.5, %v2978_v18 }
0x1172   :  { %v2980_v21 = vmul.f32 %v4322_v16, %v2979_v20 }
0x1174   :  { %v2984_v23 = vsel %vm2983_vm8, %v4322_v16, %v2980_v21 }
0x1175   :  { %v2985_v24 = vmul.f32 %v2984_v23, %v5042_v37 }
0x1177   :  { %v2989_v30 = vmul.f32 %v4261_v22, %v2985_v24 }
0x1179   :  { %v2993_v31 = vadd.f32 %v4262_v28, %v2989_v30 }
0x117b   :  { %v2994_v32 = vpack.c.bf16 %v2993_v31, %v2993_v31 }
0x117d   :  { %3099 = vmatmul.bf16.vlgmr.msrb.gmra.mxu2 %v2994_v32  ;;  %3112 = vmatmul.bf16.vlgmr.msra.gmra.mxu3 %v2994_v32 }
0x1200   :  { %v3100_v26 = vpop.f32.mrf.mxu2  ;;  %v3113_v33 = vpop.f32.mrf.mxu3 }
0x1201   :  { %3117 = vst [vmem:[#allocation26] sm:$0xff] %v3100_v26 }
0x1202   :  { %3118 = vst [vmem:[#allocation26 + $0x8] sm:$0xff] %v3113_v33 }
0x1203   :  { %3129 = dma.vmem_to_hbm [thread:$0]  %s3125_s16, 256, %s3127_s22, [#allocation5]  }
0x1208   :  { %v3102_v35 = vpop.f32.mrf.mxu2  ;;  %v3115_v36 = vpop.f32.mrf.mxu3 }
0x1209   :  { %4687 = dma.done.wait [#allocation5], 256  }
0x120a   :  { %4688 = vsyncadd [#allocation5], 4294967040 }
0x120b   :  { %3134 = vsyncpa [#allocation4], 1 }
0x120c   :  { %3135 = vsyncpa [#allocation9], 1 }
0x120d   :  { %3136 = vsyncpa [#allocation12], 1 }
0x120e   :  { %3137 = vsyncpa [#allocation15], 1 }
0x120f   :  { %3138 = vsyncpa [#allocation18], 1 }
0x1210   :  { %3139 = vsyncpa [#allocation21], 1 }
0x1211   :  { %3140 = vsyncpa [#allocation24], 1 }
0x1212   :  { %3141 = vsyncpa [#allocation5], 1 }
0x1213   :  { %3142 = vsyncpa [#allocation6], 1 }

</bundles_post_ra>
